<compile_context>
chip_gen: v7x
topology: tpu7x:2x2x1
jax: 0.10.0
libtpu: 0.0.40
codegen_flags: <defaults>
</compile_context>

<pallas_src>
import jax
import jax.numpy as jnp
from jax.experimental import pallas as pl
from jax.experimental.pallas import tpu as pltpu


def _mul_conv1x1_kernel(s_ref, x_ref, w_ref, o_ref):
    # s_ref: (1, Cin)    per-channel multiplier (lane-dense)
    # x_ref: (Cin, P)    input pixels, channel-major (native NCHW reshape)
    # w_ref: (tn, Cin)   1x1 conv weight slice (native (Cout, Cin) layout)
    # o_ref: (tn, P)     output tile
    # W @ diag(s) @ x == (W * s_row) @ x ; the (1, Cin) scale broadcasts along
    # sublanes on the VPU and is hidden under the weight DMA.
    w_scaled = w_ref[...] * s_ref[...]
    o_ref[...] = jnp.dot(
        w_scaled, x_ref[...], preferred_element_type=jnp.float32
    ).astype(o_ref.dtype)


def mul_conv2d_1x1(x, scale, weight, *, tn=192):
    """x: (N, Cin, H, W), scale: (1, Cin, 1, 1), weight: (Cout, Cin, 1, 1).
    Returns (N, Cout, H, W)."""
    N, C, H, W = x.shape
    Cout = weight.shape[0]
    P = N * H * W

    # 2-way Cout split (one block per v7x TensorCore); fall back to a single
    # block if it does not divide.
    if Cout % tn != 0:
        tn = Cout

    # Native-layout plumbing (pure reshapes when N == 1 -> no HBM transpose).
    x2d = jnp.moveaxis(x.reshape(N, C, H * W), 1, 0).reshape(C, P)   # (Cin, P)
    s2d = scale.reshape(1, C)                                        # (1, Cin)
    w2d = weight.reshape(Cout, C)                                    # (Cout, Cin)

    grid = (Cout // tn,)
    itemsize = jnp.dtype(x.dtype).itemsize
    cost = pl.CostEstimate(
        flops=2 * P * C * Cout + Cout * C,   # matmul + scale fold
        transcendentals=0,
        # x and scale are fetched once (constant index_map); weight streamed
        # once; output written once.
        bytes_accessed=(x2d.size + s2d.size + w2d.size + Cout * P) * itemsize,
    )

    out2d = pl.pallas_call(
        _mul_conv1x1_kernel,
        out_shape=jax.ShapeDtypeStruct((Cout, P), x.dtype),
        grid_spec=pltpu.PrefetchScalarGridSpec(
            num_scalar_prefetch=0,
            grid=grid,
            in_specs=[
                pl.BlockSpec((1, C), lambda j: (0, 0)),    # scale (resident)
                pl.BlockSpec((C, P), lambda j: (0, 0)),    # x     (resident)
                pl.BlockSpec((tn, C), lambda j: (j, 0)),   # weight (streamed)
            ],
            out_specs=pl.BlockSpec((tn, P), lambda j: (j, 0)),
        ),
        compiler_params=pltpu.CompilerParams(
            dimension_semantics=("parallel",),
        ),
        cost_estimate=cost,
    )(s2d, x2d, w2d)

    # (Cout, N*H*W) -> (N, Cout, H, W); free reshape/moveaxis for N == 1.
    return jnp.moveaxis(out2d.reshape(Cout, N, H, W), 1, 0)


if __name__ == "__main__":
    key = jax.random.PRNGKey(0)
    k1, k2, k3 = jax.random.split(key, 3)

    # Shapes fixed by the module: Conv2d(2304 -> 384), input 1x2304x7x7.
    N, Cin, H, W, Cout = 1, 2304, 7, 7, 384

    x673 = jax.random.normal(k1, (N, Cin, H, W), dtype=jnp.float32)
    x678 = jax.random.normal(k2, (N, Cin, 1, 1), dtype=jnp.float32)
    w = jax.random.normal(k3, (Cout, Cin, 1, 1), dtype=jnp.float32) * (1.0 / (Cin ** 0.5))

    out = mul_conv2d_1x1(x673, x678, w)
    out = jax.block_until_ready(out)
    assert out.shape == (N, Cout, H, W), out.shape

    # Plain-JAX reference: scale then 1x1 conv as a channel matmul.
    x2d_ref = (x673 * x678).reshape(Cin, H * W)
    ref = (w.reshape(Cout, Cin) @ x2d_ref).reshape(1, Cout, H, W)
    assert jnp.allclose(out, ref, atol=1e-3, rtol=1e-3)

    print("KERNEL_OK")
</pallas_src>

<mosaic_0001>
module attributes {stable_mosaic.version = 11 : i64} {
  func.func @_mul_conv1x1_kernel(%arg0: i32, %arg1: memref<1x2304xf32, #tpu.memory_space<vmem>>, %arg2: memref<2304x49xf32, #tpu.memory_space<vmem>>, %arg3: memref<192x2304xf32, #tpu.memory_space<vmem>>, %arg4: memref<192x49xf32, #tpu.memory_space<vmem>>) attributes {dimension_semantics = [#tpu.dimension_semantics<parallel>], iteration_bounds = array<i64: 2>, scalar_prefetch = 0 : i64, scratch_operands = 0 : i64, tpu.core_type = #tpu.core_type<tc>, window_params = [{pipeline_mode = #tpu.pipeline_mode<synchronous>, transform_indices = @transform_0, window_bounds = array<i64: 1, 2304>}, {pipeline_mode = #tpu.pipeline_mode<synchronous>, transform_indices = @transform_1, window_bounds = array<i64: 2304, 49>}, {transform_indices = @transform_2, window_bounds = array<i64: 192, 2304>}, {transform_indices = @transform_3, window_bounds = array<i64: 192, 49>}]} {
    %c0 = arith.constant 0 : index
    %c0_0 = arith.constant 0 : index
    %0 = vector.load %arg3[%c0, %c0_0] : memref<192x2304xf32, #tpu.memory_space<vmem>>, vector<192x2304xf32>
    %c0_1 = arith.constant 0 : index
    %c0_2 = arith.constant 0 : index
    %1 = vector.load %arg1[%c0_1, %c0_2] : memref<1x2304xf32, #tpu.memory_space<vmem>>, vector<1x2304xf32>
    %2 = vector.broadcast %1 : vector<1x2304xf32> to vector<192x2304xf32>
    %3 = arith.mulf %0, %2 : vector<192x2304xf32>
    %c0_3 = arith.constant 0 : index
    %c0_4 = arith.constant 0 : index
    %4 = vector.load %arg2[%c0_3, %c0_4] : memref<2304x49xf32, #tpu.memory_space<vmem>>, vector<2304x49xf32>
    %cst = arith.constant dense<0.000000e+00> : vector<192x49xf32>
    %5 = tpu.matmul %3, %4, %cst {dimension_numbers = #tpu.dot_dimension_numbers<[1], [0], [0], [1], [0, 0, 1, 1], [], []>} : vector<192x2304xf32>, vector<2304x49xf32>, vector<192x49xf32> -> vector<192x49xf32>
    %c0_5 = arith.constant 0 : index
    %c0_6 = arith.constant 0 : index
    %6 = vector.load %arg4[%c0_5, %c0_6] : memref<192x49xf32, #tpu.memory_space<vmem>>, vector<192x49xf32>
    tpu.vector_store %arg4[%c0_5, %c0_6], %5 {strides = array<i32>} : memref<192x49xf32, #tpu.memory_space<vmem>>, vector<192x49xf32>,
    return
  }
  func.func @transform_0(%arg0: i32) -> (i32, i32) {
    %c0_i32 = arith.constant 0 : i32
    %c0_i32_0 = arith.constant 0 : i32
    %c0_i32_1 = arith.constant 0 : i32
    return %c0_i32, %c0_i32_0 : i32, i32
  }
  func.func @transform_1(%arg0: i32) -> (i32, i32) {
    %c0_i32 = arith.constant 0 : i32
    %c0_i32_0 = arith.constant 0 : i32
    %c0_i32_1 = arith.constant 0 : i32
    return %c0_i32, %c0_i32_0 : i32, i32
  }
  func.func @transform_2(%arg0: i32) -> (i32, i32) {
    %c0_i32 = arith.constant 0 : i32
    %c0_i32_0 = arith.constant 0 : i32
    return %arg0, %c0_i32 : i32, i32
  }
  func.func @transform_3(%arg0: i32) -> (i32, i32) {
    %c0_i32 = arith.constant 0 : i32
    %c0_i32_0 = arith.constant 0 : i32
    return %arg0, %c0_i32 : i32, i32
  }
}

</mosaic_0001>

<bundles_post_ra>
// kernel: tpu_custom_call.1
= control target key start
LH: loop header
LB: loop body
LE: loop exit
PB: predicated region body
PF: predicated region fallthrough
CT: control target
= control target key end

     0   :  { %8 = vsyncpa [#allocation3], 0  ;;  %s6470_s0 = inlined_call_operand.hbm [shape: f32[1,2304], index: 0, kind: input, shape index: {}]   ;;  %s6471_s1 = inlined_call_operand.vmem [shape: f32[2304,49], index: 1, kind: input, shape index: {}]   ;;  %s6472_s2 = inlined_call_operand.hbm [shape: f32[384,2304], index: 2, kind: input, shape index: {}]   ;;  %s6473_s3 = inlined_call_operand.vmem [shape: f32[384,49], index: 3, kind: output, shape index: {}]  }
   0x1   :  { %9 = vsyncpa [#allocation5], 0 }
   0x2   :  { %11 = vsyncpa [#allocation5 + $0x1], 0  ;;  %s4231_s12 = smov 0   ;;  %s4233_s13 = smov 0  }
   0x3   :  { %s4235_s14 = smov 0   ;;  %s4237_s15 = smov 0  }
   0x4 LB: > { %s3224_s16 = sadd.s32 4294967295, %s4204_s15   ;;  %s4251_s17 = sadd.s32 1, %s4204_s15   ;;  %s4204_s15 = sphi %s4237_s15, %s6492_s15   ;;  %s4200_s14 = sphi %s4235_s14, %s6491_s14   ;;  %s4196_s13 = sphi %s4233_s13, %s6490_s13   ;;  %s4192_s12 = sphi %s4231_s12, %s6489_s12  }
   0x5   : > { %s63_s18 = ssub.s32 %s4204_s15, %s4251_s17  ;;  %s66_s19 = sadd.s32 1, %s4200_s14 }
   0x6   : > { %p64_p0 = scmp.eq.s32.totalorder %s63_s18, 0  ;;  %p73_p1 = scmp.ne.s32.totalorder %s4200_s14, %s4196_s13 }
   0x7   : > { %p74_p2 = scmp.eq.s32.totalorder %s4204_s15, 0  ;;  %p79_p3 = scmp.ne.s32.totalorder %s4196_s13, %s4192_s12 }
   0x8   : > { %s4261_s20 = scalar_select %p64_p0, %s4200_s14, %s66_s19  }
   0x9   : > { %p4263_p4 = por %p74_p2, %p73_p1  ;;  %p4269_p5 = scmp.eq.s32.totalorder %s3224_s16, 0 }
   0xa   : > { %p3226_p6 = scmp.ge.s32.totalorder %s4204_s15, 1  ;;  %p116_p7 = scmp.lt.s32.totalorder %s4204_s15, 3 }
   0xb   : > { %s6480_s22 = scalar_select %p4269_p5, 1, 0 }
   0xc   : > { %p4277_p8 = por %p4269_p5, %p79_p3  ;;  %p4281_p9 = pnand %p3226_p6, %p116_p7 }
   0xd   : > { %s4206_s25 = smov [#allocation2]   ;;  %p4065_p11 = scmp.lt.s32.totalorder %s4204_s15, 2 }
   0xe   : > { %s6481_s23 = scalar_select %p4277_p8, 1, 0 }
   0xf   : > { %s6482_s24 = scalar_select %p4281_p9, 1, 0 }
  0x10   : > { %s129_s26 = sshll.u32 %s4206_s25, 4  ;;  %p4056_p10 = pneg %p4281_p9  ;;  %s130_s26 = int_to_ptr.vmem [resolvable:$true] %s129_s26 }
  0x11   : > { %s143_s28 = sand.u32 1, %s4200_s14   ;;  %p4297_p13 = pnand %p4065_p11, %p4263_p4 }
  0x12   : > { %p4290_p12 = pnand %p4056_p10, %p4269_p5  ;;  %s4047_s30 = smul.u32 3456, %s143_s28 }
  0x13   : > { %s6484_s29 = scalar_select %p4297_p13, 1, 0 }
  0x14   : > { %s4108_s6 = scalar_lea.hbm %s6470_s0, 288  ;;  %p4110_p1 = pneg %p4290_p12 }
  0x15   : > { %p4109_p0 = scmp.ne.s32.totalorder %s6470_s0, %s4108_s6  ;;  %p4115_p4 = scmp.lt.u32.totalorder %s4108_s6, %s6470_s0 }
  0x17   : > { %p4111_p2 = pnand %p4110_p1, %p4109_p0 }
  0x19   : > { %p4112_p3 = pneg %p4111_p2 }
  0x1b   : > { %p4117_p6 = pnand %p4115_p4, %p4112_p3 }
  0x1d   : > { %4120 = shalt.err (!%p4117_p6)
}
  0x1e   : > { %s4121_s11 = scalar_lea.vmem %s130_s26, 288  ;;  %p4129_p8 = scmp.lt.s32.totalorder %s130_s26, %s130_s26 }
  0x1f   : > { %p4122_p7 = scmp.ne.s32.totalorder %s130_s26, %s4121_s11  ;;  %p4130_p5 = scmp.lt.s32.totalorder %s4121_s11, %s4121_s11 }
  0x21   : > { %p4124_p10 = pnand %p4122_p7, %p4110_p1  ;;  %p4131_p9 = por %p4130_p5, %p4129_p8 }
  0x23   : > { %p4125_p11 = pneg %p4124_p10 }
  0x25   : > { %p4132_p13 = pnand %p4131_p9, %p4125_p11 }
  0x27   : > { %4135 = shalt.err (!%p4132_p13)
}
  0x28   : > { %4059 = dma.hbm_to_vmem [thread:$0]  (!%p4290_p12), %s6470_s0, 288, %s130_s26, [#allocation3]  }
  0x29   : > { %s4066_s19 = smul.u32 55296, %s4204_s15  ;;  %s147_s21 = scalar_lea.vmem [#allocation4], %s4047_s30 }
  0x2a   : > { %s155_s25 = sshll.u32 %s147_s21, 4  ;;  %s4325_s27 = scalar_lea.sflag [#allocation5], %s143_s28  ;;  %s4318_s25 = int_to_ptr.vmem [resolvable:$true] %s155_s25 }
  0x2b   : > { %s4323_s6 = scalar_lea.hbm %s6472_s2, %s4066_s19  ;;  %p6485_p8 = scmp.ne.s32.totalorder %s6484_s29, 0 }
  0x2c   : > { %s4136_s7 = scalar_lea.hbm %s4323_s6, 55296  ;;  %s4141_s8 = scalar_lea.hbm %s6472_s2, 110592 }
  0x2d   : > { %p4137_p5 = scmp.ne.s32.totalorder %s4323_s6, %s4136_s7  ;;  %p4138_p9 = pneg %p6485_p8 }
  0x2e   : > { %p4142_p0 = scmp.lt.u32.totalorder %s4323_s6, %s6472_s2  ;;  %p4143_p1 = scmp.lt.u32.totalorder %s4141_s8, %s4136_s7 }
  0x2f   : > { %p4139_p12 = pnand %p4138_p9, %p4137_p5  ;;  %p4145_p3 = scmp.lt.u32.totalorder %s4136_s7, %s4323_s6 }
  0x30   : > { %p4144_p2 = por %p4143_p1, %p4142_p0 }
  0x31   : > { %p4140_p13 = pneg %p4139_p12 }
  0x32   : > { %p4146_p4 = por %p4145_p3, %p4144_p2 }
  0x34   : > { %p4147_p6 = pnand %p4146_p4, %p4140_p13 }
  0x36   : > { %4150 = shalt.err (!%p4147_p6)
}
  0x37   : > { %s4151_s28 = scalar_lea.vmem %s4318_s25, 55296  ;;  %s4207_s11 = smov [#allocation4]  }
  0x38   : > { %p4152_p7 = scmp.ne.s32.totalorder %s4318_s25, %s4151_s28  ;;  %s4156_s12 = sshll.u32 %s4207_s11, 4  ;;  %s4157_s12 = int_to_ptr.vmem [resolvable:$false] %s4156_s12 }
  0x39   : > { %s4158_s18 = scalar_lea.vmem %s4157_s12, 110592  ;;  %p4159_p5 = scmp.lt.s32.totalorder %s4318_s25, %s4157_s12 }
  0x3a   : > { %p4154_p10 = pnand %p4152_p7, %p4138_p9  ;;  %p4160_p12 = scmp.lt.s32.totalorder %s4158_s18, %s4151_s28 }
  0x3c   : > { %p4155_p11 = pneg %p4154_p10  ;;  %p4161_p0 = por %p4160_p12, %p4159_p5 }
  0x3e   : > { %p4162_p1 = pnand %p4161_p0, %p4155_p11 }
  0x40   : > { %4165 = shalt.err (!%p4162_p1)
}
  0x41   : > { %s4208_s19 = smov 2304   ;;  %s4209_s21 = smov 144  }
  0x42   : > { %4063 = dma.hbm_to_vmem [thread:$0]  (!%p6485_p8), %s4323_s6, 55296, %s4318_s25, %s4325_s27, %s4208_s19, %s4208_s19, %s4209_s21  }
  0x43   : > { %p6486_p9 = scmp.ne.s32.totalorder %s6482_s24, 0 }
  0x44   : > { %p6487_p13 = scmp.ne.s32.totalorder (!%p6486_p9), %s6480_s22, 0 }
  0x45   : > { %167 = sbr.rel (%p6486_p9) target bundleno = 792 (0x318), region = 32 }
  0x4c   : > { %4183 = dma.done.wait (%p6487_p13), [#allocation3], 288  }
  0x4d   : > { %4185 = vsyncadd (%p6487_p13), [#allocation3], 4294967008  ;;  %s173_s4 = sand.u32 1, %s4196_s13   ;;  %p6488_p2 = scmp.ne.s32.totalorder %s6481_s23, 0 }
  0x4e   : > { %s4049_s5 = smul.u32 3456, %s173_s4  ;;  %s174_s7 = scalar_lea.sflag [#allocation5], %s173_s4 }
  0x50   : > { %s4360_s26 = scalar_lea.vmem [#allocation4], %s4049_s5 }
  0x51   : > { %4187 = dma.done.wait (%p6488_p2), %s174_s7, 55296  }
  0x52   : > { %4189 = vsyncadd (%p6488_p2), %s174_s7, 4294912000  ;;  %v4210_v0 = vmov 0.0|0.0   ;;  %v1167_v1 = vld [vmem:[%s6471_s1] sm:$0xff]  ;;  %v1168_v2 = vld [vmem:[%s6471_s1 + $0x8] sm:$0xff]  ;;  %v645_v23 = vlaneseq  ;;  %vm3120_vm0 = vcmask 400384  }
  0x53   : > { %3235 = vmatprep.subr.bf16.mxu1 %v4210_v0  ;;  %3427 = vmatprep.subr.bf16.mxu0 %v4210_v0  ;;  %v1295_v3 = vld [vmem:[%s6471_s1 + $0x400] sm:$0xff]  ;;  %v3236_v4 = vpack.c.bf16 %v1168_v2, %v1167_v1  ;;  %v1296_v5 = vld [vmem:[%s6471_s1 + $0x408] sm:$0xff]  ;;  %v1169_v6 = vld [vmem:[%s6471_s1 + $0x10] sm:$0xff] }
  0x54   : > { %v1170_v7 = vld [vmem:[%s6471_s1 + $0x18] sm:$0xff]  ;;  %v3428_v8 = vpack.c.bf16 %v1296_v5, %v1295_v3  ;;  %v1297_v9 = vld [vmem:[%s6471_s1 + $0x410] sm:$0xff]  ;;  %v1171_v13 = vld [vmem:[%s6471_s1 + $0x20] sm:$0xff]  ;;  %v4434_v30 = vshrl.u32 %v645_v23, 7 }
  0x55   : > { %v1298_v10 = vld [vmem:[%s6471_s1 + $0x418] sm:$0xff]  ;;  %3237 = vmatpush1.bf16.msra.mxu1 %v3236_v4  ;;  %v3239_v11 = vpack.c.bf16 %v1170_v7, %v1169_v6  ;;  %v1172_v14 = vld [vmem:[%s6471_s1 + $0x28] sm:$0xff]  ;;  %v1299_v15 = vld [vmem:[%s6471_s1 + $0x420] sm:$0xff] }
  0x56   : > { %3429 = vmatpush1.bf16.msra.mxu0 %v3428_v8  ;;  %3238 = vmatprep.subr.bf16.mxu1 %v4210_v0  ;;  %v3431_v12 = vpack.c.bf16 %v1298_v10, %v1297_v9  ;;  %v1300_v16 = vld [vmem:[%s6471_s1 + $0x428] sm:$0xff]  ;;  %v3242_v17 = vpack.c.bf16 %v1172_v14, %v1171_v13  ;;  %v1173_v19 = vld [vmem:[%s6471_s1 + $0x30] sm:$0xff]  ;;  %v1174_v20 = vld [vmem:[%s6471_s1 + $0x38] sm:$0xff]  ;;  %v4451_v37 = vsub.s32 1, %v4434_v30 }
  0x57   : > { %3430 = vmatprep.subr.bf16.mxu0 %v4210_v0  ;;  %v3434_v18 = vpack.c.bf16 %v1300_v16, %v1299_v15  ;;  %v1301_v21 = vld [vmem:[%s6471_s1 + $0x430] sm:$0xff]  ;;  %v1302_v22 = vld [vmem:[%s6471_s1 + $0x438] sm:$0xff]  ;;  %v3245_v24 = vpack.c.bf16 %v1174_v20, %v1173_v19  ;;  %v1175_v26 = vld [vmem:[%s6471_s1 + $0x40] sm:$0xff] }
  0x58   : > { %v3437_v25 = vpack.c.bf16 %v1302_v22, %v1301_v21  ;;  %v1176_v27 = vld [vmem:[%s6471_s1 + $0x48] sm:$0xff]  ;;  %v1303_v28 = vld [vmem:[%s6471_s1 + $0x440] sm:$0xff]  ;;  %v1177_v33 = vld [vmem:[%s6471_s1 + $0x50] sm:$0xff] }
  0x59   : > { %3240 = vmatpush1.bf16.msra.mxu1 %v3239_v11  ;;  %v1304_v29 = vld [vmem:[%s6471_s1 + $0x448] sm:$0xff]  ;;  %v3248_v31 = vpack.c.bf16 %v1176_v27, %v1175_v26  ;;  %v1178_v34 = vld [vmem:[%s6471_s1 + $0x58] sm:$0xff]  ;;  %v1305_v35 = vld [vmem:[%s6471_s1 + $0x450] sm:$0xff] }
  0x5a   : > { %3432 = vmatpush1.bf16.msra.mxu0 %v3431_v12  ;;  %3241 = vmatprep.subr.bf16.mxu1 %v4210_v0  ;;  %v3440_v32 = vpack.c.bf16 %v1304_v29, %v1303_v28  ;;  %v1306_v36 = vld [vmem:[%s6471_s1 + $0x458] sm:$0xff]  ;;  %v3251_v38 = vpack.c.bf16 %v1178_v34, %v1177_v33  ;;  %v1179_v40 = vld [vmem:[%s6471_s1 + $0x60] sm:$0xff]  ;;  %v1180_v41 = vld [vmem:[%s6471_s1 + $0x68] sm:$0xff] }
  0x5b   : > { %3433 = vmatprep.subr.bf16.mxu0 %v4210_v0  ;;  %v3443_v39 = vpack.c.bf16 %v1306_v36, %v1305_v35  ;;  %v1307_v42 = vld [vmem:[%s6471_s1 + $0x460] sm:$0xff]  ;;  %v1308_v43 = vld [vmem:[%s6471_s1 + $0x468] sm:$0xff]  ;;  %v3254_v49 = vpack.c.bf16 %v1180_v41, %v1179_v40  ;;  %v1181_v52 = vld [vmem:[%s6471_s1 + $0x70] sm:$0xff] }
  0x5c   : > { %v208_v44 = vld [vmem:[%s4360_s26 + $0x8] sm:$0xff]  ;;  %v4475_v48 = vld [vmem:[#allocation2 + $0x8] sm:$0xff]  ;;  %v3446_v51 = vpack.c.bf16 %v1308_v43, %v1307_v42  ;;  %v1309_v55 = vld [vmem:[%s6471_s1 + $0x470] sm:$0xff] }
  0x5d   : > { %3243 = vmatpush1.bf16.msra.mxu1 %v3242_v17  ;;  %v4468_v45 = vld [vmem:[#allocation2] sm:$0xff]  ;;  %v4479_v50 = vrot.slane %v4475_v48, %v4451_v37  ;;  %v1182_v53 = vld [vmem:[%s6471_s1 + $0x78] sm:$0xff]  ;;  %v1184_v61 = vld [vmem:[%s6471_s1 + $0x88] sm:$0xff] }
  0x5e   : > { %3435 = vmatpush1.bf16.msra.mxu0 %v3434_v18  ;;  %3244 = vmatprep.subr.bf16.mxu1 %v4210_v0  ;;  %v4472_v46 = vrot.slane %v4468_v45, %v4451_v37  ;;  %v216_v47 = vld [vmem:[%s4360_s26 + $0x48] sm:$0xff]  ;;  %v3257_v58 = vpack.c.bf16 %v1182_v53, %v1181_v52  ;;  %v1312_v63 = vld [vmem:[%s6471_s1 + $0x488] sm:$0xff]  ;;  %v1185_v3 = vld [vmem:[%s6471_s1 + $0x90] sm:$0xff] }
  0x5f   : > { %3436 = vmatprep.subr.bf16.mxu0 %v4210_v0  ;;  %v1310_v56 = vld [vmem:[%s6471_s1 + $0x478] sm:$0xff]  ;;  %v744_v57 = vmul.f32 %v4479_v50, %v216_v47  ;;  %v1183_v60 = vld [vmem:[%s6471_s1 + $0x80] sm:$0xff]  ;;  %v1313_v5 = vld [vmem:[%s6471_s1 + $0x490] sm:$0xff] }
  0x60   : > { %v736_v54 = vmul.f32 %v4472_v46, %v208_v44  ;;  %v3449_v59 = vpack.c.bf16 %v1310_v56, %v1309_v55  ;;  %v1311_v62 = vld [vmem:[%s6471_s1 + $0x480] sm:$0xff]  ;;  %v3260_v1 = vpack.c.bf16 %v1184_v61, %v1183_v60  ;;  %v1186_v4 = vld [vmem:[%s6471_s1 + $0x98] sm:$0xff]  ;;  %v1188_v10 = vld [vmem:[%s6471_s1 + $0xa8] sm:$0xff] }
  0x61   : > { %3246 = vmatpush1.bf16.msra.mxu1 %v3245_v24  ;;  %2259 = vmatprep.mubr.f32.mxu0 %v744_v57  ;;  %v3452_v2 = vpack.c.bf16 %v1312_v63, %v1311_v62  ;;  %v1314_v6 = vld [vmem:[%s6471_s1 + $0x498] sm:$0xff]  ;;  %v3263_v7 = vpack.c.bf16 %v1186_v4, %v1185_v3  ;;  %v1187_v9 = vld [vmem:[%s6471_s1 + $0xa0] sm:$0xff]  ;;  %v1316_v12 = vld [vmem:[%s6471_s1 + $0x4a8] sm:$0xff] }
  0x62   : > { %3438 = vmatpush1.bf16.msra.mxu0 %v3437_v25  ;;  %3247 = vmatprep.subr.bf16.mxu1 %v4210_v0  ;;  %v3455_v8 = vpack.c.bf16 %v1314_v6, %v1313_v5  ;;  %v1315_v11 = vld [vmem:[%s6471_s1 + $0x4a0] sm:$0xff]  ;;  %v3266_v13 = vpack.c.bf16 %v1188_v10, %v1187_v9  ;;  %v1189_v15 = vld [vmem:[%s6471_s1 + $0xb0] sm:$0xff]  ;;  %v1190_v16 = vld [vmem:[%s6471_s1 + $0xb8] sm:$0xff] }
  0x63   : > { %3439 = vmatprep.subr.bf16.mxu0 %v4210_v0  ;;  %1519 = vmatprep.mubr.f32.mxu1 %v736_v54  ;;  %v3458_v14 = vpack.c.bf16 %v1316_v12, %v1315_v11  ;;  %v1317_v17 = vld [vmem:[%s6471_s1 + $0x4b0] sm:$0xff]  ;;  %v1318_v18 = vld [vmem:[%s6471_s1 + $0x4b8] sm:$0xff]  ;;  %v3269_v19 = vpack.c.bf16 %v1190_v16, %v1189_v15  ;;  %v1191_v21 = vld [vmem:[%s6471_s1 + $0xc0] sm:$0xff] }
  0x64   : > { %v3461_v20 = vpack.c.bf16 %v1318_v18, %v1317_v17  ;;  %v1192_v22 = vld [vmem:[%s6471_s1 + $0xc8] sm:$0xff]  ;;  %v1319_v23 = vld [vmem:[%s6471_s1 + $0x4c0] sm:$0xff]  ;;  %v1193_v27 = vld [vmem:[%s6471_s1 + $0xd0] sm:$0xff] }
  0x65   : > { %3249 = vmatpush1.bf16.msra.mxu1 %v3248_v31  ;;  %v1320_v24 = vld [vmem:[%s6471_s1 + $0x4c8] sm:$0xff]  ;;  %v3272_v25 = vpack.c.bf16 %v1192_v22, %v1191_v21  ;;  %v1194_v28 = vld [vmem:[%s6471_s1 + $0xd8] sm:$0xff]  ;;  %v1321_v29 = vld [vmem:[%s6471_s1 + $0x4d0] sm:$0xff] }
  0x66   : > { %3441 = vmatpush1.bf16.msra.mxu0 %v3440_v32  ;;  %3250 = vmatprep.subr.bf16.mxu1 %v4210_v0  ;;  %v3464_v26 = vpack.c.bf16 %v1320_v24, %v1319_v23  ;;  %v1322_v31 = vld [vmem:[%s6471_s1 + $0x4d8] sm:$0xff]  ;;  %v3275_v32 = vpack.c.bf16 %v1194_v28, %v1193_v27  ;;  %v1195_v34 = vld [vmem:[%s6471_s1 + $0xe0] sm:$0xff]  ;;  %v1196_v35 = vld [vmem:[%s6471_s1 + $0xe8] sm:$0xff] }
  0x67   : > { %3442 = vmatprep.subr.bf16.mxu0 %v4210_v0  ;;  %v3467_v33 = vpack.c.bf16 %v1322_v31, %v1321_v29  ;;  %v1323_v36 = vld [vmem:[%s6471_s1 + $0x4e0] sm:$0xff]  ;;  %v3278_v40 = vpack.c.bf16 %v1196_v35, %v1195_v34  ;;  %v1197_v42 = vld [vmem:[%s6471_s1 + $0xf0] sm:$0xff]  ;;  %v1198_v43 = vld [vmem:[%s6471_s1 + $0xf8] sm:$0xff] }
  0x68   : > { %v1325_v44 = vld [vmem:[%s6471_s1 + $0x4f0] sm:$0xff]  ;;  %v1326_v47 = vld [vmem:[%s6471_s1 + $0x4f8] sm:$0xff]  ;;  %v1199_v56 = vld [vmem:[%s6471_s1 + $0x100] sm:$0xff] }
  0x69   : > { %3252 = vmatpush1.bf16.msra.mxu1 %v3251_v38  ;;  %v1324_v38 = vld [vmem:[%s6471_s1 + $0x4e8] sm:$0xff]  ;;  %v207_v52 = vld [vmem:[%s4360_s26] sm:$0xff]  ;;  %v3473_v54 = vpack.c.bf16 %v1326_v47, %v1325_v44  ;;  %v244_v4 = vld [vmem:[%s4360_s26 + $0x128] sm:$0xff] }
  0x6a   : > { %3444 = vmatpush1.bf16.msra.mxu0 %v3443_v39  ;;  %3253 = vmatprep.subr.bf16.mxu1 %v4210_v0  ;;  %v4596_v39 = vsub.s32 0, %v4434_v30  ;;  %v3470_v41 = vpack.c.bf16 %v1324_v38, %v1323_v36  ;;  %v215_v55 = vld [vmem:[%s4360_s26 + $0x40] sm:$0xff]  ;;  %v1328_v57 = vld [vmem:[%s6471_s1 + $0x508] sm:$0xff]  ;;  %v1203_v21 = vld [vmem:[%s6471_s1 + $0x120] sm:$0xff] }
  0x6b   : > { %3445 = vmatprep.subr.bf16.mxu0 %v4210_v0  ;;  %v234_v60 = vld [vmem:[%s4360_s26 + $0xd8] sm:$0xff]  ;;  %v225_v63 = vld [vmem:[%s4360_s26 + $0x90] sm:$0xff]  ;;  %v1330_v11 = vld [vmem:[%s6471_s1 + $0x518] sm:$0xff] }
  0x6c   : > { %v4619_v53 = vrot.slane %v4475_v48, %v4596_v39  ;;  %v1327_v48 = vld [vmem:[%s6471_s1 + $0x500] sm:$0xff]  ;;  %v762_v5 = vmul.f32 %v4479_v50, %v234_v60  ;;  %v1201_v6 = vld [vmem:[%s6471_s1 + $0x110] sm:$0xff]  ;;  %v1204_v22 = vld [vmem:[%s6471_s1 + $0x128] sm:$0xff] }
  0x6d   : > { %3255 = vmatpush1.bf16.msra.mxu1 %v3254_v49  ;;  %v4614_v49 = vrot.slane %v4468_v45, %v4596_v39  ;;  %v1200_v45 = vld [vmem:[%s6471_s1 + $0x108] sm:$0xff]  ;;  %v1329_v10 = vld [vmem:[%s6471_s1 + $0x510] sm:$0xff]  ;;  %v1331_v24 = vld [vmem:[%s6471_s1 + $0x520] sm:$0xff] }
  0x6e   : > { %3447 = vmatpush1.bf16.msra.mxu0 %v3446_v51  ;;  %3256 = vmatprep.subr.bf16.mxu1 %v4210_v0  ;;  %v3281_v51 = vpack.c.bf16 %v1198_v43, %v1197_v42  ;;  %v743_v61 = vmul.f32 %v4619_v53, %v215_v55  ;;  %v3284_v62 = vpack.c.bf16 %v1200_v45, %v1199_v56  ;;  %v233_v3 = vld [vmem:[%s4360_s26 + $0xd0] sm:$0xff]  ;;  %v251_v17 = vld [vmem:[%s4360_s26 + $0x160] sm:$0xff]  ;;  %v262_v18 = vld [vmem:[%s4360_s26 + $0x1b8] sm:$0xff] }
  0x6f   : > { %3448 = vmatprep.subr.bf16.mxu0 %v4210_v0  ;;  %v753_v9 = vmul.f32 %v4614_v49, %v225_v63  ;;  %v761_v12 = vmul.f32 %v4619_v53, %v233_v3  ;;  %v790_v27 = vmul.f32 %v4472_v46, %v262_v18  ;;  %v261_v28 = vld [vmem:[%s4360_s26 + $0x1b0] sm:$0xff]  ;;  %v288_v35 = vld [vmem:[%s4360_s26 + $0x288] sm:$0xff]  ;;  %v1205_v36 = vld [vmem:[%s6471_s1 + $0x130] sm:$0xff] }
  0x70   : > { %v269_v31 = vld [vmem:[%s4360_s26 + $0x1f0] sm:$0xff]  ;;  %v1206_v38 = vld [vmem:[%s6471_s1 + $0x138] sm:$0xff]  ;;  %v306_v56 = vld [vmem:[%s4360_s26 + $0x318] sm:$0xff] }
  0x71   : > { %3258 = vmatpush1.bf16.msra.mxu1 %v3257_v58  ;;  %v226_v58 = vld [vmem:[%s4360_s26 + $0x98] sm:$0xff]  ;;  %v1334_v42 = vld [vmem:[%s6471_s1 + $0x538] sm:$0xff]  ;;  %v797_v43 = vmul.f32 %v4619_v53, %v269_v31  ;;  %v3293_v55 = vpack.c.bf16 %v1206_v38, %v1205_v36  ;;  %v297_v63 = vld [vmem:[%s4360_s26 + $0x2d0] sm:$0xff] }
  0x72   : > { %3450 = vmatpush1.bf16.msra.mxu0 %v3449_v59  ;;  %3259 = vmatprep.subr.bf16.mxu1 %v4210_v0  ;;  %v735_v59 = vmul.f32 %v4614_v49, %v207_v52  ;;  %v279_v47 = vld [vmem:[%s4360_s26 + $0x240] sm:$0xff]  ;;  %v1336_v60 = vld [vmem:[%s6471_s1 + $0x548] sm:$0xff]  ;;  %v316_v3 = vld [vmem:[%s4360_s26 + $0x368] sm:$0xff] }
  0x73   : > { %3451 = vmatprep.subr.bf16.mxu0 %v4210_v0  ;;  %v287_v52 = vld [vmem:[%s4360_s26 + $0x280] sm:$0xff]  ;;  %v341_v31 = vld [vmem:[%s4360_s26 + $0x430] sm:$0xff] }
  0x74   : > { %v1213_v36 = vld [vmem:[%s6471_s1 + $0x170] sm:$0xff]  ;;  %v1214_v38 = vld [vmem:[%s6471_s1 + $0x178] sm:$0xff] }
  0x75   : > { %3261 = vmatpush1.bf16.msra.mxu1 %v3260_v1  ;;  %v3476_v1 = vpack.c.bf16 %v1328_v57, %v1327_v48  ;;  %v1207_v48 = vld [vmem:[%s6471_s1 + $0x140] sm:$0xff]  ;;  %v1208_v57 = vld [vmem:[%s6471_s1 + $0x148] sm:$0xff] }
  0x76   : > { %3453 = vmatpush1.bf16.msra.mxu0 %v3452_v2  ;;  %3262 = vmatprep.subr.bf16.mxu1 %v4210_v0  ;;  %v754_v2 = vmul.f32 %v4472_v46, %v226_v58  ;;  %v807_v58 = vmul.f32 %v4614_v49, %v279_v47  ;;  %v351_v47 = vld [vmem:[%s4360_s26 + $0x480] sm:$0xff] }
  0x77   : > { %3454 = vmatprep.subr.bf16.mxu0 %v4210_v0 }
  0x79   : > { %3264 = vmatpush1.bf16.msra.mxu1 %v3263_v7  ;;  %v1202_v7 = vld [vmem:[%s6471_s1 + $0x118] sm:$0xff] }
  0x7a   : > { %3456 = vmatpush1.bf16.msra.mxu0 %v3455_v8  ;;  %3265 = vmatprep.subr.bf16.mxu1 %v4210_v0  ;;  %v252_v8 = vld [vmem:[%s4360_s26 + $0x168] sm:$0xff]  ;;  %v3287_v15 = vpack.c.bf16 %v1202_v7, %v1201_v6  ;;  %v1209_v7 = vld [vmem:[%s6471_s1 + $0x150] sm:$0xff] }
  0x7b   : > { %3457 = vmatprep.subr.bf16.mxu0 %v4210_v0  ;;  %v780_v16 = vmul.f32 %v4479_v50, %v252_v8  ;;  %v1210_v8 = vld [vmem:[%s6471_s1 + $0x158] sm:$0xff] }
  0x7c   : > { %v3299_v18 = vpack.c.bf16 %v1210_v8, %v1209_v7  ;;  %v1217_v7 = vld [vmem:[%s6471_s1 + $0x190] sm:$0xff]  ;;  %v1218_v8 = vld [vmem:[%s6471_s1 + $0x198] sm:$0xff] }
  0x7d   : > { %3267 = vmatpush1.bf16.msra.mxu1 %v3266_v13  ;;  %v772_v13 = vmul.f32 %v4472_v46, %v244_v4  ;;  %v3296_v4 = vpack.c.bf16 %v1208_v57, %v1207_v48  ;;  %v1215_v48 = vld [vmem:[%s6471_s1 + $0x180] sm:$0xff]  ;;  %v1216_v57 = vld [vmem:[%s6471_s1 + $0x188] sm:$0xff] }
  0x7e   : > { %3459 = vmatpush1.bf16.msra.mxu0 %v3458_v14  ;;  %3268 = vmatprep.subr.bf16.mxu1 %v4210_v0  ;;  %v243_v14 = vld [vmem:[%s4360_s26 + $0x120] sm:$0xff] }
  0x7f   : > { %3460 = vmatprep.subr.bf16.mxu0 %v4210_v0  ;;  %v771_v23 = vmul.f32 %v4614_v49, %v243_v14  ;;  %v315_v14 = vld [vmem:[%s4360_s26 + $0x360] sm:$0xff] }
  0x81   : > { %3270 = vmatpush1.bf16.msra.mxu1 %v3269_v19  ;;  %v3479_v19 = vpack.c.bf16 %v1330_v11, %v1329_v10  ;;  %v1337_v10 = vld [vmem:[%s6471_s1 + $0x550] sm:$0xff]  ;;  %v1338_v11 = vld [vmem:[%s6471_s1 + $0x558] sm:$0xff] }
  0x82   : > { %3462 = vmatpush1.bf16.msra.mxu0 %v3461_v20  ;;  %3271 = vmatprep.subr.bf16.mxu1 %v4210_v0  ;;  %v270_v20 = vld [vmem:[%s4360_s26 + $0x1f8] sm:$0xff] }
  0x83   : > { %3463 = vmatprep.subr.bf16.mxu0 %v4210_v0  ;;  %v798_v29 = vmul.f32 %v4479_v50, %v270_v20  ;;  %v3491_v20 = vpack.c.bf16 %v1338_v11, %v1337_v10  ;;  %v1345_v10 = vld [vmem:[%s6471_s1 + $0x590] sm:$0xff]  ;;  %v1346_v11 = vld [vmem:[%s6471_s1 + $0x598] sm:$0xff] }
  0x85   : > { %3273 = vmatpush1.bf16.msra.mxu1 %v3272_v25  ;;  %v1332_v25 = vld [vmem:[%s6471_s1 + $0x528] sm:$0xff] }
  0x86   : > { %3465 = vmatpush1.bf16.msra.mxu0 %v3464_v26  ;;  %3274 = vmatprep.subr.bf16.mxu1 %v4210_v0  ;;  %v779_v26 = vmul.f32 %v4619_v53, %v251_v17  ;;  %v3482_v34 = vpack.c.bf16 %v1332_v25, %v1331_v24  ;;  %v334_v17 = vld [vmem:[%s4360_s26 + $0x3f8] sm:$0xff]  ;;  %v1339_v24 = vld [vmem:[%s6471_s1 + $0x560] sm:$0xff] }
  0x87   : > { %3466 = vmatprep.subr.bf16.mxu0 %v4210_v0  ;;  %v1340_v25 = vld [vmem:[%s6471_s1 + $0x568] sm:$0xff] }
  0x89   : > { %3276 = vmatpush1.bf16.msra.mxu1 %v3275_v32  ;;  %v3290_v32 = vpack.c.bf16 %v1204_v22, %v1203_v21  ;;  %v1211_v21 = vld [vmem:[%s6471_s1 + $0x160] sm:$0xff]  ;;  %v1212_v22 = vld [vmem:[%s6471_s1 + $0x168] sm:$0xff] }
  0x8a   : > { %3468 = vmatpush1.bf16.msra.mxu0 %v3467_v33  ;;  %3277 = vmatprep.subr.bf16.mxu1 %v4210_v0  ;;  %v280_v33 = vld [vmem:[%s4360_s26 + $0x248] sm:$0xff] }
  0x8b   : > { %3469 = vmatprep.subr.bf16.mxu0 %v4210_v0  ;;  %v808_v44 = vmul.f32 %v4472_v46, %v280_v33  ;;  %v3302_v33 = vpack.c.bf16 %v1212_v22, %v1211_v21  ;;  %v1219_v21 = vld [vmem:[%s6471_s1 + $0x1a0] sm:$0xff]  ;;  %v1220_v22 = vld [vmem:[%s6471_s1 + $0x1a8] sm:$0xff] }
  0x8d   : > { %3279 = vmatpush1.bf16.msra.mxu1 %v3278_v40  ;;  %v789_v40 = vmul.f32 %v4614_v49, %v261_v28  ;;  %v333_v28 = vld [vmem:[%s4360_s26 + $0x3f0] sm:$0xff] }
  0x8e   : > { %3471 = vmatpush1.bf16.msra.mxu0 %v3470_v41  ;;  %3280 = vmatprep.subr.bf16.mxu1 %v4210_v0  ;;  %v1333_v41 = vld [vmem:[%s6471_s1 + $0x530] sm:$0xff] }
  0x8f   : > { %3472 = vmatprep.subr.bf16.mxu0 %v4210_v0  ;;  %v3485_v45 = vpack.c.bf16 %v1334_v42, %v1333_v41  ;;  %v1341_v41 = vld [vmem:[%s6471_s1 + $0x570] sm:$0xff]  ;;  %v1342_v42 = vld [vmem:[%s6471_s1 + $0x578] sm:$0xff] }
  0x91   : > { %3282 = vmatpush1.bf16.msra.mxu1 %v3281_v51  ;;  %v816_v51 = vmul.f32 %v4479_v50, %v288_v35  ;;  %v3494_v35 = vpack.c.bf16 %v1340_v25, %v1339_v24  ;;  %v1347_v24 = vld [vmem:[%s6471_s1 + $0x5a0] sm:$0xff]  ;;  %v1348_v25 = vld [vmem:[%s6471_s1 + $0x5a8] sm:$0xff] }
  0x92   : > { %3474 = vmatpush1.bf16.msra.mxu0 %v3473_v54  ;;  %3283 = vmatprep.subr.bf16.mxu1 %v4210_v0  ;;  %v298_v54 = vld [vmem:[%s4360_s26 + $0x2d8] sm:$0xff] }
  0x93   : > { %3475 = vmatprep.subr.bf16.mxu0 %v4210_v0 }
  0x94   : > { %1520 = vmatmul.mubr.f32.vlgmr.msra.gmra.mrb[0].mxu1 %v735_v59  ;;  %v1335_v59 = vld [vmem:[%s6471_s1 + $0x540] sm:$0xff] }
  0x95   : > { %2260 = vmatmul.mubr.f32.vlgmr.msra.gmra.mrb[0].mxu0 %v743_v61  ;;  %3285 = vmatpush1.bf16.msra.mxu1 %v3284_v62  ;;  %v815_v61 = vmul.f32 %v4619_v53, %v287_v52  ;;  %v826_v62 = vmul.f32 %v4472_v46, %v298_v54  ;;  %v3488_v6 = vpack.c.bf16 %v1336_v60, %v1335_v59  ;;  %v359_v52 = vld [vmem:[%s4360_s26 + $0x4c0] sm:$0xff]  ;;  %v370_v54 = vld [vmem:[%s4360_s26 + $0x518] sm:$0xff]  ;;  %v1343_v59 = vld [vmem:[%s6471_s1 + $0x580] sm:$0xff] }
  0x96   : > { %3477 = vmatpush1.bf16.msra.mxu0 %v3476_v1  ;;  %1524 = vmatprep.mubr.f32.mxu1 %v754_v2  ;;  %v834_v1 = vmul.f32 %v4479_v50, %v306_v56  ;;  %v305_v2 = vld [vmem:[%s4360_s26 + $0x310] sm:$0xff]  ;;  %v378_v56 = vld [vmem:[%s4360_s26 + $0x558] sm:$0xff] }
  0x97   : > { %2264 = vmatprep.mubr.f32.mxu0 %v762_v5  ;;  %3286 = vmatprep.subr.bf16.mxu1 %v4210_v0  ;;  %v324_v5 = vld [vmem:[%s4360_s26 + $0x3a8] sm:$0xff]  ;;  %v1344_v60 = vld [vmem:[%s6471_s1 + $0x588] sm:$0xff] }
  0x98   : > { %1525 = vmatmul.mubr.f32.gmra.mrb[2].mxu1 %v753_v9  ;;  %3478 = vmatprep.subr.bf16.mxu0 %v4210_v0  ;;  %v825_v9 = vmul.f32 %v4614_v49, %v297_v63  ;;  %v369_v63 = vld [vmem:[%s4360_s26 + $0x510] sm:$0xff] }
  0x99   : > { %2265 = vmatmul.mubr.f32.gmra.mrb[2].mxu0 %v761_v12  ;;  %1529 = vmatprep.mubr.f32.mxu1 %v772_v13  ;;  %v833_v12 = vmul.f32 %v4619_v53, %v305_v2  ;;  %v844_v13 = vmul.f32 %v4472_v46, %v316_v3  ;;  %v377_v2 = vld [vmem:[%s4360_s26 + $0x550] sm:$0xff]  ;;  %v388_v3 = vld [vmem:[%s4360_s26 + $0x5a8] sm:$0xff] }
  0x9a   : > { %3288 = vmatpush1.bf16.msra.mxu1 %v3287_v15  ;;  %2269 = vmatprep.mubr.f32.mxu0 %v780_v16  ;;  %v852_v15 = vmul.f32 %v4479_v50, %v324_v5  ;;  %v323_v16 = vld [vmem:[%s4360_s26 + $0x3a0] sm:$0xff]  ;;  %v396_v5 = vld [vmem:[%s4360_s26 + $0x5e8] sm:$0xff] }
  0x9b   : > { %3480 = vmatpush1.bf16.msra.mxu0 %v3479_v19  ;;  %3289 = vmatprep.subr.bf16.mxu1 %v4210_v0  ;;  %v342_v19 = vld [vmem:[%s4360_s26 + $0x438] sm:$0xff] }
  0x9c   : > { %1530 = vmatmul.mubr.f32.gmra.mrb[4].mxu1 %v771_v23  ;;  %3481 = vmatprep.subr.bf16.mxu0 %v4210_v0  ;;  %v843_v23 = vmul.f32 %v4614_v49, %v315_v14  ;;  %v387_v14 = vld [vmem:[%s4360_s26 + $0x5a0] sm:$0xff] }
  0x9d   : > { %2270 = vmatmul.mubr.f32.gmra.mrb[4].mxu0 %v779_v26  ;;  %1534 = vmatprep.mubr.f32.mxu1 %v790_v27  ;;  %v851_v26 = vmul.f32 %v4619_v53, %v323_v16  ;;  %v862_v27 = vmul.f32 %v4472_v46, %v334_v17  ;;  %v395_v16 = vld [vmem:[%s4360_s26 + $0x5e0] sm:$0xff]  ;;  %v406_v17 = vld [vmem:[%s4360_s26 + $0x638] sm:$0xff] }
  0x9e   : > { %2274 = vmatprep.mubr.f32.mxu0 %v798_v29  ;;  %3291 = vmatpush1.bf16.msra.mxu1 %v3290_v32  ;;  %v870_v29 = vmul.f32 %v4479_v50, %v342_v19  ;;  %v352_v32 = vld [vmem:[%s4360_s26 + $0x488] sm:$0xff]  ;;  %v414_v19 = vld [vmem:[%s4360_s26 + $0x678] sm:$0xff] }
  0x9f   : > { %3483 = vmatpush1.bf16.msra.mxu0 %v3482_v34  ;;  %3292 = vmatprep.subr.bf16.mxu1 %v4210_v0  ;;  %v360_v34 = vld [vmem:[%s4360_s26 + $0x4c8] sm:$0xff] }
  0xa0   : > { %1535 = vmatmul.mubr.f32.gmra.mrb[6].mxu1 %v789_v40  ;;  %3484 = vmatprep.subr.bf16.mxu0 %v4210_v0  ;;  %v861_v40 = vmul.f32 %v4614_v49, %v333_v28  ;;  %v405_v28 = vld [vmem:[%s4360_s26 + $0x630] sm:$0xff] }
  0xa1   : > { %2275 = vmatmul.mubr.f32.gmra.mrb[6].mxu0 %v797_v43  ;;  %1539 = vmatprep.mubr.f32.mxu1 %v808_v44  ;;  %v869_v43 = vmul.f32 %v4619_v53, %v341_v31  ;;  %v880_v44 = vmul.f32 %v4472_v46, %v352_v32  ;;  %v413_v31 = vld [vmem:[%s4360_s26 + $0x670] sm:$0xff]  ;;  %v424_v32 = vld [vmem:[%s4360_s26 + $0x6c8] sm:$0xff] }
  0xa2   : > { %2279 = vmatprep.mubr.f32.mxu0 %v816_v51  ;;  %3294 = vmatpush1.bf16.msra.mxu1 %v3293_v55  ;;  %v888_v51 = vmul.f32 %v4479_v50, %v360_v34  ;;  %v3305_v55 = vpack.c.bf16 %v1214_v38, %v1213_v36  ;;  %v432_v34 = vld [vmem:[%s4360_s26 + $0x708] sm:$0xff]  ;;  %v1221_v36 = vld [vmem:[%s6471_s1 + $0x1b0] sm:$0xff] }
  0xa3   : > { %3486 = vmatpush1.bf16.msra.mxu0 %v3485_v45  ;;  %3295 = vmatprep.subr.bf16.mxu1 %v4210_v0  ;;  %v3497_v45 = vpack.c.bf16 %v1342_v42, %v1341_v41  ;;  %v1222_v38 = vld [vmem:[%s6471_s1 + $0x1b8] sm:$0xff]  ;;  %v1349_v41 = vld [vmem:[%s6471_s1 + $0x5b0] sm:$0xff] }
  0xa4   : > { %1540 = vmatmul.mubr.f32.gmra.mrb[8].mxu1 %v807_v58  ;;  %3487 = vmatprep.subr.bf16.mxu0 %v4210_v0  ;;  %v879_v58 = vmul.f32 %v4614_v49, %v351_v47  ;;  %v1350_v42 = vld [vmem:[%s6471_s1 + $0x5b8] sm:$0xff] }
  0xa5   : > { %2280 = vmatmul.mubr.f32.gmra.mrb[8].mxu0 %v815_v61  ;;  %1544 = vmatprep.mubr.f32.mxu1 %v826_v62  ;;  %v887_v61 = vmul.f32 %v4619_v53, %v359_v52  ;;  %v898_v62 = vmul.f32 %v4472_v46, %v370_v54  ;;  %v423_v47 = vld [vmem:[%s4360_s26 + $0x6c0] sm:$0xff]  ;;  %v442_v54 = vld [vmem:[%s4360_s26 + $0x758] sm:$0xff] }
  0xa6   : > { %2284 = vmatprep.mubr.f32.mxu0 %v834_v1  ;;  %3297 = vmatpush1.bf16.msra.mxu1 %v3296_v4  ;;  %v906_v1 = vmul.f32 %v4479_v50, %v378_v56  ;;  %v3308_v4 = vpack.c.bf16 %v1216_v57, %v1215_v48  ;;  %v431_v52 = vld [vmem:[%s4360_s26 + $0x700] sm:$0xff]  ;;  %v450_v56 = vld [vmem:[%s4360_s26 + $0x798] sm:$0xff]  ;;  %v1223_v48 = vld [vmem:[%s6471_s1 + $0x1c0] sm:$0xff] }
  0xa7   : > { %3489 = vmatpush1.bf16.msra.mxu0 %v3488_v6  ;;  %3298 = vmatprep.subr.bf16.mxu1 %v4210_v0  ;;  %v3500_v6 = vpack.c.bf16 %v1344_v60, %v1343_v59  ;;  %v1224_v57 = vld [vmem:[%s6471_s1 + $0x1c8] sm:$0xff]  ;;  %v1351_v59 = vld [vmem:[%s6471_s1 + $0x5c0] sm:$0xff] }
  0xa8   : > { %1545 = vmatmul.mubr.f32.gmra.mrb[10].mxu1 %v825_v9  ;;  %3490 = vmatprep.subr.bf16.mxu0 %v4210_v0  ;;  %v897_v9 = vmul.f32 %v4614_v49, %v369_v63  ;;  %v1352_v60 = vld [vmem:[%s6471_s1 + $0x5c8] sm:$0xff] }
  0xa9   : > { %2285 = vmatmul.mubr.f32.gmra.mrb[10].mxu0 %v833_v12  ;;  %1549 = vmatprep.mubr.f32.mxu1 %v844_v13  ;;  %v905_v12 = vmul.f32 %v4619_v53, %v377_v2  ;;  %v916_v13 = vmul.f32 %v4472_v46, %v388_v3  ;;  %v441_v63 = vld [vmem:[%s4360_s26 + $0x750] sm:$0xff]  ;;  %v460_v3 = vld [vmem:[%s4360_s26 + $0x7e8] sm:$0xff] }
  0xaa   : > { %2289 = vmatprep.mubr.f32.mxu0 %v852_v15  ;;  %3300 = vmatpush1.bf16.msra.mxu1 %v3299_v18  ;;  %v924_v15 = vmul.f32 %v4479_v50, %v396_v5  ;;  %v3311_v18 = vpack.c.bf16 %v1218_v8, %v1217_v7  ;;  %v449_v2 = vld [vmem:[%s4360_s26 + $0x790] sm:$0xff]  ;;  %v468_v5 = vld [vmem:[%s4360_s26 + $0x828] sm:$0xff]  ;;  %v1225_v7 = vld [vmem:[%s6471_s1 + $0x1d0] sm:$0xff] }
  0xab   : > { %3492 = vmatpush1.bf16.msra.mxu0 %v3491_v20  ;;  %3301 = vmatprep.subr.bf16.mxu1 %v4210_v0  ;;  %v3503_v20 = vpack.c.bf16 %v1346_v11, %v1345_v10  ;;  %v1226_v8 = vld [vmem:[%s6471_s1 + $0x1d8] sm:$0xff]  ;;  %v1353_v10 = vld [vmem:[%s6471_s1 + $0x5d0] sm:$0xff] }
  0xac   : > { %1550 = vmatmul.mubr.f32.gmra.mrb[12].mxu1 %v843_v23  ;;  %3493 = vmatprep.subr.bf16.mxu0 %v4210_v0  ;;  %v915_v23 = vmul.f32 %v4614_v49, %v387_v14  ;;  %v1354_v11 = vld [vmem:[%s6471_s1 + $0x5d8] sm:$0xff] }
  0xad   : > { %2290 = vmatmul.mubr.f32.gmra.mrb[12].mxu0 %v851_v26  ;;  %1554 = vmatprep.mubr.f32.mxu1 %v862_v27  ;;  %v923_v26 = vmul.f32 %v4619_v53, %v395_v16  ;;  %v934_v27 = vmul.f32 %v4472_v46, %v406_v17  ;;  %v459_v14 = vld [vmem:[%s4360_s26 + $0x7e0] sm:$0xff]  ;;  %v478_v17 = vld [vmem:[%s4360_s26 + $0x878] sm:$0xff] }
  0xae   : > { %2294 = vmatprep.mubr.f32.mxu0 %v870_v29  ;;  %3303 = vmatpush1.bf16.msra.mxu1 %v3302_v33  ;;  %v942_v29 = vmul.f32 %v4479_v50, %v414_v19  ;;  %v3314_v33 = vpack.c.bf16 %v1220_v22, %v1219_v21  ;;  %v467_v16 = vld [vmem:[%s4360_s26 + $0x820] sm:$0xff]  ;;  %v486_v19 = vld [vmem:[%s4360_s26 + $0x8b8] sm:$0xff]  ;;  %v1227_v21 = vld [vmem:[%s6471_s1 + $0x1e0] sm:$0xff] }
  0xaf   : > { %3495 = vmatpush1.bf16.msra.mxu0 %v3494_v35  ;;  %3304 = vmatprep.subr.bf16.mxu1 %v4210_v0  ;;  %v3506_v35 = vpack.c.bf16 %v1348_v25, %v1347_v24  ;;  %v1228_v22 = vld [vmem:[%s6471_s1 + $0x1e8] sm:$0xff]  ;;  %v1355_v24 = vld [vmem:[%s6471_s1 + $0x5e0] sm:$0xff] }
  0xb0   : > { %1555 = vmatmul.mubr.f32.gmra.mrb[14].mxu1 %v861_v40  ;;  %3496 = vmatprep.subr.bf16.mxu0 %v4210_v0  ;;  %v933_v40 = vmul.f32 %v4614_v49, %v405_v28  ;;  %v1356_v25 = vld [vmem:[%s6471_s1 + $0x5e8] sm:$0xff] }
  0xb1   : > { %2295 = vmatmul.mubr.f32.gmra.mrb[14].mxu0 %v869_v43  ;;  %1559 = vmatprep.mubr.f32.mxu1 %v880_v44  ;;  %v941_v43 = vmul.f32 %v4619_v53, %v413_v31  ;;  %v952_v44 = vmul.f32 %v4472_v46, %v424_v32  ;;  %v477_v28 = vld [vmem:[%s4360_s26 + $0x870] sm:$0xff]  ;;  %v496_v32 = vld [vmem:[%s4360_s26 + $0x908] sm:$0xff] }
  0xb2   : > { %2299 = vmatprep.mubr.f32.mxu0 %v888_v51  ;;  %3306 = vmatpush1.bf16.msra.mxu1 %v3305_v55  ;;  %v960_v51 = vmul.f32 %v4479_v50, %v432_v34  ;;  %v3317_v55 = vpack.c.bf16 %v1222_v38, %v1221_v36  ;;  %v485_v31 = vld [vmem:[%s4360_s26 + $0x8b0] sm:$0xff]  ;;  %v504_v34 = vld [vmem:[%s4360_s26 + $0x948] sm:$0xff]  ;;  %v1229_v36 = vld [vmem:[%s6471_s1 + $0x1f0] sm:$0xff] }
  0xb3   : > { %3498 = vmatpush1.bf16.msra.mxu0 %v3497_v45  ;;  %3307 = vmatprep.subr.bf16.mxu1 %v4210_v0  ;;  %v3509_v45 = vpack.c.bf16 %v1350_v42, %v1349_v41  ;;  %v1230_v38 = vld [vmem:[%s6471_s1 + $0x1f8] sm:$0xff]  ;;  %v1357_v41 = vld [vmem:[%s6471_s1 + $0x5f0] sm:$0xff] }
  0xb4   : > { %1560 = vmatmul.mubr.f32.gmra.mrb[16].mxu1 %v879_v58  ;;  %3499 = vmatprep.subr.bf16.mxu0 %v4210_v0  ;;  %v951_v58 = vmul.f32 %v4614_v49, %v423_v47  ;;  %v1358_v42 = vld [vmem:[%s6471_s1 + $0x5f8] sm:$0xff] }
  0xb5   : > { %2300 = vmatmul.mubr.f32.gmra.mrb[16].mxu0 %v887_v61  ;;  %1564 = vmatprep.mubr.f32.mxu1 %v898_v62  ;;  %v959_v61 = vmul.f32 %v4619_v53, %v431_v52  ;;  %v970_v62 = vmul.f32 %v4472_v46, %v442_v54  ;;  %v495_v47 = vld [vmem:[%s4360_s26 + $0x900] sm:$0xff]  ;;  %v514_v54 = vld [vmem:[%s4360_s26 + $0x998] sm:$0xff] }
  0xb6   : > { %2304 = vmatprep.mubr.f32.mxu0 %v906_v1  ;;  %3309 = vmatpush1.bf16.msra.mxu1 %v3308_v4  ;;  %v978_v1 = vmul.f32 %v4479_v50, %v450_v56  ;;  %v3320_v4 = vpack.c.bf16 %v1224_v57, %v1223_v48  ;;  %v503_v52 = vld [vmem:[%s4360_s26 + $0x940] sm:$0xff]  ;;  %v522_v56 = vld [vmem:[%s4360_s26 + $0x9d8] sm:$0xff]  ;;  %v1023_v48 = vmul.f32 %v4614_v49, %v495_v47 }
  0xb7   : > { %3501 = vmatpush1.bf16.msra.mxu0 %v3500_v6  ;;  %3310 = vmatprep.subr.bf16.mxu1 %v4210_v0  ;;  %v3512_v6 = vpack.c.bf16 %v1352_v60, %v1351_v59  ;;  %v1031_v57 = vmul.f32 %v4619_v53, %v503_v52  ;;  %v513_v59 = vld [vmem:[%s4360_s26 + $0x990] sm:$0xff]  ;;  %v1050_v60 = vmul.f32 %v4479_v50, %v522_v56 }
  0xb8   : > { %1565 = vmatmul.mubr.f32.gmra.mrb[18].mxu1 %v897_v9  ;;  %3502 = vmatprep.subr.bf16.mxu0 %v4210_v0  ;;  %v969_v9 = vmul.f32 %v4614_v49, %v441_v63  ;;  %v540_v63 = vld [vmem:[%s4360_s26 + $0xa68] sm:$0xff] }
  0xb9   : > { %2305 = vmatmul.mubr.f32.gmra.mrb[18].mxu0 %v905_v12  ;;  %1569 = vmatprep.mubr.f32.mxu1 %v916_v13  ;;  %v977_v12 = vmul.f32 %v4619_v53, %v449_v2  ;;  %v988_v13 = vmul.f32 %v4472_v46, %v460_v3  ;;  %v5034_v56 = vld [vmem:[#allocation2] sm:$0xff] }
  0xba   : > { %2309 = vmatprep.mubr.f32.mxu0 %v924_v15  ;;  %3312 = vmatpush1.bf16.msra.mxu1 %v3311_v18  ;;  %v996_v15 = vmul.f32 %v4479_v50, %v468_v5  ;;  %v3323_v18 = vpack.c.bf16 %v1226_v8, %v1225_v7  ;;  %v1068_v5 = vmul.f32 %v4479_v50, %v540_v63  ;;  %v550_v7 = vld [vmem:[%s4360_s26 + $0xab8] sm:$0xff] }
  0xbb   : > { %3504 = vmatpush1.bf16.msra.mxu0 %v3503_v20  ;;  %3313 = vmatprep.subr.bf16.mxu1 %v4210_v0  ;;  %v3515_v20 = vpack.c.bf16 %v1354_v11, %v1353_v10  ;;  %v558_v8 = vld [vmem:[%s4360_s26 + $0xaf8] sm:$0xff]  ;;  %v1078_v11 = vmul.f32 %v4472_v46, %v550_v7  ;;  %v228_v7 = vld [vmem:[%s4360_s26 + $0xa8] sm:$0xff] }
  0xbc   : > { %1570 = vmatmul.mubr.f32.gmra.mrb[20].mxu1 %v915_v23  ;;  %3505 = vmatprep.subr.bf16.mxu0 %v4210_v0  ;;  %v987_v23 = vmul.f32 %v4614_v49, %v459_v14  ;;  %v557_v14 = vld [vmem:[%s4360_s26 + $0xaf0] sm:$0xff] }
  0xbd   : > { %2310 = vmatmul.mubr.f32.gmra.mrb[20].mxu0 %v923_v26  ;;  %1574 = vmatprep.mubr.f32.mxu1 %v934_v27  ;;  %v995_v26 = vmul.f32 %v4619_v53, %v467_v16  ;;  %v1006_v27 = vmul.f32 %v4472_v46, %v478_v17  ;;  %v576_v16 = vld [vmem:[%s4360_s26 + $0xb88] sm:$0xff] }
  0xbe   : > { %2314 = vmatprep.mubr.f32.mxu0 %v942_v29  ;;  %3315 = vmatpush1.bf16.msra.mxu1 %v3314_v33  ;;  %v1014_v29 = vmul.f32 %v4479_v50, %v486_v19  ;;  %v3326_v33 = vpack.c.bf16 %v1228_v22, %v1227_v21  ;;  %v1104_v21 = vmul.f32 %v4479_v50, %v576_v16  ;;  %v575_v22 = vld [vmem:[%s4360_s26 + $0xb80] sm:$0xff]  ;;  %v246_v16 = vld [vmem:[%s4360_s26 + $0x138] sm:$0xff] }
  0xbf   : > { %3507 = vmatpush1.bf16.msra.mxu0 %v3506_v35  ;;  %3316 = vmatprep.subr.bf16.mxu1 %v4210_v0  ;;  %v3518_v35 = vpack.c.bf16 %v1356_v25, %v1355_v24  ;;  %v594_v24 = vld [vmem:[%s4360_s26 + $0xc18] sm:$0xff] }
  0xc0   : > { %1575 = vmatmul.mubr.f32.gmra.mrb[22].mxu1 %v933_v40  ;;  %3508 = vmatprep.subr.bf16.mxu0 %v4210_v0  ;;  %v1005_v40 = vmul.f32 %v4614_v49, %v477_v28  ;;  %v585_v28 = vld [vmem:[%s4360_s26 + $0xbd0] sm:$0xff] }
  0xc1   : > { %2315 = vmatmul.mubr.f32.gmra.mrb[22].mxu0 %v941_v43  ;;  %1579 = vmatprep.mubr.f32.mxu1 %v952_v44  ;;  %v1013_v43 = vmul.f32 %v4619_v53, %v485_v31  ;;  %v1024_v44 = vmul.f32 %v4472_v46, %v496_v32  ;;  %v593_v31 = vld [vmem:[%s4360_s26 + $0xc10] sm:$0xff]  ;;  %v604_v32 = vld [vmem:[%s4360_s26 + $0xc68] sm:$0xff] }
  0xc2   : > { %2319 = vmatprep.mubr.f32.mxu0 %v960_v51  ;;  %3318 = vmatpush1.bf16.msra.mxu1 %v3317_v55  ;;  %v1032_v51 = vmul.f32 %v4479_v50, %v504_v34  ;;  %v3329_v55 = vpack.c.bf16 %v1230_v38, %v1229_v36  ;;  %v1113_v34 = vmul.f32 %v4614_v49, %v585_v28  ;;  %v603_v38 = vld [vmem:[%s4360_s26 + $0xc60] sm:$0xff] }
  0xc3   : > { %3510 = vmatpush1.bf16.msra.mxu0 %v3509_v45  ;;  %3319 = vmatprep.subr.bf16.mxu1 %v4210_v0  ;;  %v3521_v45 = vpack.c.bf16 %v1358_v42, %v1357_v41  ;;  %v1132_v36 = vmul.f32 %v4472_v46, %v604_v32  ;;  %v611_v42 = vld [vmem:[%s4360_s26 + $0xca0] sm:$0xff]  ;;  %v1131_v47 = vmul.f32 %v4614_v49, %v603_v38  ;;  %v1363_v38 = vld [vmem:[%s6471_s1 + $0x620] sm:$0xff] }
  0xc4   : > { %1580 = vmatmul.mubr.f32.gmra.mrb[24].mxu1 %v951_v58  ;;  %3511 = vmatprep.subr.bf16.mxu0 %v4210_v0  ;;  %v1042_v58 = vmul.f32 %v4472_v46, %v514_v54  ;;  %v1139_v52 = vmul.f32 %v4619_v53, %v611_v42 }
  0xc5   : > { %2320 = vmatmul.mubr.f32.gmra.mrb[24].mxu0 %v959_v61  ;;  %1584 = vmatprep.mubr.f32.mxu1 %v970_v62  ;;  %v521_v61 = vld [vmem:[%s4360_s26 + $0x9d0] sm:$0xff]  ;;  %v532_v62 = vld [vmem:[%s4360_s26 + $0xa28] sm:$0xff] }
  0xc6   : > { %2324 = vmatprep.mubr.f32.mxu0 %v978_v1  ;;  %3321 = vmatpush1.bf16.msra.mxu1 %v3320_v4  ;;  %v1041_v1 = vmul.f32 %v4614_v49, %v513_v59  ;;  %v1049_v2 = vmul.f32 %v4619_v53, %v521_v61  ;;  %v1060_v3 = vmul.f32 %v4472_v46, %v532_v62  ;;  %v531_v4 = vld [vmem:[%s4360_s26 + $0xa20] sm:$0xff]  ;;  %v5042_v59 = vld [vmem:[#allocation2 + $0x8] sm:$0xff] }
  0xc7   : > { %3513 = vmatpush1.bf16.msra.mxu0 %v3512_v6  ;;  %3322 = vmatprep.subr.bf16.mxu1 %v4210_v0  ;;  %v539_v6 = vld [vmem:[%s4360_s26 + $0xa60] sm:$0xff]  ;;  %v218_v61 = vld [vmem:[%s4360_s26 + $0x58] sm:$0xff] }
  0xc8   : > { %1585 = vmatmul.mubr.f32.gmra.mrb[26].mxu1 %v969_v9  ;;  %3514 = vmatprep.subr.bf16.mxu0 %v4210_v0  ;;  %v1059_v9 = vmul.f32 %v4614_v49, %v531_v4  ;;  %v1067_v10 = vmul.f32 %v4619_v53, %v539_v6  ;;  %v217_v4 = vld [vmem:[%s4360_s26 + $0x50] sm:$0xff] }
  0xc9   : > { %2325 = vmatmul.mubr.f32.gmra.mrb[26].mxu0 %v977_v12  ;;  %1589 = vmatprep.mubr.f32.mxu1 %v988_v13  ;;  %v549_v12 = vld [vmem:[%s4360_s26 + $0xab0] sm:$0xff]  ;;  %v1086_v13 = vmul.f32 %v4479_v50, %v558_v8 }
  0xca   : > { %2329 = vmatprep.mubr.f32.mxu0 %v996_v15  ;;  %3324 = vmatpush1.bf16.msra.mxu1 %v3323_v18  ;;  %v568_v15 = vld [vmem:[%s4360_s26 + $0xb48] sm:$0xff]  ;;  %v1077_v17 = vmul.f32 %v4614_v49, %v549_v12  ;;  %v1085_v18 = vmul.f32 %v4619_v53, %v557_v14  ;;  %v1360_v6 = vld [vmem:[%s6471_s1 + $0x608] sm:$0xff]  ;;  %v227_v12 = vld [vmem:[%s4360_s26 + $0xa0] sm:$0xff] }
  0xcb   : > { %3516 = vmatpush1.bf16.msra.mxu0 %v3515_v20  ;;  %3325 = vmatprep.subr.bf16.mxu1 %v4210_v0  ;;  %v1096_v19 = vmul.f32 %v4472_v46, %v568_v15  ;;  %v567_v20 = vld [vmem:[%s4360_s26 + $0xb40] sm:$0xff] }
  0xcc   : > { %1590 = vmatmul.mubr.f32.gmra.mrb[28].mxu1 %v987_v23  ;;  %3517 = vmatprep.subr.bf16.mxu0 %v4210_v0  ;;  %v586_v23 = vld [vmem:[%s4360_s26 + $0xbd8] sm:$0xff]  ;;  %v1095_v25 = vmul.f32 %v4614_v49, %v567_v20  ;;  %v235_v15 = vld [vmem:[%s4360_s26 + $0xe0] sm:$0xff] }
  0xcd   : > { %2330 = vmatmul.mubr.f32.gmra.mrb[28].mxu0 %v995_v26  ;;  %1594 = vmatprep.mubr.f32.mxu1 %v1006_v27  ;;  %v1103_v26 = vmul.f32 %v4619_v53, %v575_v22  ;;  %v1114_v27 = vmul.f32 %v4472_v46, %v586_v23  ;;  %v254_v20 = vld [vmem:[%s4360_s26 + $0x178] sm:$0xff]  ;;  %v1362_v23 = vld [vmem:[%s6471_s1 + $0x618] sm:$0xff] }
  0xce   : > { %2334 = vmatprep.mubr.f32.mxu0 %v1014_v29  ;;  %3327 = vmatpush1.bf16.msra.mxu1 %v3326_v33  ;;  %v1122_v29 = vmul.f32 %v4479_v50, %v594_v24  ;;  %v612_v33 = vld [vmem:[%s4360_s26 + $0xca8] sm:$0xff]  ;;  %v1361_v22 = vld [vmem:[%s6471_s1 + $0x610] sm:$0xff] }
  0xcf   : > { %3519 = vmatpush1.bf16.msra.mxu0 %v3518_v35  ;;  %3328 = vmatprep.subr.bf16.mxu1 %v4210_v0  ;;  %v1121_v35 = vmul.f32 %v4619_v53, %v593_v31  ;;  %v1140_v41 = vmul.f32 %v4479_v50, %v612_v33  ;;  %v264_v31 = vld [vmem:[%s4360_s26 + $0x1c8] sm:$0xff]  ;;  %v3527_v32 = vpack.c.bf16 %v1362_v23, %v1361_v22 }
  0xd0   : > { %1595 = vmatmul.mubr.f32.gmra.mrb[30].mxu1 %v1005_v40  ;;  %3520 = vmatprep.subr.bf16.mxu0 %v4210_v0  ;;  %v659_v40 = vsub.s32 3, %v4434_v30  ;;  %v272_v33 = vld [vmem:[%s4360_s26 + $0x208] sm:$0xff] }
  0xd1   : > { %2335 = vmatmul.mubr.f32.gmra.mrb[30].mxu0 %v1013_v43  ;;  %1599 = vmatprep.mubr.f32.mxu1 %v1024_v44  ;;  %v622_v43 = vld [vmem:[%s4360_s26 + $0xcf8] sm:$0xff]  ;;  %v1242_v22 = vld [vmem:[%s6471_s1 + $0x258] sm:$0xff] }
  0xd2   : > { %2339 = vmatprep.mubr.f32.mxu0 %v1032_v51  ;;  %3330 = vmatpush1.bf16.msra.mxu1 %v3329_v55  ;;  %v630_v44 = vld [vmem:[%s4360_s26 + $0xd38] sm:$0xff]  ;;  %v655_v51 = vsub.s32 2, %v4434_v30  ;;  %v1150_v54 = vmul.f32 %v4472_v46, %v622_v43  ;;  %v621_v55 = vld [vmem:[%s4360_s26 + $0xcf0] sm:$0xff]  ;;  %v263_v43 = vld [vmem:[%s4360_s26 + $0x1c0] sm:$0xff] }
  0xd3   : > { %3522 = vmatpush1.bf16.msra.mxu0 %v3521_v45  ;;  %3331 = vmatprep.subr.bf16.mxu1 %v4210_v0  ;;  %v5037_v45 = vrot.slane %v5034_v56, %v659_v40  ;;  %v1149_v46 = vmul.f32 %v4614_v49, %v621_v55  ;;  %v1231_v49 = vld [vmem:[%s6471_s1 + $0x200] sm:$0xff]  ;;  %v290_v55 = vld [vmem:[%s4360_s26 + $0x298] sm:$0xff] }
  0xd4   : > { %1600 = vmatmul.mubr.f32.gmra.mrb[32].mxu1 %v1023_v48  ;;  %3523 = vmatprep.subr.bf16.mxu0 %v4210_v0  ;;  %v1158_v48 = vmul.f32 %v4479_v50, %v630_v44  ;;  %v5050_v62 = vrot.slane %v5034_v56, %v655_v51 }
  0xd5   : > { %2340 = vmatmul.mubr.f32.gmra.mrb[32].mxu0 %v1031_v57  ;;  %1604 = vmatprep.mubr.f32.mxu1 %v1042_v58  ;;  %v629_v57 = vld [vmem:[%s4360_s26 + $0xd30] sm:$0xff]  ;;  %v210_v58 = vld [vmem:[%s4360_s26 + $0x18] sm:$0xff]  ;;  %v756_v14 = vmul.f32 %v5037_v45, %v228_v7  ;;  %v792_v42 = vmul.f32 %v5037_v45, %v264_v31 }
  0xd6   : > { %2344 = vmatprep.mubr.f32.mxu0 %v1050_v60  ;;  %v5045_v60 = vrot.slane %v5042_v59, %v659_v40  ;;  %v1157_v50 = vmul.f32 %v4619_v53, %v629_v57  ;;  %v738_v63 = vmul.f32 %v5037_v45, %v210_v58  ;;  %v1232_v53 = vld [vmem:[%s6471_s1 + $0x208] sm:$0xff]  ;;  %v1238_v57 = vld [vmem:[%s6471_s1 + $0x238] sm:$0xff]  ;;  %v791_v58 = vmul.f32 %v5050_v62, %v263_v43  ;;  %v1239_v7 = vld [vmem:[%s6471_s1 + $0x240] sm:$0xff] }
  0xd7   : > { %v1364_v40 = vld [vmem:[%s6471_s1 + $0x628] sm:$0xff] }
  0xd8   : > { %1605 = vmatmul.mubr.f32.gmra.mrb[34].mxu1 %v1041_v1  ;;  %v209_v1 = vld [vmem:[%s4360_s26 + $0x10] sm:$0xff]  ;;  %v782_v28 = vmul.f32 %v5045_v60, %v254_v20  ;;  %v800_v44 = vmul.f32 %v5045_v60, %v272_v33 }
  0xd9   : > { %2345 = vmatmul.mubr.f32.gmra.mrb[34].mxu0 %v1049_v2  ;;  %1609 = vmatprep.mubr.f32.mxu1 %v1060_v3  ;;  %v5056_v2 = vrot.slane %v5042_v59, %v655_v51  ;;  %v746_v3 = vmul.f32 %v5045_v60, %v218_v61  ;;  %v737_v8 = vmul.f32 %v5050_v62, %v209_v1  ;;  %v1365_v61 = vld [vmem:[%s6471_s1 + $0x630] sm:$0xff]  ;;  %v281_v1 = vld [vmem:[%s4360_s26 + $0x250] sm:$0xff] }
  0xda   : > { %2349 = vmatprep.mubr.f32.mxu0 %v1068_v5  ;;  %v1359_v5 = vld [vmem:[%s6471_s1 + $0x600] sm:$0xff] }
  0xdb   : > { %v763_v24 = vmul.f32 %v5056_v2, %v235_v15  ;;  %v325_v31 = vld [vmem:[%s4360_s26 + $0x3b0] sm:$0xff] }
  0xdc   : > { %1610 = vmatmul.mubr.f32.gmra.mrb[36].mxu1 %v1059_v9  ;;  %v236_v9 = vld [vmem:[%s4360_s26 + $0xe8] sm:$0xff]  ;;  %v853_v43 = vmul.f32 %v5056_v2, %v325_v31  ;;  %v389_v31 = vld [vmem:[%s4360_s26 + $0x5b0] sm:$0xff] }
  0xdd   : > { %2350 = vmatmul.mubr.f32.gmra.mrb[36].mxu0 %v1067_v10  ;;  %1614 = vmatprep.mubr.f32.mxu1 %v1078_v11  ;;  %v745_v10 = vmul.f32 %v5056_v2, %v217_v4  ;;  %v3332_v11 = vpack.c.bf16 %v1232_v53, %v1231_v49  ;;  %v289_v4 = vld [vmem:[%s4360_s26 + $0x290] sm:$0xff]  ;;  %v300_v49 = vld [vmem:[%s4360_s26 + $0x2e8] sm:$0xff] }
  0xde   : > { %2354 = vmatprep.mubr.f32.mxu0 %v1086_v13  ;;  %v3524_v13 = vpack.c.bf16 %v1360_v6, %v1359_v5  ;;  %v308_v5 = vld [vmem:[%s4360_s26 + $0x328] sm:$0xff] }
  0xdf   : > { %v836_v15 = vmul.f32 %v5045_v60, %v308_v5  ;;  %v372_v5 = vld [vmem:[%s4360_s26 + $0x528] sm:$0xff] }
  0xe0   : > { %1615 = vmatmul.mubr.f32.gmra.mrb[38].mxu1 %v1077_v17  ;;  %v764_v17 = vmul.f32 %v5045_v60, %v236_v9  ;;  %v809_v9 = vmul.f32 %v5050_v62, %v281_v1 }
  0xe1   : > { %2355 = vmatmul.mubr.f32.gmra.mrb[38].mxu0 %v1085_v18  ;;  %1619 = vmatprep.mubr.f32.mxu1 %v1096_v19  ;;  %v1233_v18 = vld [vmem:[%s6471_s1 + $0x210] sm:$0xff]  ;;  %v1234_v19 = vld [vmem:[%s6471_s1 + $0x218] sm:$0xff] }
  0xe2   : > { %2359 = vmatprep.mubr.f32.mxu0 %v1104_v21  ;;  %v755_v21 = vmul.f32 %v5050_v62, %v227_v12  ;;  %v817_v12 = vmul.f32 %v5056_v2, %v289_v4  ;;  %v353_v4 = vld [vmem:[%s4360_s26 + $0x490] sm:$0xff] }
  0xe4   : > { %1620 = vmatmul.mubr.f32.gmra.mrb[40].mxu1 %v1095_v25  ;;  %v774_v25 = vmul.f32 %v5037_v45, %v246_v16  ;;  %v307_v16 = vld [vmem:[%s4360_s26 + $0x320] sm:$0xff] }
  0xe5   : > { %2360 = vmatmul.mubr.f32.gmra.mrb[40].mxu0 %v1103_v26  ;;  %1624 = vmatprep.mubr.f32.mxu1 %v1114_v27  ;;  %v245_v26 = vld [vmem:[%s4360_s26 + $0x130] sm:$0xff]  ;;  %v3335_v27 = vpack.c.bf16 %v1234_v19, %v1233_v18  ;;  %v326_v19 = vld [vmem:[%s4360_s26 + $0x3b8] sm:$0xff] }
  0xe6   : > { %2364 = vmatprep.mubr.f32.mxu0 %v1122_v29  ;;  %v253_v29 = vld [vmem:[%s4360_s26 + $0x170] sm:$0xff] }
  0xe8   : > { %1625 = vmatmul.mubr.f32.gmra.mrb[42].mxu1 %v1113_v34  ;;  %v1235_v34 = vld [vmem:[%s6471_s1 + $0x220] sm:$0xff] }
  0xe9   : > { %2365 = vmatmul.mubr.f32.gmra.mrb[42].mxu0 %v1121_v35  ;;  %1629 = vmatprep.mubr.f32.mxu1 %v1132_v36  ;;  %v1236_v35 = vld [vmem:[%s6471_s1 + $0x228] sm:$0xff]  ;;  %v773_v36 = vmul.f32 %v5050_v62, %v245_v26  ;;  %v835_v26 = vmul.f32 %v5056_v2, %v307_v16  ;;  %v371_v16 = vld [vmem:[%s4360_s26 + $0x520] sm:$0xff] }
  0xea   : > { %2369 = vmatprep.mubr.f32.mxu0 %v1140_v41  ;;  %v781_v41 = vmul.f32 %v5056_v2, %v253_v29  ;;  %v3338_v51 = vpack.c.bf16 %v1236_v35, %v1235_v34  ;;  %v854_v29 = vmul.f32 %v5045_v60, %v326_v19  ;;  %v344_v34 = vld [vmem:[%s4360_s26 + $0x448] sm:$0xff]  ;;  %v390_v19 = vld [vmem:[%s4360_s26 + $0x5b8] sm:$0xff] }
  0xec   : > { %1630 = vmatmul.mubr.f32.gmra.mrb[44].mxu1 %v1131_v47  ;;  %v271_v47 = vld [vmem:[%s4360_s26 + $0x200] sm:$0xff] }
  0xed   : > { %2370 = vmatmul.mubr.f32.gmra.mrb[44].mxu0 %v1139_v52  ;;  %1634 = vmatprep.mubr.f32.mxu1 %v1150_v54  ;;  %v282_v52 = vld [vmem:[%s4360_s26 + $0x258] sm:$0xff]  ;;  %v3530_v54 = vpack.c.bf16 %v1364_v40, %v1363_v38 }
  0xee   : > { %2374 = vmatprep.mubr.f32.mxu0 %v1158_v48  ;;  %v1237_v48 = vld [vmem:[%s6471_s1 + $0x230] sm:$0xff]  ;;  %v1244_v38 = vld [vmem:[%s6471_s1 + $0x268] sm:$0xff] }
  0xef   : > { %v3341_v53 = vpack.c.bf16 %v1238_v57, %v1237_v48  ;;  %v362_v48 = vld [vmem:[%s4360_s26 + $0x4d8] sm:$0xff] }
  0xf0   : > { %1635 = vmatmul.mubr.f32.gmra.mrb[46].mxu1 %v1149_v46  ;;  %v1366_v46 = vld [vmem:[%s6471_s1 + $0x638] sm:$0xff] }
  0xf1   : > { %2375 = vmatmul.mubr.f32.gmra.mrb[46].mxu0 %v1157_v50  ;;  %1704 = vmatprep.mubr.f32.mxu1 %v738_v63  ;;  %v799_v50 = vmul.f32 %v5056_v2, %v271_v47  ;;  %v810_v63 = vmul.f32 %v5037_v45, %v282_v52  ;;  %v3533_v6 = vpack.c.bf16 %v1366_v46, %v1365_v61  ;;  %v335_v47 = vld [vmem:[%s4360_s26 + $0x400] sm:$0xff] }
  0xf2   : > { %2444 = vmatprep.mubr.f32.mxu0 %v746_v3  ;;  %v818_v3 = vmul.f32 %v5045_v60, %v290_v55  ;;  %v343_v52 = vld [vmem:[%s4360_s26 + $0x440] sm:$0xff]  ;;  %v863_v46 = vmul.f32 %v5050_v62, %v335_v47 }
  0xf3   : > { %v1246_v61 = vld [vmem:[%s6471_s1 + $0x278] sm:$0xff]  ;;  %v871_v1 = vmul.f32 %v5056_v2, %v343_v52 }
  0xf4   : > { %1705 = vmatmul.mubr.f32.vlgmr.msra.gmra.mrb[0].mxu1 %v737_v8  ;;  %v1240_v8 = vld [vmem:[%s6471_s1 + $0x248] sm:$0xff]  ;;  %v407_v52 = vld [vmem:[%s4360_s26 + $0x640] sm:$0xff] }
  0xf5   : > { %2445 = vmatmul.mubr.f32.vlgmr.msra.gmra.mrb[0].mxu0 %v745_v10  ;;  %3333 = vmatpush1.bf16.msra.mxu1 %v3332_v11  ;;  %v1367_v10 = vld [vmem:[%s6471_s1 + $0x640] sm:$0xff]  ;;  %v1368_v11 = vld [vmem:[%s6471_s1 + $0x648] sm:$0xff]  ;;  %v3344_v18 = vpack.c.bf16 %v1240_v8, %v1239_v7 }
  0xf6   : > { %3525 = vmatpush1.bf16.msra.mxu0 %v3524_v13  ;;  %1709 = vmatprep.mubr.f32.mxu1 %v756_v14  ;;  %v828_v13 = vmul.f32 %v5037_v45, %v300_v49  ;;  %v299_v14 = vld [vmem:[%s4360_s26 + $0x2e0] sm:$0xff]  ;;  %v3536_v20 = vpack.c.bf16 %v1368_v11, %v1367_v10  ;;  %v890_v49 = vmul.f32 %v5045_v60, %v362_v48  ;;  %v380_v7 = vld [vmem:[%s4360_s26 + $0x568] sm:$0xff]  ;;  %v1248_v10 = vld [vmem:[%s6471_s1 + $0x288] sm:$0xff] }
  0xf7   : > { %2449 = vmatprep.mubr.f32.mxu0 %v764_v17  ;;  %3334 = vmatprep.subr.bf16.mxu1 %v4210_v0  ;;  %v318_v17 = vld [vmem:[%s4360_s26 + $0x378] sm:$0xff]  ;;  %v827_v23 = vmul.f32 %v5050_v62, %v299_v14  ;;  %v881_v11 = vmul.f32 %v5050_v62, %v353_v4 }
  0xf8   : > { %1710 = vmatmul.mubr.f32.gmra.mrb[2].mxu1 %v755_v21  ;;  %3526 = vmatprep.subr.bf16.mxu0 %v4210_v0  ;;  %v1241_v21 = vld [vmem:[%s6471_s1 + $0x250] sm:$0xff] }
  0xf9   : > { %2450 = vmatmul.mubr.f32.gmra.mrb[2].mxu0 %v763_v24  ;;  %1714 = vmatprep.mubr.f32.mxu1 %v774_v25  ;;  %v1369_v24 = vld [vmem:[%s6471_s1 + $0x650] sm:$0xff]  ;;  %v1370_v25 = vld [vmem:[%s6471_s1 + $0x658] sm:$0xff]  ;;  %v3347_v33 = vpack.c.bf16 %v1242_v22, %v1241_v21 }
  0xfa   : > { %3336 = vmatpush1.bf16.msra.mxu1 %v3335_v27  ;;  %2454 = vmatprep.mubr.f32.mxu0 %v782_v28  ;;  %v846_v27 = vmul.f32 %v5037_v45, %v318_v17  ;;  %v317_v28 = vld [vmem:[%s4360_s26 + $0x370] sm:$0xff]  ;;  %v3539_v35 = vpack.c.bf16 %v1370_v25, %v1369_v24  ;;  %v908_v17 = vmul.f32 %v5045_v60, %v380_v7  ;;  %v398_v21 = vld [vmem:[%s4360_s26 + $0x5f8] sm:$0xff]  ;;  %v1250_v24 = vld [vmem:[%s6471_s1 + $0x298] sm:$0xff] }
  0xfb   : > { %3528 = vmatpush1.bf16.msra.mxu0 %v3527_v32  ;;  %3337 = vmatprep.subr.bf16.mxu1 %v4210_v0  ;;  %v336_v32 = vld [vmem:[%s4360_s26 + $0x408] sm:$0xff]  ;;  %v845_v40 = vmul.f32 %v5050_v62, %v317_v28  ;;  %v899_v25 = vmul.f32 %v5050_v62, %v371_v16  ;;  %v426_v48 = vld [vmem:[%s4360_s26 + $0x6d8] sm:$0xff] }
  0xfc   : > { %1715 = vmatmul.mubr.f32.gmra.mrb[4].mxu1 %v773_v36  ;;  %3529 = vmatprep.subr.bf16.mxu0 %v4210_v0  ;;  %v1243_v36 = vld [vmem:[%s6471_s1 + $0x260] sm:$0xff] }
  0xfd   : > { %2455 = vmatmul.mubr.f32.gmra.mrb[4].mxu0 %v781_v41  ;;  %1719 = vmatprep.mubr.f32.mxu1 %v792_v42  ;;  %v1371_v41 = vld [vmem:[%s6471_s1 + $0x660] sm:$0xff]  ;;  %v1372_v42 = vld [vmem:[%s6471_s1 + $0x668] sm:$0xff]  ;;  %v3350_v55 = vpack.c.bf16 %v1244_v38, %v1243_v36 }
  0xfe   : > { %2459 = vmatprep.mubr.f32.mxu0 %v800_v44  ;;  %3339 = vmatpush1.bf16.msra.mxu1 %v3338_v51  ;;  %v864_v44 = vmul.f32 %v5037_v45, %v336_v32  ;;  %v872_v51 = vmul.f32 %v5045_v60, %v344_v34  ;;  %v3542_v57 = vpack.c.bf16 %v1372_v42, %v1371_v41  ;;  %v408_v34 = vld [vmem:[%s4360_s26 + $0x648] sm:$0xff]  ;;  %v1252_v41 = vld [vmem:[%s6471_s1 + $0x2a8] sm:$0xff] }
  0xff   : > { %3531 = vmatpush1.bf16.msra.mxu0 %v3530_v54  ;;  %3340 = vmatprep.subr.bf16.mxu1 %v4210_v0  ;;  %v354_v54 = vld [vmem:[%s4360_s26 + $0x498] sm:$0xff]  ;;  %v926_v32 = vmul.f32 %v5045_v60, %v398_v21  ;;  %v416_v36 = vld [vmem:[%s4360_s26 + $0x688] sm:$0xff]  ;;  %v917_v42 = vmul.f32 %v5050_v62, %v389_v31 }
 0x100   : > { %1720 = vmatmul.mubr.f32.gmra.mrb[6].mxu1 %v791_v58  ;;  %3532 = vmatprep.subr.bf16.mxu0 %v4210_v0  ;;  %v1245_v58 = vld [vmem:[%s6471_s1 + $0x270] sm:$0xff]  ;;  %v444_v7 = vld [vmem:[%s4360_s26 + $0x768] sm:$0xff] }
 0x101   : > { %2460 = vmatmul.mubr.f32.gmra.mrb[6].mxu0 %v799_v50  ;;  %1724 = vmatprep.mubr.f32.mxu1 %v810_v63  ;;  %v1373_v50 = vld [vmem:[%s6471_s1 + $0x670] sm:$0xff]  ;;  %v1374_v63 = vld [vmem:[%s6471_s1 + $0x678] sm:$0xff] }
 0x102   : > { %2464 = vmatprep.mubr.f32.mxu0 %v818_v3  ;;  %3342 = vmatpush1.bf16.msra.mxu1 %v3341_v53  ;;  %v882_v3 = vmul.f32 %v5037_v45, %v354_v54  ;;  %v361_v53 = vld [vmem:[%s4360_s26 + $0x4d0] sm:$0xff]  ;;  %v3545_v8 = vpack.c.bf16 %v1374_v63, %v1373_v50  ;;  %v944_v54 = vmul.f32 %v5045_v60, %v416_v36  ;;  %v1254_v50 = vld [vmem:[%s6471_s1 + $0x2b8] sm:$0xff]  ;;  %v462_v21 = vld [vmem:[%s4360_s26 + $0x7f8] sm:$0xff] }
 0x103   : > { %3534 = vmatpush1.bf16.msra.mxu0 %v3533_v6  ;;  %3343 = vmatprep.subr.bf16.mxu1 %v4210_v0  ;;  %v3353_v6 = vpack.c.bf16 %v1246_v61, %v1245_v58  ;;  %v889_v14 = vmul.f32 %v5056_v2, %v361_v53  ;;  %v434_v58 = vld [vmem:[%s4360_s26 + $0x718] sm:$0xff]  ;;  %v935_v63 = vmul.f32 %v5050_v62, %v407_v52  ;;  %v425_v53 = vld [vmem:[%s4360_s26 + $0x6d0] sm:$0xff]  ;;  %v480_v36 = vld [vmem:[%s4360_s26 + $0x888] sm:$0xff] }
 0x104   : > { %1725 = vmatmul.mubr.f32.gmra.mrb[8].mxu1 %v809_v9  ;;  %3535 = vmatprep.subr.bf16.mxu0 %v4210_v0  ;;  %v1247_v9 = vld [vmem:[%s6471_s1 + $0x280] sm:$0xff] }
 0x105   : > { %2465 = vmatmul.mubr.f32.gmra.mrb[8].mxu0 %v817_v12  ;;  %1729 = vmatprep.mubr.f32.mxu1 %v828_v13  ;;  %v1375_v12 = vld [vmem:[%s6471_s1 + $0x680] sm:$0xff]  ;;  %v1376_v13 = vld [vmem:[%s6471_s1 + $0x688] sm:$0xff] }
 0x106   : > { %2469 = vmatprep.mubr.f32.mxu0 %v836_v15  ;;  %3345 = vmatpush1.bf16.msra.mxu1 %v3344_v18  ;;  %v900_v15 = vmul.f32 %v5037_v45, %v372_v5  ;;  %v379_v18 = vld [vmem:[%s4360_s26 + $0x560] sm:$0xff]  ;;  %v3548_v22 = vpack.c.bf16 %v1376_v13, %v1375_v12  ;;  %v962_v5 = vmul.f32 %v5045_v60, %v434_v58  ;;  %v1256_v12 = vld [vmem:[%s6471_s1 + $0x2c8] sm:$0xff] }
 0x107   : > { %3537 = vmatpush1.bf16.msra.mxu0 %v3536_v20  ;;  %3346 = vmatprep.subr.bf16.mxu1 %v4210_v0  ;;  %v3356_v20 = vpack.c.bf16 %v1248_v10, %v1247_v9  ;;  %v907_v28 = vmul.f32 %v5056_v2, %v379_v18  ;;  %v452_v9 = vld [vmem:[%s4360_s26 + $0x7a8] sm:$0xff]  ;;  %v953_v13 = vmul.f32 %v5050_v62, %v425_v53  ;;  %v443_v18 = vld [vmem:[%s4360_s26 + $0x760] sm:$0xff]  ;;  %v498_v58 = vld [vmem:[%s4360_s26 + $0x918] sm:$0xff] }
 0x108   : > { %1730 = vmatmul.mubr.f32.gmra.mrb[10].mxu1 %v827_v23  ;;  %3538 = vmatprep.subr.bf16.mxu0 %v4210_v0  ;;  %v1249_v23 = vld [vmem:[%s6471_s1 + $0x290] sm:$0xff] }
 0x109   : > { %2470 = vmatmul.mubr.f32.gmra.mrb[10].mxu0 %v835_v26  ;;  %1734 = vmatprep.mubr.f32.mxu1 %v846_v27  ;;  %v1377_v26 = vld [vmem:[%s6471_s1 + $0x690] sm:$0xff]  ;;  %v1378_v27 = vld [vmem:[%s6471_s1 + $0x698] sm:$0xff] }
 0x10a   : > { %2474 = vmatprep.mubr.f32.mxu0 %v854_v29  ;;  %3348 = vmatpush1.bf16.msra.mxu1 %v3347_v33  ;;  %v918_v29 = vmul.f32 %v5037_v45, %v390_v19  ;;  %v397_v33 = vld [vmem:[%s4360_s26 + $0x5f0] sm:$0xff]  ;;  %v3551_v38 = vpack.c.bf16 %v1378_v27, %v1377_v26  ;;  %v980_v19 = vmul.f32 %v5045_v60, %v452_v9  ;;  %v1258_v26 = vld [vmem:[%s6471_s1 + $0x2d8] sm:$0xff] }
 0x10b   : > { %3540 = vmatpush1.bf16.msra.mxu0 %v3539_v35  ;;  %3349 = vmatprep.subr.bf16.mxu1 %v4210_v0  ;;  %v3359_v35 = vpack.c.bf16 %v1250_v24, %v1249_v23  ;;  %v925_v47 = vmul.f32 %v5056_v2, %v397_v33  ;;  %v470_v23 = vld [vmem:[%s4360_s26 + $0x838] sm:$0xff]  ;;  %v971_v27 = vmul.f32 %v5050_v62, %v443_v18  ;;  %v461_v33 = vld [vmem:[%s4360_s26 + $0x7f0] sm:$0xff]  ;;  %v516_v9 = vld [vmem:[%s4360_s26 + $0x9a8] sm:$0xff] }
 0x10c   : > { %1735 = vmatmul.mubr.f32.gmra.mrb[12].mxu1 %v845_v40  ;;  %3541 = vmatprep.subr.bf16.mxu0 %v4210_v0  ;;  %v1251_v40 = vld [vmem:[%s6471_s1 + $0x2a0] sm:$0xff]  ;;  %v523_v18 = vld [vmem:[%s4360_s26 + $0x9e0] sm:$0xff] }
 0x10d   : > { %2475 = vmatmul.mubr.f32.gmra.mrb[12].mxu0 %v853_v43  ;;  %1739 = vmatprep.mubr.f32.mxu1 %v864_v44  ;;  %v1379_v43 = vld [vmem:[%s6471_s1 + $0x6a0] sm:$0xff]  ;;  %v1380_v44 = vld [vmem:[%s6471_s1 + $0x6a8] sm:$0xff] }
 0x10e   : > { %2479 = vmatprep.mubr.f32.mxu0 %v872_v51  ;;  %3351 = vmatpush1.bf16.msra.mxu1 %v3350_v55  ;;  %v936_v51 = vmul.f32 %v5037_v45, %v408_v34  ;;  %v415_v55 = vld [vmem:[%s4360_s26 + $0x680] sm:$0xff]  ;;  %v3554_v61 = vpack.c.bf16 %v1380_v44, %v1379_v43  ;;  %v998_v34 = vmul.f32 %v5045_v60, %v470_v23  ;;  %v1260_v43 = vld [vmem:[%s6471_s1 + $0x2e8] sm:$0xff] }
 0x10f   : > { %3543 = vmatpush1.bf16.msra.mxu0 %v3542_v57  ;;  %3352 = vmatprep.subr.bf16.mxu1 %v4210_v0  ;;  %v3362_v57 = vpack.c.bf16 %v1252_v41, %v1251_v40  ;;  %v943_v4 = vmul.f32 %v5056_v2, %v415_v55  ;;  %v488_v40 = vld [vmem:[%s4360_s26 + $0x8c8] sm:$0xff]  ;;  %v989_v44 = vmul.f32 %v5050_v62, %v461_v33  ;;  %v479_v55 = vld [vmem:[%s4360_s26 + $0x880] sm:$0xff] }
 0x110   : > { %1740 = vmatmul.mubr.f32.gmra.mrb[14].mxu1 %v863_v46  ;;  %3544 = vmatprep.subr.bf16.mxu0 %v4210_v0  ;;  %v1253_v46 = vld [vmem:[%s6471_s1 + $0x2b0] sm:$0xff] }
 0x111   : > { %2480 = vmatmul.mubr.f32.gmra.mrb[14].mxu0 %v871_v1  ;;  %1744 = vmatprep.mubr.f32.mxu1 %v882_v3  ;;  %v1381_v1 = vld [vmem:[%s6471_s1 + $0x6b0] sm:$0xff]  ;;  %v1382_v3 = vld [vmem:[%s6471_s1 + $0x6b8] sm:$0xff] }
 0x112   : > { %2484 = vmatprep.mubr.f32.mxu0 %v890_v49  ;;  %3354 = vmatpush1.bf16.msra.mxu1 %v3353_v6  ;;  %v954_v49 = vmul.f32 %v5037_v45, %v426_v48  ;;  %v433_v6 = vld [vmem:[%s4360_s26 + $0x710] sm:$0xff]  ;;  %v3557_v10 = vpack.c.bf16 %v1382_v3, %v1381_v1  ;;  %v1016_v48 = vmul.f32 %v5045_v60, %v488_v40  ;;  %v1262_v1 = vld [vmem:[%s6471_s1 + $0x2f8] sm:$0xff] }
 0x113   : > { %3546 = vmatpush1.bf16.msra.mxu0 %v3545_v8  ;;  %3355 = vmatprep.subr.bf16.mxu1 %v4210_v0  ;;  %v3365_v8 = vpack.c.bf16 %v1254_v50, %v1253_v46  ;;  %v961_v16 = vmul.f32 %v5056_v2, %v433_v6  ;;  %v506_v46 = vld [vmem:[%s4360_s26 + $0x958] sm:$0xff]  ;;  %v1007_v3 = vmul.f32 %v5050_v62, %v479_v55  ;;  %v497_v6 = vld [vmem:[%s4360_s26 + $0x910] sm:$0xff]  ;;  %v551_v33 = vld [vmem:[%s4360_s26 + $0xac0] sm:$0xff] }
 0x114   : > { %1745 = vmatmul.mubr.f32.gmra.mrb[16].mxu1 %v881_v11  ;;  %3547 = vmatprep.subr.bf16.mxu0 %v4210_v0  ;;  %v1255_v11 = vld [vmem:[%s6471_s1 + $0x2c0] sm:$0xff]  ;;  %v1079_v40 = vmul.f32 %v5050_v62, %v551_v33 }
 0x115   : > { %2485 = vmatmul.mubr.f32.gmra.mrb[16].mxu0 %v889_v14  ;;  %1749 = vmatprep.mubr.f32.mxu1 %v900_v15  ;;  %v1383_v14 = vld [vmem:[%s6471_s1 + $0x6c0] sm:$0xff]  ;;  %v1384_v15 = vld [vmem:[%s6471_s1 + $0x6c8] sm:$0xff] }
 0x116   : > { %2489 = vmatprep.mubr.f32.mxu0 %v908_v17  ;;  %3357 = vmatpush1.bf16.msra.mxu1 %v3356_v20  ;;  %v972_v17 = vmul.f32 %v5037_v45, %v444_v7  ;;  %v451_v20 = vld [vmem:[%s4360_s26 + $0x7a0] sm:$0xff]  ;;  %v3560_v24 = vpack.c.bf16 %v1384_v15, %v1383_v14  ;;  %v1034_v7 = vmul.f32 %v5045_v60, %v506_v46  ;;  %v606_v46 = vld [vmem:[%s4360_s26 + $0xc78] sm:$0xff] }
 0x117   : > { %3549 = vmatpush1.bf16.msra.mxu0 %v3548_v22  ;;  %3358 = vmatprep.subr.bf16.mxu1 %v4210_v0  ;;  %v3368_v22 = vpack.c.bf16 %v1256_v12, %v1255_v11  ;;  %v979_v31 = vmul.f32 %v5056_v2, %v451_v20  ;;  %v524_v11 = vld [vmem:[%s4360_s26 + $0x9e8] sm:$0xff]  ;;  %v1044_v15 = vmul.f32 %v5037_v45, %v516_v9  ;;  %v542_v20 = vld [vmem:[%s4360_s26 + $0xa78] sm:$0xff]  ;;  %v663_v9 = vsub.s32 4, %v4434_v30 }
 0x118   : > { %1750 = vmatmul.mubr.f32.gmra.mrb[18].mxu1 %v899_v25  ;;  %3550 = vmatprep.subr.bf16.mxu0 %v4210_v0  ;;  %v1257_v25 = vld [vmem:[%s6471_s1 + $0x2d0] sm:$0xff] }
 0x119   : > { %2490 = vmatmul.mubr.f32.gmra.mrb[18].mxu0 %v907_v28  ;;  %1754 = vmatprep.mubr.f32.mxu1 %v918_v29  ;;  %v1385_v28 = vld [vmem:[%s6471_s1 + $0x6d0] sm:$0xff]  ;;  %v1386_v29 = vld [vmem:[%s6471_s1 + $0x6d8] sm:$0xff] }
 0x11a   : > { %2494 = vmatprep.mubr.f32.mxu0 %v926_v32  ;;  %3360 = vmatpush1.bf16.msra.mxu1 %v3359_v35  ;;  %v990_v32 = vmul.f32 %v5037_v45, %v462_v21  ;;  %v469_v35 = vld [vmem:[%s4360_s26 + $0x830] sm:$0xff]  ;;  %v3563_v41 = vpack.c.bf16 %v1386_v29, %v1385_v28  ;;  %v560_v28 = vld [vmem:[%s4360_s26 + $0xb08] sm:$0xff] }
 0x11b   : > { %3552 = vmatpush1.bf16.msra.mxu0 %v3551_v38  ;;  %3361 = vmatprep.subr.bf16.mxu1 %v4210_v0  ;;  %v3371_v38 = vpack.c.bf16 %v1258_v26, %v1257_v25  ;;  %v997_v52 = vmul.f32 %v5056_v2, %v469_v35  ;;  %v1070_v25 = vmul.f32 %v5045_v60, %v542_v20  ;;  %v541_v26 = vld [vmem:[%s4360_s26 + $0xa70] sm:$0xff]  ;;  %v559_v35 = vld [vmem:[%s4360_s26 + $0xb00] sm:$0xff] }
 0x11c   : > { %1755 = vmatmul.mubr.f32.gmra.mrb[20].mxu1 %v917_v42  ;;  %3553 = vmatprep.subr.bf16.mxu0 %v4210_v0  ;;  %v1259_v42 = vld [vmem:[%s6471_s1 + $0x2e0] sm:$0xff] }
 0x11d   : > { %2495 = vmatmul.mubr.f32.gmra.mrb[20].mxu0 %v925_v47  ;;  %1759 = vmatprep.mubr.f32.mxu1 %v936_v51  ;;  %v1387_v47 = vld [vmem:[%s6471_s1 + $0x6e0] sm:$0xff]  ;;  %v1388_v51 = vld [vmem:[%s6471_s1 + $0x6e8] sm:$0xff] }
 0x11e   : > { %2499 = vmatprep.mubr.f32.mxu0 %v944_v54  ;;  %3363 = vmatpush1.bf16.msra.mxu1 %v3362_v57  ;;  %v1008_v54 = vmul.f32 %v5037_v45, %v480_v36  ;;  %v487_v57 = vld [vmem:[%s4360_s26 + $0x8c0] sm:$0xff]  ;;  %v3566_v50 = vpack.c.bf16 %v1388_v51, %v1387_v47  ;;  %v570_v36 = vld [vmem:[%s4360_s26 + $0xb58] sm:$0xff]  ;;  %v577_v47 = vld [vmem:[%s4360_s26 + $0xb90] sm:$0xff] }
 0x11f   : > { %3555 = vmatpush1.bf16.msra.mxu0 %v3554_v61  ;;  %3364 = vmatprep.subr.bf16.mxu1 %v4210_v0  ;;  %v3374_v61 = vpack.c.bf16 %v1260_v43, %v1259_v42  ;;  %v1015_v53 = vmul.f32 %v5056_v2, %v487_v57  ;;  %v1098_v42 = vmul.f32 %v5037_v45, %v570_v36  ;;  %v569_v43 = vld [vmem:[%s4360_s26 + $0xb50] sm:$0xff]  ;;  %v588_v51 = vld [vmem:[%s4360_s26 + $0xbe8] sm:$0xff]  ;;  %v587_v57 = vld [vmem:[%s4360_s26 + $0xbe0] sm:$0xff] }
 0x120   : > { %1760 = vmatmul.mubr.f32.gmra.mrb[22].mxu1 %v935_v63  ;;  %3556 = vmatprep.subr.bf16.mxu0 %v4210_v0  ;;  %v1261_v63 = vld [vmem:[%s6471_s1 + $0x2f0] sm:$0xff]  ;;  %v1105_v55 = vmul.f32 %v5056_v2, %v577_v47 }
 0x121   : > { %2500 = vmatmul.mubr.f32.gmra.mrb[22].mxu0 %v943_v4  ;;  %1764 = vmatprep.mubr.f32.mxu1 %v954_v49  ;;  %v1389_v4 = vld [vmem:[%s6471_s1 + $0x6f0] sm:$0xff]  ;;  %v1390_v49 = vld [vmem:[%s6471_s1 + $0x6f8] sm:$0xff] }
 0x122   : > { %2504 = vmatprep.mubr.f32.mxu0 %v962_v5  ;;  %3366 = vmatpush1.bf16.msra.mxu1 %v3365_v8  ;;  %v1026_v5 = vmul.f32 %v5037_v45, %v498_v58  ;;  %v505_v8 = vld [vmem:[%s4360_s26 + $0x950] sm:$0xff]  ;;  %v3569_v12 = vpack.c.bf16 %v1390_v49, %v1389_v4  ;;  %v667_v49 = vsub.s32 5, %v4434_v30 }
 0x123   : > { %3558 = vmatpush1.bf16.msra.mxu0 %v3557_v10  ;;  %3367 = vmatprep.subr.bf16.mxu1 %v4210_v0  ;;  %v3377_v10 = vpack.c.bf16 %v1262_v1, %v1261_v63  ;;  %v1033_v14 = vmul.f32 %v5056_v2, %v505_v8  ;;  %v1115_v63 = vmul.f32 %v5050_v62, %v587_v57  ;;  %v605_v4 = vld [vmem:[%s4360_s26 + $0xc70] sm:$0xff]  ;;  %v266_v57 = vld [vmem:[%s4360_s26 + $0x1d8] sm:$0xff] }
 0x124   : > { %1765 = vmatmul.mubr.f32.gmra.mrb[24].mxu1 %v953_v13  ;;  %3559 = vmatprep.subr.bf16.mxu0 %v4210_v0  ;;  %v1025_v13 = vmul.f32 %v5050_v62, %v497_v6  ;;  %v624_v6 = vld [vmem:[%s4360_s26 + $0xd08] sm:$0xff]  ;;  %v1133_v8 = vmul.f32 %v5050_v62, %v605_v4 }
 0x125   : > { %2505 = vmatmul.mubr.f32.gmra.mrb[24].mxu0 %v961_v16  ;;  %1769 = vmatprep.mubr.f32.mxu1 %v972_v17  ;;  %v515_v16 = vld [vmem:[%s4360_s26 + $0x9a0] sm:$0xff]  ;;  %v1052_v17 = vmul.f32 %v5045_v60, %v524_v11  ;;  %v1152_v11 = vmul.f32 %v5037_v45, %v624_v6  ;;  %v273_v6 = vld [vmem:[%s4360_s26 + $0x210] sm:$0xff] }
 0x126   : > { %2509 = vmatprep.mubr.f32.mxu0 %v980_v19  ;;  %3369 = vmatpush1.bf16.msra.mxu1 %v3368_v22  ;;  %v534_v19 = vld [vmem:[%s4360_s26 + $0xa38] sm:$0xff]  ;;  %v1043_v21 = vmul.f32 %v5050_v62, %v515_v16  ;;  %v1051_v22 = vmul.f32 %v5056_v2, %v523_v18  ;;  %v212_v16 = vld [vmem:[%s4360_s26 + $0x28] sm:$0xff] }
 0x127   : > { %3561 = vmatpush1.bf16.msra.mxu0 %v3560_v24  ;;  %3370 = vmatprep.subr.bf16.mxu1 %v4210_v0  ;;  %v1062_v23 = vmul.f32 %v5037_v45, %v534_v19  ;;  %v533_v24 = vld [vmem:[%s4360_s26 + $0xa30] sm:$0xff]  ;;  %v220_v18 = vld [vmem:[%s4360_s26 + $0x68] sm:$0xff] }
 0x128   : > { %1770 = vmatmul.mubr.f32.gmra.mrb[26].mxu1 %v971_v27  ;;  %3562 = vmatprep.subr.bf16.mxu0 %v4210_v0  ;;  %v552_v27 = vld [vmem:[%s4360_s26 + $0xac8] sm:$0xff]  ;;  %v1061_v29 = vmul.f32 %v5050_v62, %v533_v24  ;;  %v219_v24 = vld [vmem:[%s4360_s26 + $0x60] sm:$0xff] }
 0x129   : > { %2510 = vmatmul.mubr.f32.gmra.mrb[26].mxu0 %v979_v31  ;;  %1774 = vmatprep.mubr.f32.mxu1 %v990_v32  ;;  %v1069_v31 = vmul.f32 %v5056_v2, %v541_v26  ;;  %v1080_v32 = vmul.f32 %v5037_v45, %v552_v27  ;;  %v238_v27 = vld [vmem:[%s4360_s26 + $0xf8] sm:$0xff] }
 0x12a   : > { %2514 = vmatprep.mubr.f32.mxu0 %v998_v34  ;;  %3372 = vmatpush1.bf16.msra.mxu1 %v3371_v38  ;;  %v1088_v34 = vmul.f32 %v5045_v60, %v560_v28  ;;  %v578_v38 = vld [vmem:[%s4360_s26 + $0xb98] sm:$0xff] }
 0x12b   : > { %3564 = vmatpush1.bf16.msra.mxu0 %v3563_v41  ;;  %3373 = vmatprep.subr.bf16.mxu1 %v4210_v0  ;;  %v1087_v41 = vmul.f32 %v5056_v2, %v559_v35  ;;  %v248_v35 = vld [vmem:[%s4360_s26 + $0x148] sm:$0xff] }
 0x12c   : > { %1775 = vmatmul.mubr.f32.gmra.mrb[28].mxu1 %v989_v44  ;;  %3565 = vmatprep.subr.bf16.mxu0 %v4210_v0  ;;  %v1106_v44 = vmul.f32 %v5045_v60, %v578_v38  ;;  %v1265_v38 = vld [vmem:[%s6471_s1 + $0x310] sm:$0xff] }
 0x12d   : > { %2515 = vmatmul.mubr.f32.gmra.mrb[28].mxu0 %v997_v52  ;;  %1779 = vmatprep.mubr.f32.mxu1 %v1008_v54  ;;  %v596_v52 = vld [vmem:[%s4360_s26 + $0xc28] sm:$0xff]  ;;  %v1097_v54 = vmul.f32 %v5050_v62, %v569_v43  ;;  %v1393_v43 = vld [vmem:[%s6471_s1 + $0x710] sm:$0xff] }
 0x12e   : > { %2519 = vmatprep.mubr.f32.mxu0 %v1016_v48  ;;  %3375 = vmatpush1.bf16.msra.mxu1 %v3374_v61  ;;  %v1116_v48 = vmul.f32 %v5037_v45, %v588_v51  ;;  %v1124_v58 = vmul.f32 %v5045_v60, %v596_v52  ;;  %v595_v61 = vld [vmem:[%s4360_s26 + $0xc20] sm:$0xff] }
 0x12f   : > { %3567 = vmatpush1.bf16.msra.mxu0 %v3566_v50  ;;  %3376 = vmatprep.subr.bf16.mxu1 %v4210_v0  ;;  %v614_v50 = vld [vmem:[%s4360_s26 + $0xcb8] sm:$0xff]  ;;  %v1123_v1 = vmul.f32 %v5056_v2, %v595_v61  ;;  %v247_v52 = vld [vmem:[%s4360_s26 + $0x140] sm:$0xff] }
 0x130   : > { %1780 = vmatmul.mubr.f32.gmra.mrb[30].mxu1 %v1007_v3  ;;  %3568 = vmatprep.subr.bf16.mxu0 %v4210_v0  ;;  %v1134_v3 = vmul.f32 %v5037_v45, %v606_v46  ;;  %v5480_v45 = vrot.slane %v5034_v56, %v663_v9  ;;  %v274_v61 = vld [vmem:[%s4360_s26 + $0x218] sm:$0xff]  ;;  %v1267_v46 = vld [vmem:[%s6471_s1 + $0x320] sm:$0xff] }
 0x131   : > { %2520 = vmatmul.mubr.f32.gmra.mrb[30].mxu0 %v1015_v53  ;;  %1784 = vmatprep.mubr.f32.mxu1 %v1026_v5  ;;  %v1142_v53 = vmul.f32 %v5045_v60, %v614_v50  ;;  %v613_v5 = vld [vmem:[%s4360_s26 + $0xcb0] sm:$0xff] }
 0x132   : > { %2524 = vmatprep.mubr.f32.mxu0 %v1034_v7  ;;  %3378 = vmatpush1.bf16.msra.mxu1 %v3377_v10  ;;  %v632_v7 = vld [vmem:[%s4360_s26 + $0xd48] sm:$0xff]  ;;  %v1141_v10 = vmul.f32 %v5056_v2, %v613_v5  ;;  %v1268_v50 = vld [vmem:[%s6471_s1 + $0x328] sm:$0xff] }
 0x133   : > { %3570 = vmatpush1.bf16.msra.mxu0 %v3569_v12  ;;  %3379 = vmatprep.subr.bf16.mxu1 %v4210_v0  ;;  %v623_v12 = vld [vmem:[%s4360_s26 + $0xd00] sm:$0xff] }
 0x134   : > { %1785 = vmatmul.mubr.f32.gmra.mrb[32].mxu1 %v1025_v13  ;;  %3571 = vmatprep.subr.bf16.mxu0 %v4210_v0  ;;  %v5469_v13 = vrot.slane %v5034_v56, %v667_v49  ;;  %v1151_v19 = vmul.f32 %v5050_v62, %v623_v12  ;;  %v1263_v56 = vld [vmem:[%s6471_s1 + $0x300] sm:$0xff]  ;;  %v1264_v62 = vld [vmem:[%s6471_s1 + $0x308] sm:$0xff]  ;;  %v1270_v12 = vld [vmem:[%s6471_s1 + $0x338] sm:$0xff] }
 0x135   : > { %2525 = vmatmul.mubr.f32.gmra.mrb[32].mxu0 %v1033_v14  ;;  %1789 = vmatprep.mubr.f32.mxu1 %v1044_v15  ;;  %v1160_v14 = vmul.f32 %v5045_v60, %v632_v7  ;;  %v631_v15 = vld [vmem:[%s4360_s26 + $0xd40] sm:$0xff]  ;;  %v3386_v7 = vpack.c.bf16 %v1268_v50, %v1267_v46  ;;  %v1275_v46 = vld [vmem:[%s6471_s1 + $0x360] sm:$0xff]  ;;  %v1276_v50 = vld [vmem:[%s6471_s1 + $0x368] sm:$0xff] }
 0x136   : > { %2529 = vmatprep.mubr.f32.mxu0 %v1052_v17  ;;  %v5475_v17 = vrot.slane %v5042_v59, %v667_v49  ;;  %v1159_v20 = vmul.f32 %v5056_v2, %v631_v15  ;;  %v740_v60 = vmul.f32 %v5469_v13, %v212_v16  ;;  %v1392_v2 = vld [vmem:[%s6471_s1 + $0x708] sm:$0xff]  ;;  %v776_v51 = vmul.f32 %v5469_v13, %v248_v35  ;;  %v1397_v15 = vld [vmem:[%s6471_s1 + $0x730] sm:$0xff]  ;;  %v1398_v16 = vld [vmem:[%s6471_s1 + $0x738] sm:$0xff] }
 0x137   : > { %v794_v49 = vmul.f32 %v5469_v13, %v266_v57 }
 0x138   : > { %1790 = vmatmul.mubr.f32.gmra.mrb[34].mxu1 %v1043_v21  ;;  %v211_v21 = vld [vmem:[%s4360_s26 + $0x20] sm:$0xff]  ;;  %v766_v36 = vmul.f32 %v5475_v17, %v238_v27  ;;  %v802_v5 = vmul.f32 %v5475_v17, %v274_v61  ;;  %v1400_v27 = vld [vmem:[%s6471_s1 + $0x748] sm:$0xff] }
 0x139   : > { %2530 = vmatmul.mubr.f32.gmra.mrb[34].mxu0 %v1051_v22  ;;  %1794 = vmatprep.mubr.f32.mxu1 %v1062_v23  ;;  %v5486_v22 = vrot.slane %v5042_v59, %v663_v9  ;;  %v748_v23 = vmul.f32 %v5475_v17, %v220_v18  ;;  %v1391_v59 = vld [vmem:[%s6471_s1 + $0x700] sm:$0xff]  ;;  %v739_v26 = vmul.f32 %v5480_v45, %v211_v21  ;;  %v291_v21 = vld [vmem:[%s4360_s26 + $0x2a0] sm:$0xff] }
 0x13a   : > { %2534 = vmatprep.mubr.f32.mxu0 %v1070_v25  ;;  %v230_v25 = vld [vmem:[%s4360_s26 + $0xb8] sm:$0xff] }
 0x13b   : > { %v747_v28 = vmul.f32 %v5486_v22, %v219_v24  ;;  %v758_v33 = vmul.f32 %v5469_v13, %v230_v25  ;;  %v801_v18 = vmul.f32 %v5486_v22, %v273_v6  ;;  %v345_v6 = vld [vmem:[%s4360_s26 + $0x450] sm:$0xff] }
 0x13c   : > { %1795 = vmatmul.mubr.f32.gmra.mrb[36].mxu1 %v1061_v29  ;;  %v3380_v29 = vpack.c.bf16 %v1264_v62, %v1263_v56  ;;  %v310_v56 = vld [vmem:[%s4360_s26 + $0x338] sm:$0xff]  ;;  %v3581_v62 = vpack.c.bf16 %v1398_v16, %v1397_v15  ;;  %v1406_v16 = vld [vmem:[%s6471_s1 + $0x778] sm:$0xff] }
 0x13d   : > { %2535 = vmatmul.mubr.f32.gmra.mrb[36].mxu0 %v1069_v31  ;;  %1799 = vmatprep.mubr.f32.mxu1 %v1080_v32  ;;  %v229_v31 = vld [vmem:[%s4360_s26 + $0xb0] sm:$0xff]  ;;  %v3572_v32 = vpack.c.bf16 %v1392_v2, %v1391_v59  ;;  %v1405_v15 = vld [vmem:[%s6471_s1 + $0x770] sm:$0xff] }
 0x13e   : > { %2539 = vmatprep.mubr.f32.mxu0 %v1088_v34  ;;  %v237_v34 = vld [vmem:[%s4360_s26 + $0xf0] sm:$0xff] }
 0x13f   : > { %v765_v47 = vmul.f32 %v5486_v22, %v237_v34  ;;  %v1271_v59 = vld [vmem:[%s6471_s1 + $0x340] sm:$0xff]  ;;  %v1272_v2 = vld [vmem:[%s6471_s1 + $0x348] sm:$0xff] }
 0x140   : > { %1800 = vmatmul.mubr.f32.gmra.mrb[38].mxu1 %v1079_v40  ;;  %v1266_v40 = vld [vmem:[%s6471_s1 + $0x318] sm:$0xff]  ;;  %v3392_v35 = vpack.c.bf16 %v1272_v2, %v1271_v59  ;;  %v1279_v59 = vld [vmem:[%s6471_s1 + $0x380] sm:$0xff]  ;;  %v1280_v2 = vld [vmem:[%s6471_s1 + $0x388] sm:$0xff] }
 0x141   : > { %2540 = vmatmul.mubr.f32.gmra.mrb[38].mxu0 %v1087_v41  ;;  %1804 = vmatprep.mubr.f32.mxu1 %v1098_v42  ;;  %v256_v41 = vld [vmem:[%s4360_s26 + $0x188] sm:$0xff]  ;;  %v757_v42 = vmul.f32 %v5480_v45, %v229_v31  ;;  %v301_v31 = vld [vmem:[%s4360_s26 + $0x2f0] sm:$0xff] }
 0x142   : > { %2544 = vmatprep.mubr.f32.mxu0 %v1106_v44  ;;  %v1394_v44 = vld [vmem:[%s6471_s1 + $0x718] sm:$0xff] }
 0x143   : > { %v320_v34 = vld [vmem:[%s4360_s26 + $0x388] sm:$0xff] }
 0x144   : > { %1805 = vmatmul.mubr.f32.gmra.mrb[40].mxu1 %v1097_v54  ;;  %v3383_v54 = vpack.c.bf16 %v1266_v40, %v1265_v38  ;;  %v1273_v40 = vld [vmem:[%s6471_s1 + $0x350] sm:$0xff] }
 0x145   : > { %2545 = vmatmul.mubr.f32.gmra.mrb[40].mxu0 %v1105_v55  ;;  %1809 = vmatprep.mubr.f32.mxu1 %v1116_v48  ;;  %v784_v55 = vmul.f32 %v5475_v17, %v256_v41  ;;  %v255_v48 = vld [vmem:[%s4360_s26 + $0x180] sm:$0xff] }
 0x146   : > { %2549 = vmatprep.mubr.f32.mxu0 %v1124_v58  ;;  %v3575_v58 = vpack.c.bf16 %v1394_v44, %v1393_v43  ;;  %v783_v4 = vmul.f32 %v5486_v22, %v255_v48  ;;  %v1274_v41 = vld [vmem:[%s6471_s1 + $0x358] sm:$0xff]  ;;  %v1401_v43 = vld [vmem:[%s6471_s1 + $0x750] sm:$0xff] }
 0x147   : > { %v1402_v44 = vld [vmem:[%s6471_s1 + $0x758] sm:$0xff]  ;;  %v338_v48 = vld [vmem:[%s4360_s26 + $0x418] sm:$0xff]  ;;  %v3395_v57 = vpack.c.bf16 %v1274_v41, %v1273_v40 }
 0x148   : > { %1810 = vmatmul.mubr.f32.gmra.mrb[42].mxu1 %v1115_v63  ;;  %v775_v63 = vmul.f32 %v5480_v45, %v247_v52  ;;  %v319_v52 = vld [vmem:[%s4360_s26 + $0x380] sm:$0xff]  ;;  %v3587_v61 = vpack.c.bf16 %v1402_v44, %v1401_v43 }
 0x149   : > { %2550 = vmatmul.mubr.f32.gmra.mrb[42].mxu0 %v1123_v1  ;;  %1814 = vmatprep.mubr.f32.mxu1 %v1134_v3  ;;  %v1395_v1 = vld [vmem:[%s6471_s1 + $0x720] sm:$0xff]  ;;  %v1396_v3 = vld [vmem:[%s6471_s1 + $0x728] sm:$0xff]  ;;  %v1281_v40 = vld [vmem:[%s6471_s1 + $0x390] sm:$0xff] }
 0x14a   : > { %2554 = vmatprep.mubr.f32.mxu0 %v1142_v53  ;;  %v265_v53 = vld [vmem:[%s4360_s26 + $0x1d0] sm:$0xff]  ;;  %v3578_v9 = vpack.c.bf16 %v1396_v3, %v1395_v1  ;;  %v1282_v41 = vld [vmem:[%s6471_s1 + $0x398] sm:$0xff]  ;;  %v1409_v43 = vld [vmem:[%s6471_s1 + $0x790] sm:$0xff] }
 0x14b   : > { %v1403_v1 = vld [vmem:[%s6471_s1 + $0x760] sm:$0xff]  ;;  %v1404_v3 = vld [vmem:[%s6471_s1 + $0x768] sm:$0xff]  ;;  %v1410_v44 = vld [vmem:[%s6471_s1 + $0x798] sm:$0xff] }
 0x14c   : > { %1815 = vmatmul.mubr.f32.gmra.mrb[44].mxu1 %v1133_v8  ;;  %v284_v8 = vld [vmem:[%s4360_s26 + $0x268] sm:$0xff] }
 0x14d   : > { %2555 = vmatmul.mubr.f32.gmra.mrb[44].mxu0 %v1141_v10  ;;  %1819 = vmatprep.mubr.f32.mxu1 %v1152_v11  ;;  %v292_v10 = vld [vmem:[%s4360_s26 + $0x2a8] sm:$0xff]  ;;  %v1269_v11 = vld [vmem:[%s6471_s1 + $0x330] sm:$0xff] }
 0x14e   : > { %2559 = vmatprep.mubr.f32.mxu0 %v1160_v14  ;;  %v793_v14 = vmul.f32 %v5480_v45, %v265_v53  ;;  %v3389_v24 = vpack.c.bf16 %v1270_v12, %v1269_v11  ;;  %v337_v53 = vld [vmem:[%s4360_s26 + $0x410] sm:$0xff]  ;;  %v1277_v11 = vld [vmem:[%s6471_s1 + $0x370] sm:$0xff]  ;;  %v1278_v12 = vld [vmem:[%s6471_s1 + $0x378] sm:$0xff] }
 0x150   : > { %1820 = vmatmul.mubr.f32.gmra.mrb[46].mxu1 %v1151_v19  ;;  %v812_v19 = vmul.f32 %v5469_v13, %v284_v8  ;;  %v3398_v8 = vpack.c.bf16 %v1276_v50, %v1275_v46  ;;  %v1283_v46 = vld [vmem:[%s6471_s1 + $0x3a0] sm:$0xff]  ;;  %v1284_v50 = vld [vmem:[%s6471_s1 + $0x3a8] sm:$0xff] }
 0x151   : > { %2560 = vmatmul.mubr.f32.gmra.mrb[46].mxu0 %v1159_v20  ;;  %1889 = vmatprep.mubr.f32.mxu1 %v740_v60  ;;  %v283_v20 = vld [vmem:[%s4360_s26 + $0x260] sm:$0xff]  ;;  %v820_v60 = vmul.f32 %v5475_v17, %v292_v10  ;;  %v3590_v10 = vpack.c.bf16 %v1404_v3, %v1403_v1  ;;  %v1411_v1 = vld [vmem:[%s6471_s1 + $0x7a0] sm:$0xff]  ;;  %v1412_v3 = vld [vmem:[%s6471_s1 + $0x7a8] sm:$0xff] }
 0x152   : > { %2629 = vmatprep.mubr.f32.mxu0 %v748_v23  ;;  %v302_v23 = vld [vmem:[%s4360_s26 + $0x2f8] sm:$0xff]  ;;  %v811_v25 = vmul.f32 %v5480_v45, %v283_v20  ;;  %v355_v20 = vld [vmem:[%s4360_s26 + $0x4a0] sm:$0xff] }
 0x154   : > { %1890 = vmatmul.mubr.f32.vlgmr.msra.gmra.mrb[0].mxu1 %v739_v26  ;;  %v1399_v26 = vld [vmem:[%s6471_s1 + $0x740] sm:$0xff] }
 0x155   : > { %2630 = vmatmul.mubr.f32.vlgmr.msra.gmra.mrb[0].mxu0 %v747_v28  ;;  %3381 = vmatpush1.bf16.msra.mxu1 %v3380_v29  ;;  %v819_v28 = vmul.f32 %v5486_v22, %v291_v21  ;;  %v830_v29 = vmul.f32 %v5469_v13, %v302_v23  ;;  %v3584_v38 = vpack.c.bf16 %v1400_v27, %v1399_v26  ;;  %v363_v21 = vld [vmem:[%s4360_s26 + $0x4e0] sm:$0xff]  ;;  %v374_v23 = vld [vmem:[%s4360_s26 + $0x538] sm:$0xff]  ;;  %v1407_v26 = vld [vmem:[%s6471_s1 + $0x780] sm:$0xff] }
 0x156   : > { %3573 = vmatpush1.bf16.msra.mxu0 %v3572_v32  ;;  %1894 = vmatprep.mubr.f32.mxu1 %v758_v33  ;;  %v838_v32 = vmul.f32 %v5475_v17, %v310_v56  ;;  %v309_v33 = vld [vmem:[%s4360_s26 + $0x330] sm:$0xff]  ;;  %v382_v56 = vld [vmem:[%s4360_s26 + $0x578] sm:$0xff] }
 0x157   : > { %2634 = vmatprep.mubr.f32.mxu0 %v766_v36  ;;  %3382 = vmatprep.subr.bf16.mxu1 %v4210_v0  ;;  %v328_v36 = vld [vmem:[%s4360_s26 + $0x3c8] sm:$0xff]  ;;  %v1408_v27 = vld [vmem:[%s6471_s1 + $0x788] sm:$0xff] }
 0x158   : > { %1895 = vmatmul.mubr.f32.gmra.mrb[2].mxu1 %v757_v42  ;;  %3574 = vmatprep.subr.bf16.mxu0 %v4210_v0  ;;  %v829_v42 = vmul.f32 %v5480_v45, %v301_v31  ;;  %v373_v31 = vld [vmem:[%s4360_s26 + $0x530] sm:$0xff] }
 0x159   : > { %2635 = vmatmul.mubr.f32.gmra.mrb[2].mxu0 %v765_v47  ;;  %1899 = vmatprep.mubr.f32.mxu1 %v776_v51  ;;  %v837_v47 = vmul.f32 %v5486_v22, %v309_v33  ;;  %v848_v51 = vmul.f32 %v5469_v13, %v320_v34  ;;  %v381_v33 = vld [vmem:[%s4360_s26 + $0x570] sm:$0xff]  ;;  %v392_v34 = vld [vmem:[%s4360_s26 + $0x5c8] sm:$0xff] }
 0x15a   : > { %3384 = vmatpush1.bf16.msra.mxu1 %v3383_v54  ;;  %2639 = vmatprep.mubr.f32.mxu0 %v784_v55  ;;  %v856_v54 = vmul.f32 %v5475_v17, %v328_v36  ;;  %v327_v55 = vld [vmem:[%s4360_s26 + $0x3c0] sm:$0xff]  ;;  %v400_v36 = vld [vmem:[%s4360_s26 + $0x608] sm:$0xff] }
 0x15b   : > { %3576 = vmatpush1.bf16.msra.mxu0 %v3575_v58  ;;  %3385 = vmatprep.subr.bf16.mxu1 %v4210_v0  ;;  %v346_v58 = vld [vmem:[%s4360_s26 + $0x458] sm:$0xff] }
 0x15c   : > { %1900 = vmatmul.mubr.f32.gmra.mrb[4].mxu1 %v775_v63  ;;  %3577 = vmatprep.subr.bf16.mxu0 %v4210_v0  ;;  %v847_v63 = vmul.f32 %v5480_v45, %v319_v52  ;;  %v391_v52 = vld [vmem:[%s4360_s26 + $0x5c0] sm:$0xff] }
 0x15d   : > { %2640 = vmatmul.mubr.f32.gmra.mrb[4].mxu0 %v783_v4  ;;  %1904 = vmatprep.mubr.f32.mxu1 %v794_v49  ;;  %v855_v4 = vmul.f32 %v5486_v22, %v327_v55  ;;  %v866_v49 = vmul.f32 %v5469_v13, %v338_v48  ;;  %v399_v55 = vld [vmem:[%s4360_s26 + $0x600] sm:$0xff]  ;;  %v410_v48 = vld [vmem:[%s4360_s26 + $0x658] sm:$0xff] }
 0x15e   : > { %2644 = vmatprep.mubr.f32.mxu0 %v802_v5  ;;  %3387 = vmatpush1.bf16.msra.mxu1 %v3386_v7  ;;  %v874_v5 = vmul.f32 %v5475_v17, %v346_v58  ;;  %v356_v7 = vld [vmem:[%s4360_s26 + $0x4a8] sm:$0xff]  ;;  %v418_v58 = vld [vmem:[%s4360_s26 + $0x698] sm:$0xff] }
 0x15f   : > { %3579 = vmatpush1.bf16.msra.mxu0 %v3578_v9  ;;  %3388 = vmatprep.subr.bf16.mxu1 %v4210_v0  ;;  %v364_v9 = vld [vmem:[%s4360_s26 + $0x4e8] sm:$0xff] }
 0x160   : > { %1905 = vmatmul.mubr.f32.gmra.mrb[6].mxu1 %v793_v14  ;;  %3580 = vmatprep.subr.bf16.mxu0 %v4210_v0  ;;  %v865_v14 = vmul.f32 %v5480_v45, %v337_v53  ;;  %v409_v53 = vld [vmem:[%s4360_s26 + $0x650] sm:$0xff] }
 0x161   : > { %2645 = vmatmul.mubr.f32.gmra.mrb[6].mxu0 %v801_v18  ;;  %1909 = vmatprep.mubr.f32.mxu1 %v812_v19  ;;  %v873_v18 = vmul.f32 %v5486_v22, %v345_v6  ;;  %v884_v19 = vmul.f32 %v5469_v13, %v356_v7  ;;  %v417_v6 = vld [vmem:[%s4360_s26 + $0x690] sm:$0xff]  ;;  %v428_v7 = vld [vmem:[%s4360_s26 + $0x6e8] sm:$0xff] }
 0x162   : > { %2649 = vmatprep.mubr.f32.mxu0 %v820_v60  ;;  %3390 = vmatpush1.bf16.msra.mxu1 %v3389_v24  ;;  %v892_v60 = vmul.f32 %v5475_v17, %v364_v9  ;;  %v3401_v24 = vpack.c.bf16 %v1278_v12, %v1277_v11  ;;  %v436_v9 = vld [vmem:[%s4360_s26 + $0x728] sm:$0xff]  ;;  %v1285_v11 = vld [vmem:[%s6471_s1 + $0x3b0] sm:$0xff] }
 0x163   : > { %3582 = vmatpush1.bf16.msra.mxu0 %v3581_v62  ;;  %3391 = vmatprep.subr.bf16.mxu1 %v4210_v0  ;;  %v3593_v62 = vpack.c.bf16 %v1406_v16, %v1405_v15  ;;  %v1286_v12 = vld [vmem:[%s6471_s1 + $0x3b8] sm:$0xff]  ;;  %v1413_v15 = vld [vmem:[%s6471_s1 + $0x7b0] sm:$0xff] }
 0x164   : > { %1910 = vmatmul.mubr.f32.gmra.mrb[8].mxu1 %v811_v25  ;;  %3583 = vmatprep.subr.bf16.mxu0 %v4210_v0  ;;  %v883_v25 = vmul.f32 %v5480_v45, %v355_v20  ;;  %v1414_v16 = vld [vmem:[%s6471_s1 + $0x7b8] sm:$0xff] }
 0x165   : > { %2650 = vmatmul.mubr.f32.gmra.mrb[8].mxu0 %v819_v28  ;;  %1914 = vmatprep.mubr.f32.mxu1 %v830_v29  ;;  %v891_v28 = vmul.f32 %v5486_v22, %v363_v21  ;;  %v902_v29 = vmul.f32 %v5469_v13, %v374_v23  ;;  %v427_v20 = vld [vmem:[%s4360_s26 + $0x6e0] sm:$0xff]  ;;  %v446_v23 = vld [vmem:[%s4360_s26 + $0x778] sm:$0xff] }
 0x166   : > { %2654 = vmatprep.mubr.f32.mxu0 %v838_v32  ;;  %3393 = vmatpush1.bf16.msra.mxu1 %v3392_v35  ;;  %v910_v32 = vmul.f32 %v5475_v17, %v382_v56  ;;  %v3404_v35 = vpack.c.bf16 %v1280_v2, %v1279_v59  ;;  %v435_v21 = vld [vmem:[%s4360_s26 + $0x720] sm:$0xff]  ;;  %v454_v56 = vld [vmem:[%s4360_s26 + $0x7b8] sm:$0xff]  ;;  %v1287_v59 = vld [vmem:[%s6471_s1 + $0x3c0] sm:$0xff] }
 0x167   : > { %3585 = vmatpush1.bf16.msra.mxu0 %v3584_v38  ;;  %3394 = vmatprep.subr.bf16.mxu1 %v4210_v0  ;;  %v3596_v38 = vpack.c.bf16 %v1408_v27, %v1407_v26  ;;  %v1288_v2 = vld [vmem:[%s6471_s1 + $0x3c8] sm:$0xff]  ;;  %v1415_v26 = vld [vmem:[%s6471_s1 + $0x7c0] sm:$0xff] }
 0x168   : > { %1915 = vmatmul.mubr.f32.gmra.mrb[10].mxu1 %v829_v42  ;;  %3586 = vmatprep.subr.bf16.mxu0 %v4210_v0  ;;  %v901_v42 = vmul.f32 %v5480_v45, %v373_v31  ;;  %v1416_v27 = vld [vmem:[%s6471_s1 + $0x7c8] sm:$0xff] }
 0x169   : > { %2655 = vmatmul.mubr.f32.gmra.mrb[10].mxu0 %v837_v47  ;;  %1919 = vmatprep.mubr.f32.mxu1 %v848_v51  ;;  %v909_v47 = vmul.f32 %v5486_v22, %v381_v33  ;;  %v920_v51 = vmul.f32 %v5469_v13, %v392_v34  ;;  %v445_v31 = vld [vmem:[%s4360_s26 + $0x770] sm:$0xff]  ;;  %v464_v34 = vld [vmem:[%s4360_s26 + $0x808] sm:$0xff] }
 0x16a   : > { %2659 = vmatprep.mubr.f32.mxu0 %v856_v54  ;;  %3396 = vmatpush1.bf16.msra.mxu1 %v3395_v57  ;;  %v928_v54 = vmul.f32 %v5475_v17, %v400_v36  ;;  %v3407_v57 = vpack.c.bf16 %v1282_v41, %v1281_v40  ;;  %v453_v33 = vld [vmem:[%s4360_s26 + $0x7b0] sm:$0xff]  ;;  %v472_v36 = vld [vmem:[%s4360_s26 + $0x848] sm:$0xff]  ;;  %v1289_v40 = vld [vmem:[%s6471_s1 + $0x3d0] sm:$0xff] }
 0x16b   : > { %3588 = vmatpush1.bf16.msra.mxu0 %v3587_v61  ;;  %3397 = vmatprep.subr.bf16.mxu1 %v4210_v0  ;;  %v3599_v61 = vpack.c.bf16 %v1410_v44, %v1409_v43  ;;  %v1290_v41 = vld [vmem:[%s6471_s1 + $0x3d8] sm:$0xff]  ;;  %v1417_v43 = vld [vmem:[%s6471_s1 + $0x7d0] sm:$0xff] }
 0x16c   : > { %1920 = vmatmul.mubr.f32.gmra.mrb[12].mxu1 %v847_v63  ;;  %3589 = vmatprep.subr.bf16.mxu0 %v4210_v0  ;;  %v919_v63 = vmul.f32 %v5480_v45, %v391_v52  ;;  %v1418_v44 = vld [vmem:[%s6471_s1 + $0x7d8] sm:$0xff] }
 0x16d   : > { %2660 = vmatmul.mubr.f32.gmra.mrb[12].mxu0 %v855_v4  ;;  %1924 = vmatprep.mubr.f32.mxu1 %v866_v49  ;;  %v927_v4 = vmul.f32 %v5486_v22, %v399_v55  ;;  %v938_v49 = vmul.f32 %v5469_v13, %v410_v48  ;;  %v463_v52 = vld [vmem:[%s4360_s26 + $0x800] sm:$0xff]  ;;  %v482_v48 = vld [vmem:[%s4360_s26 + $0x898] sm:$0xff] }
 0x16e   : > { %2664 = vmatprep.mubr.f32.mxu0 %v874_v5  ;;  %3399 = vmatpush1.bf16.msra.mxu1 %v3398_v8  ;;  %v946_v5 = vmul.f32 %v5475_v17, %v418_v58  ;;  %v3410_v8 = vpack.c.bf16 %v1284_v50, %v1283_v46  ;;  %v471_v55 = vld [vmem:[%s4360_s26 + $0x840] sm:$0xff]  ;;  %v490_v58 = vld [vmem:[%s4360_s26 + $0x8d8] sm:$0xff]  ;;  %v1291_v46 = vld [vmem:[%s6471_s1 + $0x3e0] sm:$0xff] }
 0x16f   : > { %3591 = vmatpush1.bf16.msra.mxu0 %v3590_v10  ;;  %3400 = vmatprep.subr.bf16.mxu1 %v4210_v0  ;;  %v3602_v10 = vpack.c.bf16 %v1412_v3, %v1411_v1  ;;  %v1292_v50 = vld [vmem:[%s6471_s1 + $0x3e8] sm:$0xff]  ;;  %v1419_v1 = vld [vmem:[%s6471_s1 + $0x7e0] sm:$0xff] }
 0x170   : > { %1925 = vmatmul.mubr.f32.gmra.mrb[14].mxu1 %v865_v14  ;;  %3592 = vmatprep.subr.bf16.mxu0 %v4210_v0  ;;  %v937_v14 = vmul.f32 %v5480_v45, %v409_v53  ;;  %v1420_v3 = vld [vmem:[%s6471_s1 + $0x7e8] sm:$0xff] }
 0x171   : > { %2665 = vmatmul.mubr.f32.gmra.mrb[14].mxu0 %v873_v18  ;;  %1929 = vmatprep.mubr.f32.mxu1 %v884_v19  ;;  %v945_v18 = vmul.f32 %v5486_v22, %v417_v6  ;;  %v956_v19 = vmul.f32 %v5469_v13, %v428_v7  ;;  %v481_v53 = vld [vmem:[%s4360_s26 + $0x890] sm:$0xff]  ;;  %v500_v7 = vld [vmem:[%s4360_s26 + $0x928] sm:$0xff] }
 0x172   : > { %2669 = vmatprep.mubr.f32.mxu0 %v892_v60  ;;  %3402 = vmatpush1.bf16.msra.mxu1 %v3401_v24  ;;  %v964_v60 = vmul.f32 %v5475_v17, %v436_v9  ;;  %v3413_v24 = vpack.c.bf16 %v1286_v12, %v1285_v11  ;;  %v489_v6 = vld [vmem:[%s4360_s26 + $0x8d0] sm:$0xff]  ;;  %v508_v9 = vld [vmem:[%s4360_s26 + $0x968] sm:$0xff]  ;;  %v1293_v11 = vld [vmem:[%s6471_s1 + $0x3f0] sm:$0xff] }
 0x173   : > { %3594 = vmatpush1.bf16.msra.mxu0 %v3593_v62  ;;  %3403 = vmatprep.subr.bf16.mxu1 %v4210_v0  ;;  %v3605_v62 = vpack.c.bf16 %v1414_v16, %v1413_v15  ;;  %v1294_v12 = vld [vmem:[%s6471_s1 + $0x3f8] sm:$0xff]  ;;  %v1421_v15 = vld [vmem:[%s6471_s1 + $0x7f0] sm:$0xff] }
 0x174   : > { %1930 = vmatmul.mubr.f32.gmra.mrb[16].mxu1 %v883_v25  ;;  %3595 = vmatprep.subr.bf16.mxu0 %v4210_v0  ;;  %v955_v25 = vmul.f32 %v5480_v45, %v427_v20  ;;  %v1422_v16 = vld [vmem:[%s6471_s1 + $0x7f8] sm:$0xff] }
 0x175   : > { %2670 = vmatmul.mubr.f32.gmra.mrb[16].mxu0 %v891_v28  ;;  %1934 = vmatprep.mubr.f32.mxu1 %v902_v29  ;;  %v963_v28 = vmul.f32 %v5486_v22, %v435_v21  ;;  %v974_v29 = vmul.f32 %v5469_v13, %v446_v23  ;;  %v499_v20 = vld [vmem:[%s4360_s26 + $0x920] sm:$0xff]  ;;  %v518_v23 = vld [vmem:[%s4360_s26 + $0x9b8] sm:$0xff] }
 0x176   : > { %2674 = vmatprep.mubr.f32.mxu0 %v910_v32  ;;  %3405 = vmatpush1.bf16.msra.mxu1 %v3404_v35  ;;  %v982_v32 = vmul.f32 %v5475_v17, %v454_v56  ;;  %v3416_v35 = vpack.c.bf16 %v1288_v2, %v1287_v59  ;;  %v507_v21 = vld [vmem:[%s4360_s26 + $0x960] sm:$0xff]  ;;  %v526_v56 = vld [vmem:[%s4360_s26 + $0x9f8] sm:$0xff]  ;;  %v1027_v59 = vmul.f32 %v5480_v45, %v499_v20 }
 0x177   : > { %3597 = vmatpush1.bf16.msra.mxu0 %v3596_v38  ;;  %3406 = vmatprep.subr.bf16.mxu1 %v4210_v0  ;;  %v3608_v38 = vpack.c.bf16 %v1416_v27, %v1415_v26  ;;  %v1035_v2 = vmul.f32 %v5486_v22, %v507_v21  ;;  %v517_v26 = vld [vmem:[%s4360_s26 + $0x9b0] sm:$0xff]  ;;  %v1054_v27 = vmul.f32 %v5475_v17, %v526_v56 }
 0x178   : > { %1935 = vmatmul.mubr.f32.gmra.mrb[18].mxu1 %v901_v42  ;;  %3598 = vmatprep.subr.bf16.mxu0 %v4210_v0  ;;  %v973_v42 = vmul.f32 %v5480_v45, %v445_v31  ;;  %v544_v31 = vld [vmem:[%s4360_s26 + $0xa88] sm:$0xff] }
 0x179   : > { %2675 = vmatmul.mubr.f32.gmra.mrb[18].mxu0 %v909_v47  ;;  %1939 = vmatprep.mubr.f32.mxu1 %v920_v51  ;;  %v981_v47 = vmul.f32 %v5486_v22, %v453_v33  ;;  %v992_v51 = vmul.f32 %v5469_v13, %v464_v34  ;;  %v4106_v56 = vld [vmem:[#allocation2] sm:$0xff] }
 0x17a   : > { %2679 = vmatprep.mubr.f32.mxu0 %v928_v54  ;;  %3408 = vmatpush1.bf16.msra.mxu1 %v3407_v57  ;;  %v1000_v54 = vmul.f32 %v5475_v17, %v472_v36  ;;  %v3419_v57 = vpack.c.bf16 %v1290_v41, %v1289_v40  ;;  %v1072_v36 = vmul.f32 %v5475_v17, %v544_v31  ;;  %v554_v40 = vld [vmem:[%s4360_s26 + $0xad8] sm:$0xff]  ;;  %v213_v31 = vld [vmem:[%s4360_s26 + $0x30] sm:$0xff] }
 0x17b   : > { %3600 = vmatpush1.bf16.msra.mxu0 %v3599_v61  ;;  %3409 = vmatprep.subr.bf16.mxu1 %v4210_v0  ;;  %v3611_v61 = vpack.c.bf16 %v1418_v44, %v1417_v43  ;;  %v562_v41 = vld [vmem:[%s4360_s26 + $0xb18] sm:$0xff]  ;;  %v1082_v44 = vmul.f32 %v5469_v13, %v554_v40 }
 0x17c   : > { %1940 = vmatmul.mubr.f32.gmra.mrb[20].mxu1 %v919_v63  ;;  %3601 = vmatprep.subr.bf16.mxu0 %v4210_v0  ;;  %v991_v63 = vmul.f32 %v5480_v45, %v463_v52  ;;  %v561_v52 = vld [vmem:[%s4360_s26 + $0xb10] sm:$0xff] }
 0x17d   : > { %2680 = vmatmul.mubr.f32.gmra.mrb[20].mxu0 %v927_v4  ;;  %1944 = vmatprep.mubr.f32.mxu1 %v938_v49  ;;  %v999_v4 = vmul.f32 %v5486_v22, %v471_v55  ;;  %v1010_v49 = vmul.f32 %v5469_v13, %v482_v48  ;;  %v580_v55 = vld [vmem:[%s4360_s26 + $0xba8] sm:$0xff] }
 0x17e   : > { %2684 = vmatprep.mubr.f32.mxu0 %v946_v5  ;;  %3411 = vmatpush1.bf16.msra.mxu1 %v3410_v8  ;;  %v1018_v5 = vmul.f32 %v5475_v17, %v490_v58  ;;  %v3422_v8 = vpack.c.bf16 %v1292_v50, %v1291_v46  ;;  %v1108_v46 = vmul.f32 %v5475_v17, %v580_v55  ;;  %v579_v50 = vld [vmem:[%s4360_s26 + $0xba0] sm:$0xff] }
 0x17f   : > { %3603 = vmatpush1.bf16.msra.mxu0 %v3602_v10  ;;  %3412 = vmatprep.subr.bf16.mxu1 %v4210_v0  ;;  %v3614_v10 = vpack.c.bf16 %v1420_v3, %v1419_v1  ;;  %v598_v1 = vld [vmem:[%s4360_s26 + $0xc38] sm:$0xff]  ;;  %v1426_v55 = vld [vmem:[%s6471_s1 + $0x818] sm:$0xff] }
 0x180   : > { %1945 = vmatmul.mubr.f32.gmra.mrb[22].mxu1 %v937_v14  ;;  %3604 = vmatprep.subr.bf16.mxu0 %v4210_v0  ;;  %v1009_v14 = vmul.f32 %v5480_v45, %v481_v53  ;;  %v589_v53 = vld [vmem:[%s4360_s26 + $0xbf0] sm:$0xff] }
 0x181   : > { %2685 = vmatmul.mubr.f32.gmra.mrb[22].mxu0 %v945_v18  ;;  %1949 = vmatprep.mubr.f32.mxu1 %v956_v19  ;;  %v1017_v18 = vmul.f32 %v5486_v22, %v489_v6  ;;  %v1028_v19 = vmul.f32 %v5469_v13, %v500_v7  ;;  %v597_v6 = vld [vmem:[%s4360_s26 + $0xc30] sm:$0xff]  ;;  %v608_v7 = vld [vmem:[%s4360_s26 + $0xc88] sm:$0xff] }
 0x182   : > { %2689 = vmatprep.mubr.f32.mxu0 %v964_v60  ;;  %3414 = vmatpush1.bf16.msra.mxu1 %v3413_v24  ;;  %v1036_v60 = vmul.f32 %v5475_v17, %v508_v9  ;;  %v3425_v24 = vpack.c.bf16 %v1294_v12, %v1293_v11  ;;  %v1117_v9 = vmul.f32 %v5480_v45, %v589_v53  ;;  %v607_v12 = vld [vmem:[%s4360_s26 + $0xc80] sm:$0xff] }
 0x183   : > { %3606 = vmatpush1.bf16.msra.mxu0 %v3605_v62  ;;  %3415 = vmatprep.subr.bf16.mxu1 %v4210_v0  ;;  %v3617_v62 = vpack.c.bf16 %v1422_v16, %v1421_v15  ;;  %v1136_v11 = vmul.f32 %v5469_v13, %v608_v7  ;;  %v615_v16 = vld [vmem:[%s4360_s26 + $0xcc0] sm:$0xff]  ;;  %v1135_v20 = vmul.f32 %v5480_v45, %v607_v12  ;;  %v294_v12 = vld [vmem:[%s4360_s26 + $0x2b8] sm:$0xff] }
 0x184   : > { %1950 = vmatmul.mubr.f32.gmra.mrb[24].mxu1 %v955_v25  ;;  %3607 = vmatprep.subr.bf16.mxu0 %v4210_v0  ;;  %v1046_v25 = vmul.f32 %v5469_v13, %v518_v23  ;;  %v1143_v21 = vmul.f32 %v5486_v22, %v615_v16  ;;  %v267_v7 = vld [vmem:[%s4360_s26 + $0x1e0] sm:$0xff] }
 0x185   : > { %2690 = vmatmul.mubr.f32.gmra.mrb[24].mxu0 %v963_v28  ;;  %1954 = vmatprep.mubr.f32.mxu1 %v974_v29  ;;  %v525_v28 = vld [vmem:[%s4360_s26 + $0x9f0] sm:$0xff]  ;;  %v536_v29 = vld [vmem:[%s4360_s26 + $0xa48] sm:$0xff] }
 0x186   : > { %2694 = vmatprep.mubr.f32.mxu0 %v982_v32  ;;  %3417 = vmatpush1.bf16.msra.mxu1 %v3416_v35  ;;  %v1045_v32 = vmul.f32 %v5480_v45, %v517_v26  ;;  %v1053_v33 = vmul.f32 %v5486_v22, %v525_v28  ;;  %v1064_v34 = vmul.f32 %v5469_v13, %v536_v29  ;;  %v535_v35 = vld [vmem:[%s4360_s26 + $0xa40] sm:$0xff]  ;;  %v4107_v26 = vld [vmem:[#allocation2 + $0x8] sm:$0xff] }
 0x187   : > { %3609 = vmatpush1.bf16.msra.mxu0 %v3608_v38  ;;  %3418 = vmatprep.subr.bf16.mxu1 %v4210_v0  ;;  %v543_v38 = vld [vmem:[%s4360_s26 + $0xa80] sm:$0xff] }
 0x188   : > { %1955 = vmatmul.mubr.f32.gmra.mrb[26].mxu1 %v973_v42  ;;  %3610 = vmatprep.subr.bf16.mxu0 %v4210_v0  ;;  %v1063_v42 = vmul.f32 %v5480_v45, %v535_v35  ;;  %v1071_v43 = vmul.f32 %v5486_v22, %v543_v38  ;;  %v232_v35 = vld [vmem:[%s4360_s26 + $0xc8] sm:$0xff] }
 0x189   : > { %2695 = vmatmul.mubr.f32.gmra.mrb[26].mxu0 %v981_v47  ;;  %1959 = vmatprep.mubr.f32.mxu1 %v992_v51  ;;  %v553_v47 = vld [vmem:[%s4360_s26 + $0xad0] sm:$0xff]  ;;  %v1090_v51 = vmul.f32 %v5475_v17, %v562_v41  ;;  %v240_v38 = vld [vmem:[%s4360_s26 + $0x108] sm:$0xff] }
 0x18a   : > { %2699 = vmatprep.mubr.f32.mxu0 %v1000_v54  ;;  %3420 = vmatpush1.bf16.msra.mxu1 %v3419_v57  ;;  %v572_v54 = vld [vmem:[%s4360_s26 + $0xb68] sm:$0xff]  ;;  %v1081_v48 = vmul.f32 %v5480_v45, %v553_v47  ;;  %v1089_v57 = vmul.f32 %v5486_v22, %v561_v52  ;;  %v250_v47 = vld [vmem:[%s4360_s26 + $0x158] sm:$0xff] }
 0x18b   : > { %3612 = vmatpush1.bf16.msra.mxu0 %v3611_v61  ;;  %3421 = vmatprep.subr.bf16.mxu1 %v4210_v0  ;;  %v1100_v58 = vmul.f32 %v5469_v13, %v572_v54  ;;  %v571_v61 = vld [vmem:[%s4360_s26 + $0xb60] sm:$0xff]  ;;  %v258_v52 = vld [vmem:[%s4360_s26 + $0x198] sm:$0xff] }
 0x18c   : > { %1960 = vmatmul.mubr.f32.gmra.mrb[28].mxu1 %v991_v63  ;;  %3613 = vmatprep.subr.bf16.mxu0 %v4210_v0  ;;  %v590_v63 = vld [vmem:[%s4360_s26 + $0xbf8] sm:$0xff]  ;;  %v1099_v3 = vmul.f32 %v5480_v45, %v571_v61  ;;  %v249_v61 = vld [vmem:[%s4360_s26 + $0x150] sm:$0xff] }
 0x18d   : > { %2700 = vmatmul.mubr.f32.gmra.mrb[28].mxu0 %v999_v4  ;;  %1964 = vmatprep.mubr.f32.mxu1 %v1010_v49  ;;  %v1107_v4 = vmul.f32 %v5486_v22, %v579_v50  ;;  %v1118_v49 = vmul.f32 %v5469_v13, %v590_v63  ;;  %v1425_v54 = vld [vmem:[%s6471_s1 + $0x810] sm:$0xff]  ;;  %v257_v63 = vld [vmem:[%s4360_s26 + $0x190] sm:$0xff] }
 0x18e   : > { %2704 = vmatprep.mubr.f32.mxu0 %v1018_v5  ;;  %3423 = vmatpush1.bf16.msra.mxu1 %v3422_v8  ;;  %v1126_v5 = vmul.f32 %v5475_v17, %v598_v1  ;;  %v616_v8 = vld [vmem:[%s4360_s26 + $0xcc8] sm:$0xff]  ;;  %v3623_v50 = vpack.c.bf16 %v1426_v55, %v1425_v54 }
 0x18f   : > { %3615 = vmatpush1.bf16.msra.mxu0 %v3614_v10  ;;  %3424 = vmatprep.subr.bf16.mxu1 %v4210_v0  ;;  %v1125_v10 = vmul.f32 %v5486_v22, %v597_v6  ;;  %v1144_v15 = vmul.f32 %v5475_v17, %v616_v8  ;;  %v268_v1 = vld [vmem:[%s4360_s26 + $0x1e8] sm:$0xff] }
 0x190   : > { %1965 = vmatmul.mubr.f32.gmra.mrb[30].mxu1 %v1009_v14  ;;  %3616 = vmatprep.subr.bf16.mxu0 %v4210_v0  ;;  %v675_v14 = vsub.s32 7, %v4434_v30 }
 0x191   : > { %2705 = vmatmul.mubr.f32.gmra.mrb[30].mxu0 %v1017_v18  ;;  %1969 = vmatprep.mubr.f32.mxu1 %v1028_v19  ;;  %v626_v18 = vld [vmem:[%s4360_s26 + $0xd18] sm:$0xff] }
 0x192   : > { %2709 = vmatprep.mubr.f32.mxu0 %v1036_v60  ;;  %3426 = vmatpush1.bf16.msra.mxu1 %v3425_v24  ;;  %v634_v19 = vld [vmem:[%s4360_s26 + $0xd58] sm:$0xff]  ;;  %v671_v60 = vsub.s32 6, %v4434_v30  ;;  %v1154_v23 = vmul.f32 %v5469_v13, %v626_v18  ;;  %v625_v24 = vld [vmem:[%s4360_s26 + $0xd10] sm:$0xff] }
 0x193   : > { %3618 = vmatpush1.bf16.msra.mxu0 %v3617_v62  ;;  %3667 = vmatprep.subr.bf16.mxu1 %v4210_v0  ;;  %v5898_v62 = vrot.slane %v4106_v56, %v675_v14  ;;  %v222_v30 = vld [vmem:[%s4360_s26 + $0x78] sm:$0xff]  ;;  %v1153_v28 = vmul.f32 %v5480_v45, %v625_v24  ;;  %v1423_v45 = vld [vmem:[%s6471_s1 + $0x800] sm:$0xff] }
 0x194   : > { %1970 = vmatmul.mubr.f32.gmra.mrb[32].mxu1 %v1027_v59  ;;  %3619 = vmatprep.subr.bf16.mxu0 %v4210_v0  ;;  %v1162_v59 = vmul.f32 %v5475_v17, %v634_v19  ;;  %v5907_v13 = vrot.slane %v4106_v56, %v671_v60  ;;  %v312_v56 = vld [vmem:[%s4360_s26 + $0x348] sm:$0xff] }
 0x195   : > { %2710 = vmatmul.mubr.f32.gmra.mrb[32].mxu0 %v1035_v2  ;;  %1974 = vmatprep.mubr.f32.mxu1 %v1046_v25  ;;  %v633_v2 = vld [vmem:[%s4360_s26 + $0xd50] sm:$0xff]  ;;  %v214_v25 = vld [vmem:[%s4360_s26 + $0x38] sm:$0xff]  ;;  %v796_v6 = vmul.f32 %v5898_v62, %v268_v1 }
 0x196   : > { %2714 = vmatprep.mubr.f32.mxu0 %v1054_v27  ;;  %v5903_v27 = vrot.slane %v4107_v26, %v675_v14  ;;  %v1161_v29 = vmul.f32 %v5486_v22, %v633_v2  ;;  %v742_v17 = vmul.f32 %v5898_v62, %v214_v25  ;;  %v1424_v22 = vld [vmem:[%s6471_s1 + $0x808] sm:$0xff]  ;;  %v777_v53 = vmul.f32 %v5907_v13, %v249_v61  ;;  %v1429_v14 = vld [vmem:[%s6471_s1 + $0x830] sm:$0xff] }
 0x197   : > { %v3620_v41 = vpack.c.bf16 %v1424_v22, %v1423_v45  ;;  %v795_v16 = vmul.f32 %v5907_v13, %v267_v7  ;;  %v1432_v2 = vld [vmem:[%s6471_s1 + $0x848] sm:$0xff]  ;;  %v1433_v45 = vld [vmem:[%s6471_s1 + $0x850] sm:$0xff]  ;;  %v1434_v22 = vld [vmem:[%s6471_s1 + $0x858] sm:$0xff] }
 0x198   : > { %1975 = vmatmul.mubr.f32.gmra.mrb[34].mxu1 %v1045_v32  ;;  %v5912_v32 = vrot.slane %v4107_v26, %v671_v60  ;;  %v822_v60 = vmul.f32 %v5903_v27, %v294_v12  ;;  %v347_v61 = vld [vmem:[%s4360_s26 + $0x460] sm:$0xff]  ;;  %v365_v7 = vld [vmem:[%s4360_s26 + $0x4f0] sm:$0xff] }
 0x199   : > { %2715 = vmatmul.mubr.f32.gmra.mrb[34].mxu0 %v1053_v33  ;;  %1979 = vmatprep.mubr.f32.mxu1 %v1064_v34  ;;  %v750_v33 = vmul.f32 %v5903_v27, %v222_v30  ;;  %v221_v34 = vld [vmem:[%s4360_s26 + $0x70] sm:$0xff]  ;;  %v1437_v1 = vld [vmem:[%s6471_s1 + $0x870] sm:$0xff] }
 0x19a   : > { %2719 = vmatprep.mubr.f32.mxu0 %v1072_v36  ;;  %v741_v36 = vmul.f32 %v5907_v13, %v213_v31  ;;  %v749_v40 = vmul.f32 %v5912_v32, %v221_v34  ;;  %v322_v31 = vld [vmem:[%s4360_s26 + $0x398] sm:$0xff] }
 0x19b   : > { %v330_v34 = vld [vmem:[%s4360_s26 + $0x3d8] sm:$0xff] }
 0x19c   : > { %1980 = vmatmul.mubr.f32.gmra.mrb[36].mxu1 %v1063_v42  ;;  %v231_v42 = vld [vmem:[%s4360_s26 + $0xc0] sm:$0xff]  ;;  %v1440_v12 = vld [vmem:[%s6471_s1 + $0x888] sm:$0xff] }
 0x19d   : > { %2720 = vmatmul.mubr.f32.gmra.mrb[36].mxu0 %v1071_v43  ;;  %1984 = vmatprep.mubr.f32.mxu1 %v1082_v44  ;;  %v760_v43 = vmul.f32 %v5898_v62, %v232_v35  ;;  %v239_v44 = vld [vmem:[%s4360_s26 + $0x100] sm:$0xff] }
 0x19e   : > { %2724 = vmatprep.mubr.f32.mxu0 %v1090_v51  ;;  %v768_v51 = vmul.f32 %v5903_v27, %v240_v38  ;;  %v850_v38 = vmul.f32 %v5898_v62, %v322_v31  ;;  %v420_v31 = vld [vmem:[%s4360_s26 + $0x6a8] sm:$0xff] }
 0x1a0   : > { %1985 = vmatmul.mubr.f32.gmra.mrb[38].mxu1 %v1081_v48  ;;  %v759_v48 = vmul.f32 %v5907_v13, %v231_v42  ;;  %v329_v42 = vld [vmem:[%s4360_s26 + $0x3d0] sm:$0xff] }
 0x1a1   : > { %2725 = vmatmul.mubr.f32.gmra.mrb[38].mxu0 %v1089_v57  ;;  %1989 = vmatprep.mubr.f32.mxu1 %v1100_v58  ;;  %v767_v57 = vmul.f32 %v5912_v32, %v239_v44  ;;  %v778_v58 = vmul.f32 %v5898_v62, %v250_v47  ;;  %v3635_v44 = vpack.c.bf16 %v1434_v22, %v1433_v45  ;;  %v348_v47 = vld [vmem:[%s4360_s26 + $0x468] sm:$0xff] }
 0x1a2   : > { %2729 = vmatprep.mubr.f32.mxu0 %v1108_v46  ;;  %v786_v46 = vmul.f32 %v5903_v27, %v258_v52  ;;  %v1436_v52 = vld [vmem:[%s6471_s1 + $0x868] sm:$0xff]  ;;  %v857_v55 = vmul.f32 %v5912_v32, %v329_v42 }
 0x1a4   : > { %1990 = vmatmul.mubr.f32.gmra.mrb[40].mxu1 %v1099_v3  ;;  %v276_v3 = vld [vmem:[%s4360_s26 + $0x228] sm:$0xff] }
 0x1a5   : > { %2730 = vmatmul.mubr.f32.gmra.mrb[40].mxu0 %v1107_v4  ;;  %1994 = vmatprep.mubr.f32.mxu1 %v1118_v49  ;;  %v1427_v4 = vld [vmem:[%s6471_s1 + $0x820] sm:$0xff]  ;;  %v1428_v49 = vld [vmem:[%s6471_s1 + $0x828] sm:$0xff]  ;;  %v804_v8 = vmul.f32 %v5903_v27, %v276_v3  ;;  %v1438_v3 = vld [vmem:[%s6471_s1 + $0x878] sm:$0xff] }
 0x1a6   : > { %2734 = vmatprep.mubr.f32.mxu0 %v1126_v5  ;;  %v785_v5 = vmul.f32 %v5912_v32, %v257_v63  ;;  %v366_v63 = vld [vmem:[%s4360_s26 + $0x4f8] sm:$0xff] }
 0x1a8   : > { %1995 = vmatmul.mubr.f32.gmra.mrb[42].mxu1 %v1117_v9  ;;  %v275_v9 = vld [vmem:[%s4360_s26 + $0x220] sm:$0xff] }
 0x1a9   : > { %2735 = vmatmul.mubr.f32.gmra.mrb[42].mxu0 %v1125_v10  ;;  %1999 = vmatprep.mubr.f32.mxu1 %v1136_v11  ;;  %v3626_v10 = vpack.c.bf16 %v1428_v49, %v1427_v4  ;;  %v286_v11 = vld [vmem:[%s4360_s26 + $0x278] sm:$0xff]  ;;  %v803_v18 = vmul.f32 %v5912_v32, %v275_v9  ;;  %v875_v49 = vmul.f32 %v5912_v32, %v347_v61 }
 0x1aa   : > { %2739 = vmatprep.mubr.f32.mxu0 %v1144_v15  ;;  %v1430_v15 = vld [vmem:[%s6471_s1 + $0x838] sm:$0xff]  ;;  %v814_v19 = vmul.f32 %v5898_v62, %v286_v11  ;;  %v3641_v9 = vpack.c.bf16 %v1438_v3, %v1437_v1  ;;  %v1439_v11 = vld [vmem:[%s6471_s1 + $0x880] sm:$0xff] }
 0x1ab   : > { %v3629_v24 = vpack.c.bf16 %v1430_v15, %v1429_v14  ;;  %v893_v15 = vmul.f32 %v5912_v32, %v365_v7 }
 0x1ac   : > { %2000 = vmatmul.mubr.f32.gmra.mrb[44].mxu1 %v1135_v20  ;;  %v285_v20 = vld [vmem:[%s4360_s26 + $0x270] sm:$0xff] }
 0x1ad   : > { %2740 = vmatmul.mubr.f32.gmra.mrb[44].mxu0 %v1143_v21  ;;  %2004 = vmatprep.mubr.f32.mxu1 %v1154_v23  ;;  %v293_v21 = vld [vmem:[%s4360_s26 + $0x2b0] sm:$0xff]  ;;  %v304_v23 = vld [vmem:[%s4360_s26 + $0x308] sm:$0xff]  ;;  %v813_v25 = vmul.f32 %v5907_v13, %v285_v20  ;;  %v383_v20 = vld [vmem:[%s4360_s26 + $0x580] sm:$0xff] }
 0x1ae   : > { %2744 = vmatprep.mubr.f32.mxu0 %v1162_v59  ;;  %v1431_v59 = vld [vmem:[%s6471_s1 + $0x840] sm:$0xff]  ;;  %v821_v26 = vmul.f32 %v5912_v32, %v293_v21  ;;  %v832_v30 = vmul.f32 %v5898_v62, %v304_v23  ;;  %v3644_v21 = vpack.c.bf16 %v1440_v12, %v1439_v11  ;;  %v402_v23 = vld [vmem:[%s4360_s26 + $0x618] sm:$0xff] }
 0x1b0   : > { %2005 = vmatmul.mubr.f32.gmra.mrb[46].mxu1 %v1153_v28  ;;  %v303_v28 = vld [vmem:[%s4360_s26 + $0x300] sm:$0xff] }
 0x1b1   : > { %2745 = vmatmul.mubr.f32.gmra.mrb[46].mxu0 %v1161_v29  ;;  %2074 = vmatprep.mubr.f32.mxu1 %v742_v17  ;;  %v840_v29 = vmul.f32 %v5903_v27, %v312_v56  ;;  %v311_v17 = vld [vmem:[%s4360_s26 + $0x340] sm:$0xff]  ;;  %v831_v35 = vmul.f32 %v5907_v13, %v303_v28  ;;  %v401_v28 = vld [vmem:[%s4360_s26 + $0x610] sm:$0xff] }
 0x1b2   : > { %2814 = vmatprep.mubr.f32.mxu0 %v750_v33  ;;  %v3632_v33 = vpack.c.bf16 %v1432_v2, %v1431_v59  ;;  %v1442_v56 = vld [vmem:[%s6471_s1 + $0x898] sm:$0xff]  ;;  %v911_v2 = vmul.f32 %v5912_v32, %v383_v20  ;;  %v929_v22 = vmul.f32 %v5912_v32, %v401_v28 }
 0x1b4   : > { %2075 = vmatmul.mubr.f32.vlgmr.msra.gmra.mrb[0].mxu1 %v741_v36  ;;  %v839_v36 = vmul.f32 %v5912_v32, %v311_v17 }
 0x1b5   : > { %2815 = vmatmul.mubr.f32.vlgmr.msra.gmra.mrb[0].mxu0 %v749_v40  ;;  %3683 = vmatpush1.bf16.msra.mxu1 %v3620_v41  ;;  %v321_v40 = vld [vmem:[%s4360_s26 + $0x390] sm:$0xff] }
 0x1b6   : > { %3621 = vmatpush1.bf16.msra.mxu0 %v3620_v41  ;;  %2079 = vmatprep.mubr.f32.mxu1 %v760_v43  ;;  %v858_v41 = vmul.f32 %v5903_v27, %v330_v34  ;;  %v340_v43 = vld [vmem:[%s4360_s26 + $0x428] sm:$0xff]  ;;  %v849_v54 = vmul.f32 %v5907_v13, %v321_v40  ;;  %v1444_v34 = vld [vmem:[%s6471_s1 + $0x8a8] sm:$0xff]  ;;  %v419_v40 = vld [vmem:[%s4360_s26 + $0x6a0] sm:$0xff] }
 0x1b7   : > { %2819 = vmatprep.mubr.f32.mxu0 %v768_v51  ;;  %3622 = vmatprep.subr.bf16.mxu0 %v4210_v0  ;;  %v1435_v51 = vld [vmem:[%s6471_s1 + $0x860] sm:$0xff] }
 0x1b8   : > { %2080 = vmatmul.mubr.f32.gmra.mrb[2].mxu1 %v759_v48  ;;  %3668 = vmatprep.subr.bf16.mxu1 %v4210_v0  ;;  %v868_v48 = vmul.f32 %v5898_v62, %v340_v43  ;;  %v438_v43 = vld [vmem:[%s4360_s26 + $0x738] sm:$0xff] }
 0x1b9   : > { %2820 = vmatmul.mubr.f32.gmra.mrb[2].mxu0 %v767_v57  ;;  %2084 = vmatprep.mubr.f32.mxu1 %v778_v58  ;;  %v339_v57 = vld [vmem:[%s4360_s26 + $0x420] sm:$0xff]  ;;  %v876_v58 = vmul.f32 %v5903_v27, %v348_v47 }
 0x1ba   : > { %2824 = vmatprep.mubr.f32.mxu0 %v786_v46  ;;  %3624 = vmatpush1.bf16.msra.mxu0 %v3623_v50  ;;  %v358_v46 = vld [vmem:[%s4360_s26 + $0x4b8] sm:$0xff]  ;;  %v867_v4 = vmul.f32 %v5907_v13, %v339_v57  ;;  %v1446_v47 = vld [vmem:[%s6471_s1 + $0x8b8] sm:$0xff]  ;;  %v437_v57 = vld [vmem:[%s4360_s26 + $0x730] sm:$0xff] }
 0x1bb   : > { %3684 = vmatpush1.bf16.msra.mxu1 %v3623_v50  ;;  %3625 = vmatprep.subr.bf16.mxu0 %v4210_v0  ;;  %v3638_v50 = vpack.c.bf16 %v1436_v52, %v1435_v51  ;;  %v947_v52 = vmul.f32 %v5912_v32, %v419_v40  ;;  %v965_v3 = vmul.f32 %v5912_v32, %v437_v57 }
 0x1bc   : > { %2085 = vmatmul.mubr.f32.gmra.mrb[4].mxu1 %v777_v53  ;;  %3669 = vmatprep.subr.bf16.mxu1 %v4210_v0  ;;  %v886_v53 = vmul.f32 %v5898_v62, %v358_v46  ;;  %v456_v46 = vld [vmem:[%s4360_s26 + $0x7c8] sm:$0xff] }
 0x1bd   : > { %2825 = vmatmul.mubr.f32.gmra.mrb[4].mxu0 %v785_v5  ;;  %2089 = vmatprep.mubr.f32.mxu1 %v796_v6  ;;  %v357_v5 = vld [vmem:[%s4360_s26 + $0x4b0] sm:$0xff]  ;;  %v894_v6 = vmul.f32 %v5903_v27, %v366_v63 }
 0x1be   : > { %2829 = vmatprep.mubr.f32.mxu0 %v804_v8  ;;  %3627 = vmatpush1.bf16.msra.mxu0 %v3626_v10  ;;  %v376_v8 = vld [vmem:[%s4360_s26 + $0x548] sm:$0xff]  ;;  %v885_v14 = vmul.f32 %v5907_v13, %v357_v5  ;;  %v1448_v63 = vld [vmem:[%s6471_s1 + $0x8c8] sm:$0xff]  ;;  %v455_v5 = vld [vmem:[%s4360_s26 + $0x7c0] sm:$0xff] }
 0x1bf   : > { %3685 = vmatpush1.bf16.msra.mxu1 %v3626_v10  ;;  %3628 = vmatprep.subr.bf16.mxu0 %v4210_v0  ;;  %v384_v10 = vld [vmem:[%s4360_s26 + $0x588] sm:$0xff]  ;;  %v983_v12 = vmul.f32 %v5912_v32, %v455_v5  ;;  %v563_v5 = vld [vmem:[%s4360_s26 + $0xb20] sm:$0xff] }
 0x1c0   : > { %2090 = vmatmul.mubr.f32.gmra.mrb[6].mxu1 %v795_v16  ;;  %3670 = vmatprep.subr.bf16.mxu1 %v4210_v0  ;;  %v904_v16 = vmul.f32 %v5898_v62, %v376_v8  ;;  %v474_v8 = vld [vmem:[%s4360_s26 + $0x858] sm:$0xff] }
 0x1c1   : > { %2830 = vmatmul.mubr.f32.gmra.mrb[6].mxu0 %v803_v18  ;;  %2094 = vmatprep.mubr.f32.mxu1 %v814_v19  ;;  %v375_v18 = vld [vmem:[%s4360_s26 + $0x540] sm:$0xff]  ;;  %v912_v19 = vmul.f32 %v5903_v27, %v384_v10 }
 0x1c2   : > { %2834 = vmatprep.mubr.f32.mxu0 %v822_v60  ;;  %3630 = vmatpush1.bf16.msra.mxu0 %v3629_v24  ;;  %v394_v60 = vld [vmem:[%s4360_s26 + $0x5d8] sm:$0xff]  ;;  %v903_v59 = vmul.f32 %v5907_v13, %v375_v18  ;;  %v1450_v10 = vld [vmem:[%s6471_s1 + $0x8d8] sm:$0xff]  ;;  %v473_v18 = vld [vmem:[%s4360_s26 + $0x850] sm:$0xff] }
 0x1c3   : > { %3686 = vmatpush1.bf16.msra.mxu1 %v3629_v24  ;;  %3631 = vmatprep.subr.bf16.mxu0 %v4210_v0  ;;  %v1441_v24 = vld [vmem:[%s6471_s1 + $0x890] sm:$0xff] }
 0x1c4   : > { %2095 = vmatmul.mubr.f32.gmra.mrb[8].mxu1 %v813_v25  ;;  %3671 = vmatprep.subr.bf16.mxu1 %v4210_v0  ;;  %v922_v25 = vmul.f32 %v5898_v62, %v394_v60  ;;  %v3647_v17 = vpack.c.bf16 %v1442_v56, %v1441_v24  ;;  %v492_v60 = vld [vmem:[%s4360_s26 + $0x8e8] sm:$0xff]  ;;  %v1001_v56 = vmul.f32 %v5912_v32, %v473_v18 }
 0x1c5   : > { %2835 = vmatmul.mubr.f32.gmra.mrb[8].mxu0 %v821_v26  ;;  %2099 = vmatprep.mubr.f32.mxu1 %v832_v30  ;;  %v393_v26 = vld [vmem:[%s4360_s26 + $0x5d0] sm:$0xff]  ;;  %v930_v30 = vmul.f32 %v5903_v27, %v402_v23 }
 0x1c6   : > { %2839 = vmatprep.mubr.f32.mxu0 %v840_v29  ;;  %3633 = vmatpush1.bf16.msra.mxu0 %v3632_v33  ;;  %v412_v29 = vld [vmem:[%s4360_s26 + $0x668] sm:$0xff]  ;;  %v921_v45 = vmul.f32 %v5907_v13, %v393_v26  ;;  %v1452_v23 = vld [vmem:[%s6471_s1 + $0x8e8] sm:$0xff]  ;;  %v491_v26 = vld [vmem:[%s4360_s26 + $0x8e0] sm:$0xff] }
 0x1c7   : > { %3687 = vmatpush1.bf16.msra.mxu1 %v3632_v33  ;;  %3634 = vmatprep.subr.bf16.mxu0 %v4210_v0  ;;  %v1443_v33 = vld [vmem:[%s6471_s1 + $0x8a0] sm:$0xff] }
 0x1c8   : > { %2100 = vmatmul.mubr.f32.gmra.mrb[10].mxu1 %v831_v35  ;;  %3672 = vmatprep.subr.bf16.mxu1 %v4210_v0  ;;  %v940_v35 = vmul.f32 %v5898_v62, %v412_v29  ;;  %v3650_v42 = vpack.c.bf16 %v1444_v34, %v1443_v33  ;;  %v510_v29 = vld [vmem:[%s4360_s26 + $0x978] sm:$0xff]  ;;  %v1019_v34 = vmul.f32 %v5912_v32, %v491_v26  ;;  %v609_v26 = vld [vmem:[%s4360_s26 + $0xc90] sm:$0xff] }
 0x1c9   : > { %2840 = vmatmul.mubr.f32.gmra.mrb[10].mxu0 %v839_v36  ;;  %2104 = vmatprep.mubr.f32.mxu1 %v850_v38  ;;  %v411_v36 = vld [vmem:[%s4360_s26 + $0x660] sm:$0xff]  ;;  %v948_v38 = vmul.f32 %v5903_v27, %v420_v31 }
 0x1ca   : > { %2844 = vmatprep.mubr.f32.mxu0 %v858_v41  ;;  %3636 = vmatpush1.bf16.msra.mxu0 %v3635_v44  ;;  %v430_v41 = vld [vmem:[%s4360_s26 + $0x6f8] sm:$0xff]  ;;  %v939_v51 = vmul.f32 %v5907_v13, %v411_v36  ;;  %v1454_v31 = vld [vmem:[%s6471_s1 + $0x8f8] sm:$0xff]  ;;  %v509_v36 = vld [vmem:[%s4360_s26 + $0x970] sm:$0xff] }
 0x1cb   : > { %3688 = vmatpush1.bf16.msra.mxu1 %v3635_v44  ;;  %3637 = vmatprep.subr.bf16.mxu0 %v4210_v0  ;;  %v1445_v44 = vld [vmem:[%s6471_s1 + $0x8b0] sm:$0xff] }
 0x1cc   : > { %2105 = vmatmul.mubr.f32.gmra.mrb[12].mxu1 %v849_v54  ;;  %3673 = vmatprep.subr.bf16.mxu1 %v4210_v0  ;;  %v958_v54 = vmul.f32 %v5898_v62, %v430_v41  ;;  %v3653_v61 = vpack.c.bf16 %v1446_v47, %v1445_v44  ;;  %v528_v41 = vld [vmem:[%s4360_s26 + $0xa08] sm:$0xff]  ;;  %v519_v47 = vld [vmem:[%s4360_s26 + $0x9c0] sm:$0xff] }
 0x1cd   : > { %2845 = vmatmul.mubr.f32.gmra.mrb[12].mxu0 %v857_v55  ;;  %2109 = vmatprep.mubr.f32.mxu1 %v868_v48  ;;  %v429_v55 = vld [vmem:[%s4360_s26 + $0x6f0] sm:$0xff]  ;;  %v966_v48 = vmul.f32 %v5903_v27, %v438_v43  ;;  %v1037_v43 = vmul.f32 %v5912_v32, %v509_v36 }
 0x1ce   : > { %2849 = vmatprep.mubr.f32.mxu0 %v876_v58  ;;  %3639 = vmatpush1.bf16.msra.mxu0 %v3638_v50  ;;  %v448_v58 = vld [vmem:[%s4360_s26 + $0x788] sm:$0xff]  ;;  %v957_v1 = vmul.f32 %v5907_v13, %v429_v55  ;;  %v546_v55 = vld [vmem:[%s4360_s26 + $0xa98] sm:$0xff] }
 0x1cf   : > { %3689 = vmatpush1.bf16.msra.mxu1 %v3638_v50  ;;  %3640 = vmatprep.subr.bf16.mxu0 %v4210_v0  ;;  %v1447_v50 = vld [vmem:[%s6471_s1 + $0x8c0] sm:$0xff] }
 0x1d0   : > { %2110 = vmatmul.mubr.f32.gmra.mrb[14].mxu1 %v867_v4  ;;  %3674 = vmatprep.subr.bf16.mxu1 %v4210_v0  ;;  %v976_v4 = vmul.f32 %v5898_v62, %v448_v58  ;;  %v3656_v7 = vpack.c.bf16 %v1448_v63, %v1447_v50  ;;  %v537_v58 = vld [vmem:[%s4360_s26 + $0xa50] sm:$0xff]  ;;  %v556_v50 = vld [vmem:[%s4360_s26 + $0xae8] sm:$0xff] }
 0x1d1   : > { %2850 = vmatmul.mubr.f32.gmra.mrb[14].mxu0 %v875_v49  ;;  %2114 = vmatprep.mubr.f32.mxu1 %v886_v53  ;;  %v447_v49 = vld [vmem:[%s4360_s26 + $0x780] sm:$0xff]  ;;  %v984_v53 = vmul.f32 %v5903_v27, %v456_v46  ;;  %v545_v46 = vld [vmem:[%s4360_s26 + $0xa90] sm:$0xff]  ;;  %v564_v63 = vld [vmem:[%s4360_s26 + $0xb28] sm:$0xff] }
 0x1d2   : > { %2854 = vmatprep.mubr.f32.mxu0 %v894_v6  ;;  %3642 = vmatpush1.bf16.msra.mxu0 %v3641_v9  ;;  %v466_v6 = vld [vmem:[%s4360_s26 + $0x818] sm:$0xff]  ;;  %v975_v11 = vmul.f32 %v5907_v13, %v447_v49  ;;  %v555_v49 = vld [vmem:[%s4360_s26 + $0xae0] sm:$0xff] }
 0x1d3   : > { %3690 = vmatpush1.bf16.msra.mxu1 %v3641_v9  ;;  %3643 = vmatprep.subr.bf16.mxu0 %v4210_v0  ;;  %v1449_v9 = vld [vmem:[%s6471_s1 + $0x8d0] sm:$0xff] }
 0x1d4   : > { %2115 = vmatmul.mubr.f32.gmra.mrb[16].mxu1 %v885_v14  ;;  %3675 = vmatprep.subr.bf16.mxu1 %v4210_v0  ;;  %v994_v14 = vmul.f32 %v5898_v62, %v466_v6  ;;  %v3659_v20 = vpack.c.bf16 %v1450_v10, %v1449_v9  ;;  %v574_v6 = vld [vmem:[%s4360_s26 + $0xb78] sm:$0xff]  ;;  %v1091_v9 = vmul.f32 %v5912_v32, %v563_v5 }
 0x1d5   : > { %2855 = vmatmul.mubr.f32.gmra.mrb[16].mxu0 %v893_v15  ;;  %2119 = vmatprep.mubr.f32.mxu1 %v904_v16  ;;  %v465_v15 = vld [vmem:[%s4360_s26 + $0x810] sm:$0xff]  ;;  %v1002_v16 = vmul.f32 %v5903_v27, %v474_v8  ;;  %v1083_v8 = vmul.f32 %v5907_v13, %v555_v49  ;;  %v1102_v10 = vmul.f32 %v5898_v62, %v574_v6 }
 0x1d6   : > { %2859 = vmatprep.mubr.f32.mxu0 %v912_v19  ;;  %3645 = vmatpush1.bf16.msra.mxu0 %v3644_v21  ;;  %v484_v19 = vld [vmem:[%s4360_s26 + $0x8a8] sm:$0xff]  ;;  %v993_v24 = vmul.f32 %v5907_v13, %v465_v15  ;;  %v493_v6 = vld [vmem:[%s4360_s26 + $0x8f0] sm:$0xff] }
 0x1d7   : > { %3691 = vmatpush1.bf16.msra.mxu1 %v3644_v21  ;;  %3646 = vmatprep.subr.bf16.mxu0 %v4210_v0  ;;  %v1451_v21 = vld [vmem:[%s6471_s1 + $0x8e0] sm:$0xff] }
 0x1d8   : > { %2120 = vmatmul.mubr.f32.gmra.mrb[18].mxu1 %v903_v59  ;;  %3676 = vmatprep.subr.bf16.mxu1 %v4210_v0  ;;  %v1012_v59 = vmul.f32 %v5898_v62, %v484_v19  ;;  %v3662_v28 = vpack.c.bf16 %v1452_v23, %v1451_v21  ;;  %v592_v15 = vld [vmem:[%s4360_s26 + $0xc08] sm:$0xff]  ;;  %v599_v23 = vld [vmem:[%s4360_s26 + $0xc40] sm:$0xff] }
 0x1d9   : > { %2860 = vmatmul.mubr.f32.gmra.mrb[18].mxu0 %v911_v2  ;;  %2124 = vmatprep.mubr.f32.mxu1 %v922_v25  ;;  %v483_v2 = vld [vmem:[%s4360_s26 + $0x8a0] sm:$0xff]  ;;  %v1020_v25 = vmul.f32 %v5903_v27, %v492_v60 }
 0x1da   : > { %2864 = vmatprep.mubr.f32.mxu0 %v930_v30  ;;  %3648 = vmatpush1.bf16.msra.mxu0 %v3647_v17  ;;  %v502_v30 = vld [vmem:[%s4360_s26 + $0x938] sm:$0xff]  ;;  %v1011_v33 = vmul.f32 %v5907_v13, %v483_v2  ;;  %v591_v60 = vld [vmem:[%s4360_s26 + $0xc00] sm:$0xff]  ;;  %v1127_v2 = vmul.f32 %v5912_v32, %v599_v23 }
 0x1db   : > { %3692 = vmatpush1.bf16.msra.mxu1 %v3647_v17  ;;  %3649 = vmatprep.subr.bf16.mxu0 %v4210_v0  ;;  %v1453_v17 = vld [vmem:[%s6471_s1 + $0x8f0] sm:$0xff] }
 0x1dc   : > { %2125 = vmatmul.mubr.f32.gmra.mrb[20].mxu1 %v921_v45  ;;  %3677 = vmatprep.subr.bf16.mxu1 %v4210_v0  ;;  %v1030_v45 = vmul.f32 %v5898_v62, %v502_v30  ;;  %v3665_v40 = vpack.c.bf16 %v1454_v31, %v1453_v17  ;;  %v641_v17 = vld [vmem:[#allocation2 + $0x10] sm:$0x3]  ;;  %v636_v31 = vld [vmem:[%s4360_s26 + $0xd68] sm:$0xff] }
 0x1dd   : > { %2865 = vmatmul.mubr.f32.gmra.mrb[20].mxu0 %v929_v22  ;;  %2129 = vmatprep.mubr.f32.mxu1 %v940_v35  ;;  %v501_v22 = vld [vmem:[%s4360_s26 + $0x930] sm:$0xff]  ;;  %v1038_v35 = vmul.f32 %v5903_v27, %v510_v29  ;;  %v628_v29 = vld [vmem:[%s4360_s26 + $0xd28] sm:$0xff]  ;;  %v1164_v36 = vmul.f32 %v5903_v27, %v636_v31  ;;  %v331_v31 = vld [vmem:[%s4360_s26 + $0x3e0] sm:$0xff] }
 0x1de   : > { %2869 = vmatprep.mubr.f32.mxu0 %v948_v38  ;;  %3651 = vmatpush1.bf16.msra.mxu0 %v3650_v42  ;;  %v520_v38 = vld [vmem:[%s4360_s26 + $0x9c8] sm:$0xff] }
 0x1df   : > { %3693 = vmatpush1.bf16.msra.mxu1 %v3650_v42  ;;  %3652 = vmatprep.subr.bf16.mxu0 %v4210_v0  ;;  %v1029_v42 = vmul.f32 %v5907_v13, %v501_v22  ;;  %v1048_v44 = vmul.f32 %v5898_v62, %v520_v38  ;;  %v627_v22 = vld [vmem:[%s4360_s26 + $0xd20] sm:$0xff] }
 0x1e0   : > { %2130 = vmatmul.mubr.f32.gmra.mrb[22].mxu1 %v939_v51  ;;  %3678 = vmatprep.subr.bf16.mxu1 %v4210_v0  ;;  %v1056_v51 = vmul.f32 %v5903_v27, %v528_v41  ;;  %v635_v38 = vld [vmem:[%s4360_s26 + $0xd60] sm:$0xff]  ;;  %v224_v41 = vld [vmem:[%s4360_s26 + $0x88] sm:$0xff] }
 0x1e1   : > { %2870 = vmatmul.mubr.f32.gmra.mrb[22].mxu0 %v947_v52  ;;  %2134 = vmatprep.mubr.f32.mxu1 %v958_v54  ;;  %v527_v52 = vld [vmem:[%s4360_s26 + $0xa00] sm:$0xff]  ;;  %v538_v54 = vld [vmem:[%s4360_s26 + $0xa58] sm:$0xff] }
 0x1e2   : > { %2874 = vmatprep.mubr.f32.mxu0 %v966_v48  ;;  %3654 = vmatpush1.bf16.msra.mxu0 %v3653_v61  ;;  %v1055_v48 = vmul.f32 %v5912_v32, %v527_v52  ;;  %v1066_v57 = vmul.f32 %v5898_v62, %v538_v54  ;;  %v457_v54 = vld [vmem:[%s4360_s26 + $0x7d0] sm:$0xff] }
 0x1e3   : > { %3694 = vmatpush1.bf16.msra.mxu1 %v3653_v61  ;;  %3655 = vmatprep.subr.bf16.mxu0 %v4210_v0  ;;  %v1074_v61 = vmul.f32 %v5903_v27, %v546_v55 }
 0x1e4   : > { %2135 = vmatmul.mubr.f32.gmra.mrb[24].mxu1 %v957_v1  ;;  %3679 = vmatprep.subr.bf16.mxu1 %v4210_v0  ;;  %v1065_v1 = vmul.f32 %v5907_v13, %v537_v58 }
 0x1e5   : > { %2875 = vmatmul.mubr.f32.gmra.mrb[24].mxu0 %v965_v3  ;;  %2139 = vmatprep.mubr.f32.mxu1 %v976_v4  ;;  %v1073_v3 = vmul.f32 %v5912_v32, %v545_v46  ;;  %v1084_v4 = vmul.f32 %v5898_v62, %v556_v50  ;;  %v475_v50 = vld [vmem:[%s4360_s26 + $0x860] sm:$0xff] }
 0x1e6   : > { %2879 = vmatprep.mubr.f32.mxu0 %v984_v53  ;;  %3657 = vmatpush1.bf16.msra.mxu0 %v3656_v7  ;;  %v1092_v53 = vmul.f32 %v5903_v27, %v564_v63 }
 0x1e7   : > { %3695 = vmatpush1.bf16.msra.mxu1 %v3656_v7  ;;  %3658 = vmatprep.subr.bf16.mxu0 %v4210_v0  ;;  %v582_v7 = vld [vmem:[%s4360_s26 + $0xbb8] sm:$0xff] }
 0x1e8   : > { %2140 = vmatmul.mubr.f32.gmra.mrb[26].mxu1 %v975_v11  ;;  %3680 = vmatprep.subr.bf16.mxu1 %v4210_v0  ;;  %v573_v11 = vld [vmem:[%s4360_s26 + $0xb70] sm:$0xff] }
 0x1e9   : > { %2880 = vmatmul.mubr.f32.gmra.mrb[26].mxu0 %v983_v12  ;;  %2144 = vmatprep.mubr.f32.mxu1 %v994_v14  ;;  %v1110_v12 = vmul.f32 %v5903_v27, %v582_v7  ;;  %v581_v14 = vld [vmem:[%s4360_s26 + $0xbb0] sm:$0xff]  ;;  %v1101_v18 = vmul.f32 %v5907_v13, %v573_v11 }
 0x1ea   : > { %2884 = vmatprep.mubr.f32.mxu0 %v1002_v16  ;;  %3660 = vmatpush1.bf16.msra.mxu0 %v3659_v20  ;;  %v600_v16 = vld [vmem:[%s4360_s26 + $0xc48] sm:$0xff]  ;;  %v1109_v19 = vmul.f32 %v5912_v32, %v581_v14 }
 0x1eb   : > { %3696 = vmatpush1.bf16.msra.mxu1 %v3659_v20  ;;  %3661 = vmatprep.subr.bf16.mxu0 %v4210_v0  ;;  %v1120_v20 = vmul.f32 %v5898_v62, %v592_v15  ;;  %v1128_v21 = vmul.f32 %v5903_v27, %v600_v16  ;;  %v511_v15 = vld [vmem:[%s4360_s26 + $0x980] sm:$0xff] }
 0x1ec   : > { %2145 = vmatmul.mubr.f32.gmra.mrb[28].mxu1 %v993_v24  ;;  %3681 = vmatprep.subr.bf16.mxu1 %v4210_v0  ;;  %v610_v24 = vld [vmem:[%s4360_s26 + $0xc98] sm:$0xff] }
 0x1ed   : > { %2885 = vmatmul.mubr.f32.gmra.mrb[28].mxu0 %v1001_v56  ;;  %2149 = vmatprep.mubr.f32.mxu1 %v1012_v59  ;;  %v618_v56 = vld [vmem:[%s4360_s26 + $0xcd8] sm:$0xff]  ;;  %v1119_v59 = vmul.f32 %v5907_v13, %v591_v60 }
 0x1ee   : > { %2889 = vmatprep.mubr.f32.mxu0 %v1020_v25  ;;  %3663 = vmatpush1.bf16.msra.mxu0 %v3662_v28  ;;  %v1138_v25 = vmul.f32 %v5898_v62, %v610_v24  ;;  %v1146_v30 = vmul.f32 %v5903_v27, %v618_v56  ;;  %v529_v24 = vld [vmem:[%s4360_s26 + $0xa10] sm:$0xff] }
 0x1ef   : > { %3697 = vmatpush1.bf16.msra.mxu1 %v3662_v28  ;;  %3664 = vmatprep.subr.bf16.mxu0 %v4210_v0  ;;  %v617_v28 = vld [vmem:[%s4360_s26 + $0xcd0] sm:$0xff] }
 0x1f0   : > { %2150 = vmatmul.mubr.f32.gmra.mrb[30].mxu1 %v1011_v33  ;;  %3682 = vmatprep.subr.bf16.mxu1 %v4210_v0  ;;  %v1047_v0 = vmul.f32 %v5907_v13, %v519_v47  ;;  %v1137_v33 = vmul.f32 %v5907_v13, %v609_v26  ;;  %v223_v47 = vld [vmem:[%s4360_s26 + $0x80] sm:$0xff] }
 0x1f1   : > { %2890 = vmatmul.mubr.f32.gmra.mrb[30].mxu0 %v1019_v34  ;;  %2154 = vmatprep.mubr.f32.mxu1 %v1030_v45  ;;  %v1145_v34 = vmul.f32 %v5912_v32, %v617_v28  ;;  %v1156_v45 = vmul.f32 %v5898_v62, %v628_v29  ;;  %v547_v29 = vld [vmem:[%s4360_s26 + $0xaa0] sm:$0xff] }
 0x1f2   : > { %2894 = vmatprep.mubr.f32.mxu0 %v1038_v35  ;;  %3666 = vmatpush1.bf16.msra.mxu0 %v3665_v40  ;;  %v6225_v35 = vrot.slane %v641_v17, %v4451_v37  ;;  %v1163_v37 = vmul.f32 %v5912_v32, %v635_v38  ;;  %v565_v38 = vld [vmem:[%s4360_s26 + $0xb30] sm:$0xff] }
 0x1f3   : > { %3698 = vmatpush1.bf16.msra.mxu1 %v3665_v40  ;;  %v440_v40 = vld [vmem:[%s4360_s26 + $0x748] sm:$0xff] }
 0x1f4   : > { %2155 = vmatmul.mubr.f32.gmra.mrb[32].mxu1 %v1029_v42  ;;  %v1155_v42 = vmul.f32 %v5907_v13, %v627_v22  ;;  %v968_v62 = vmul.f32 %v6225_v35, %v440_v40  ;;  %v752_v27 = vmul.f32 %v6225_v35, %v224_v41  ;;  %v242_v13 = vld [vmem:[%s4360_s26 + $0x118] sm:$0xff]  ;;  %v349_v41 = vld [vmem:[%s4360_s26 + $0x470] sm:$0xff] }
 0x1f5   : > { %2895 = vmatmul.mubr.f32.gmra.mrb[32].mxu0 %v1037_v43  ;;  %2159 = vmatprep.mubr.f32.mxu1 %v1048_v44  ;;  %v6233_v43 = vrot.slane %v641_v17, %v4596_v39  ;;  %v439_v44 = vld [vmem:[%s4360_s26 + $0x740] sm:$0xff]  ;;  %v770_v55 = vmul.f32 %v6225_v35, %v242_v13 }
 0x1f6   : > { %2899 = vmatprep.mubr.f32.mxu0 %v1056_v51  ;;  %v458_v51 = vld [vmem:[%s4360_s26 + $0x7d8] sm:$0xff]  ;;  %v367_v13 = vld [vmem:[%s4360_s26 + $0x500] sm:$0xff] }
 0x1f7   : > { %v967_v39 = vmul.f32 %v6233_v43, %v439_v44  ;;  %v751_v32 = vmul.f32 %v6233_v43, %v223_v47  ;;  %v986_v52 = vmul.f32 %v6225_v35, %v458_v51  ;;  %v985_v58 = vmul.f32 %v6233_v43, %v457_v54  ;;  %v583_v47 = vld [vmem:[%s4360_s26 + $0xbc0] sm:$0xff] }
 0x1f8   : > { %2160 = vmatmul.mubr.f32.gmra.mrb[34].mxu1 %v1047_v0  ;;  %v241_v0 = vld [vmem:[%s4360_s26 + $0x110] sm:$0xff]  ;;  %v1003_v49 = vmul.f32 %v6233_v43, %v475_v50  ;;  %v1021_v11 = vmul.f32 %v6233_v43, %v493_v6  ;;  %v1039_v60 = vmul.f32 %v6233_v43, %v511_v15  ;;  %v1057_v26 = vmul.f32 %v6233_v43, %v529_v24 }
 0x1f9   : > { %2900 = vmatmul.mubr.f32.gmra.mrb[34].mxu0 %v1055_v48  ;;  %2164 = vmatprep.mubr.f32.mxu1 %v1066_v57  ;;  %v476_v48 = vld [vmem:[%s4360_s26 + $0x868] sm:$0xff]  ;;  %v859_v22 = vmul.f32 %v6233_v43, %v331_v31  ;;  %v877_v44 = vmul.f32 %v6233_v43, %v349_v41  ;;  %v895_v54 = vmul.f32 %v6233_v43, %v367_v13 }
 0x1fa   : > { %2904 = vmatprep.mubr.f32.mxu0 %v1074_v61  ;;  %v260_v57 = vld [vmem:[%s4360_s26 + $0x1a8] sm:$0xff]  ;;  %v769_v61 = vmul.f32 %v6233_v43, %v241_v0  ;;  %v1004_v46 = vmul.f32 %v6225_v35, %v476_v48  ;;  %v601_v0 = vld [vmem:[%s4360_s26 + $0xc50] sm:$0xff] }
 0x1fb   : > { %v788_v63 = vmul.f32 %v6225_v35, %v260_v57  ;;  %v385_v57 = vld [vmem:[%s4360_s26 + $0x590] sm:$0xff] }
 0x1fc   : > { %2165 = vmatmul.mubr.f32.gmra.mrb[36].mxu1 %v1065_v1  ;;  %v259_v1 = vld [vmem:[%s4360_s26 + $0x1a0] sm:$0xff]  ;;  %v913_v50 = vmul.f32 %v6233_v43, %v385_v57 }
 0x1fd   : > { %2905 = vmatmul.mubr.f32.gmra.mrb[36].mxu0 %v1073_v3  ;;  %2169 = vmatprep.mubr.f32.mxu1 %v1084_v4  ;;  %v494_v3 = vld [vmem:[%s4360_s26 + $0x8f8] sm:$0xff] }
 0x1fe   : > { %2909 = vmatprep.mubr.f32.mxu0 %v1092_v53  ;;  %v278_v4 = vld [vmem:[%s4360_s26 + $0x238] sm:$0xff]  ;;  %v787_v53 = vmul.f32 %v6233_v43, %v259_v1  ;;  %v1022_v5 = vmul.f32 %v6225_v35, %v494_v3  ;;  %v619_v1 = vld [vmem:[%s4360_s26 + $0xce0] sm:$0xff] }
 0x1ff   : > { %v806_v7 = vmul.f32 %v6225_v35, %v278_v4  ;;  %v403_v4 = vld [vmem:[%s4360_s26 + $0x620] sm:$0xff] }
 0x200   : > { %2170 = vmatmul.mubr.f32.gmra.mrb[38].mxu1 %v1083_v8  ;;  %v277_v8 = vld [vmem:[%s4360_s26 + $0x230] sm:$0xff]  ;;  %v931_v6 = vmul.f32 %v6233_v43, %v403_v4 }
 0x201   : > { %2910 = vmatmul.mubr.f32.gmra.mrb[38].mxu0 %v1091_v9  ;;  %2174 = vmatprep.mubr.f32.mxu1 %v1102_v10  ;;  %v512_v9 = vld [vmem:[%s4360_s26 + $0x988] sm:$0xff] }
 0x202   : > { %2914 = vmatprep.mubr.f32.mxu0 %v1110_v12  ;;  %v296_v10 = vld [vmem:[%s4360_s26 + $0x2c8] sm:$0xff]  ;;  %v805_v12 = vmul.f32 %v6233_v43, %v277_v8  ;;  %v1040_v14 = vmul.f32 %v6225_v35, %v512_v9  ;;  %v637_v8 = vld [vmem:[%s4360_s26 + $0xd70] sm:$0xff] }
 0x203   : > { %v824_v16 = vmul.f32 %v6225_v35, %v296_v10  ;;  %v421_v10 = vld [vmem:[%s4360_s26 + $0x6b0] sm:$0xff] }
 0x204   : > { %2175 = vmatmul.mubr.f32.gmra.mrb[40].mxu1 %v1101_v18  ;;  %v295_v18 = vld [vmem:[%s4360_s26 + $0x2c0] sm:$0xff] }
 0x205   : > { %2915 = vmatmul.mubr.f32.gmra.mrb[40].mxu0 %v1109_v19  ;;  %2179 = vmatprep.mubr.f32.mxu1 %v1120_v20  ;;  %v530_v19 = vld [vmem:[%s4360_s26 + $0xa18] sm:$0xff] }
 0x206   : > { %2919 = vmatprep.mubr.f32.mxu0 %v1128_v21  ;;  %v314_v20 = vld [vmem:[%s4360_s26 + $0x358] sm:$0xff]  ;;  %v823_v21 = vmul.f32 %v6233_v43, %v295_v18  ;;  %v1058_v23 = vmul.f32 %v6225_v35, %v530_v19 }
 0x207   : > { %v842_v56 = vmul.f32 %v6225_v35, %v314_v20 }
 0x208   : > { %2180 = vmatmul.mubr.f32.gmra.mrb[42].mxu1 %v1119_v59  ;;  %v313_v59 = vld [vmem:[%s4360_s26 + $0x350] sm:$0xff] }
 0x209   : > { %2920 = vmatmul.mubr.f32.gmra.mrb[42].mxu0 %v1127_v2  ;;  %2184 = vmatprep.mubr.f32.mxu1 %v1138_v25  ;;  %v548_v2 = vld [vmem:[%s4360_s26 + $0xaa8] sm:$0xff] }
 0x20a   : > { %2924 = vmatprep.mubr.f32.mxu0 %v1146_v30  ;;  %v332_v25 = vld [vmem:[%s4360_s26 + $0x3e8] sm:$0xff]  ;;  %v841_v30 = vmul.f32 %v6233_v43, %v313_v59  ;;  %v1076_v28 = vmul.f32 %v6225_v35, %v548_v2 }
 0x20b   : > { %v860_v17 = vmul.f32 %v6225_v35, %v332_v25 }
 0x20c   : > { %2185 = vmatmul.mubr.f32.gmra.mrb[44].mxu1 %v1137_v33  ;;  %v566_v33 = vld [vmem:[%s4360_s26 + $0xb38] sm:$0xff] }
 0x20d   : > { %2925 = vmatmul.mubr.f32.gmra.mrb[44].mxu0 %v1145_v34  ;;  %2189 = vmatprep.mubr.f32.mxu1 %v1156_v45  ;;  %v350_v34 = vld [vmem:[%s4360_s26 + $0x478] sm:$0xff]  ;;  %v1075_v45 = vmul.f32 %v6233_v43, %v547_v29 }
 0x20e   : > { %2929 = vmatprep.mubr.f32.mxu0 %v1164_v36  ;;  %v1094_v36 = vmul.f32 %v6225_v35, %v566_v33  ;;  %v878_v40 = vmul.f32 %v6225_v35, %v350_v34 }
 0x210   : > { %2190 = vmatmul.mubr.f32.gmra.mrb[46].mxu1 %v1155_v42  ;;  %v584_v42 = vld [vmem:[%s4360_s26 + $0xbc8] sm:$0xff] }
 0x211   : > { %2930 = vmatmul.mubr.f32.gmra.mrb[46].mxu0 %v1163_v37  ;;  %3059 = vmatprep.mubr.f32.mxu1 %v968_v62  ;;  %v368_v37 = vld [vmem:[%s4360_s26 + $0x508] sm:$0xff]  ;;  %v1093_v62 = vmul.f32 %v6233_v43, %v565_v38 }
 0x212   : > { %2999 = vmatprep.mubr.f32.mxu0 %v752_v27  ;;  %v1112_v27 = vmul.f32 %v6225_v35, %v584_v42  ;;  %v896_v51 = vmul.f32 %v6225_v35, %v368_v37 }
 0x214   : > { %3060 = vmatmul.mubr.f32.vlgmr.msra.gmra.mrb[48].mxu1 %v967_v39  ;;  %v602_v39 = vld [vmem:[%s4360_s26 + $0xc58] sm:$0xff] }
 0x215   : > { %3000 = vmatmul.mubr.f32.vlgmr.msra.gmra.mrb[0].mxu0 %v751_v32  ;;  %3064 = vmatprep.mubr.f32.mxu1 %v986_v52  ;;  %v386_v32 = vld [vmem:[%s4360_s26 + $0x598] sm:$0xff]  ;;  %v1111_v52 = vmul.f32 %v6233_v43, %v583_v47 }
 0x216   : > { %3004 = vmatprep.mubr.f32.mxu0 %v770_v55  ;;  %v1130_v55 = vmul.f32 %v6225_v35, %v602_v39  ;;  %v914_v48 = vmul.f32 %v6225_v35, %v386_v32 }
 0x218   : > { %3065 = vmatmul.mubr.f32.gmra.mrb[50].mxu1 %v985_v58  ;;  %v620_v58 = vld [vmem:[%s4360_s26 + $0xce8] sm:$0xff] }
 0x219   : > { %3005 = vmatmul.mubr.f32.gmra.mrb[2].mxu0 %v769_v61  ;;  %3069 = vmatprep.mubr.f32.mxu1 %v1004_v46  ;;  %v404_v61 = vld [vmem:[%s4360_s26 + $0x628] sm:$0xff]  ;;  %v1129_v46 = vmul.f32 %v6233_v43, %v601_v0 }
 0x21a   : > { %3009 = vmatprep.mubr.f32.mxu0 %v788_v63  ;;  %v1148_v63 = vmul.f32 %v6225_v35, %v620_v58  ;;  %v932_v3 = vmul.f32 %v6225_v35, %v404_v61 }
 0x21c   : > { %3070 = vmatmul.mubr.f32.gmra.mrb[52].mxu1 %v1003_v49  ;;  %v638_v49 = vld [vmem:[%s4360_s26 + $0xd78] sm:$0xff] }
 0x21d   : > { %3010 = vmatmul.mubr.f32.gmra.mrb[4].mxu0 %v787_v53  ;;  %3074 = vmatprep.mubr.f32.mxu1 %v1022_v5  ;;  %v422_v53 = vld [vmem:[%s4360_s26 + $0x6b8] sm:$0xff]  ;;  %v1147_v5 = vmul.f32 %v6233_v43, %v619_v1  ;;  %s201_s26 = smul.u32 24, %s3224_s16 }
 0x21e   : > { %3014 = vmatprep.mubr.f32.mxu0 %v806_v7  ;;  %v1166_v7 = vmul.f32 %v6225_v35, %v638_v49  ;;  %v950_v9 = vmul.f32 %v6225_v35, %v422_v53 }
 0x21f   : > { %p202_p8 = scmp.lt.s32.totalorder %s201_s26, 47 }
 0x220   : > { %3075 = vmatmul.mubr.f32.gmra.mrb[54].mxu1 %v1021_v11  ;;  %v1165_v11 = vmul.f32 %v6233_v43, %v637_v8 }
 0x221   : > { %3015 = vmatmul.mubr.f32.gmra.mrb[6].mxu0 %v805_v12  ;;  %3079 = vmatprep.mubr.f32.mxu1 %v1040_v14  ;;  %v949_v12 = vmul.f32 %v6233_v43, %v421_v10  ;;  %s6494_s26 = smov (!%p202_p8, %s201_s26), 47 }
 0x222   : > { %3019 = vmatprep.mubr.f32.mxu0 %v824_v16  ;;  %s3232_s15 = sshll.u32 %s6494_s26, 3 }
 0x223   : > { %s6383_s4 = scalar_lea.vmem %s6473_s3, %s3232_s15 }
 0x224   : > { %3080 = vmatmul.mubr.f32.gmra.mrb[56].mxu1 %v1039_v60 }
 0x225   : > { %3020 = vmatmul.mubr.f32.gmra.mrb[8].mxu0 %v823_v21  ;;  %3084 = vmatprep.mubr.f32.mxu1 %v1058_v23 }
 0x226   : > { %3024 = vmatprep.mubr.f32.mxu0 %v842_v56 }
 0x228   : > { %3085 = vmatmul.mubr.f32.gmra.mrb[58].mxu1 %v1057_v26 }
 0x229   : > { %3025 = vmatmul.mubr.f32.gmra.mrb[10].mxu0 %v841_v30  ;;  %3089 = vmatprep.mubr.f32.mxu1 %v1076_v28 }
 0x22a   : > { %3029 = vmatprep.mubr.f32.mxu0 %v860_v17 }
 0x22c   : > { %3090 = vmatmul.mubr.f32.gmra.mrb[60].mxu1 %v1075_v45 }
 0x22d   : > { %3030 = vmatmul.mubr.f32.gmra.mrb[12].mxu0 %v859_v22  ;;  %3094 = vmatprep.mubr.f32.mxu1 %v1094_v36 }
 0x22e   : > { %3034 = vmatprep.mubr.f32.mxu0 %v878_v40 }
 0x230   : > { %3095 = vmatmul.mubr.f32.gmra.mrb[62].mxu1 %v1093_v62 }
 0x231   : > { %3035 = vmatmul.mubr.f32.gmra.mrb[14].mxu0 %v877_v44  ;;  %3099 = vmatprep.mubr.f32.mxu1 %v1112_v27 }
 0x232   : > { %3039 = vmatprep.mubr.f32.mxu0 %v896_v51 }
 0x234   : > { %3100 = vmatmul.mubr.f32.gmra.mrb[64].mxu1 %v1111_v52 }
 0x235   : > { %3040 = vmatmul.mubr.f32.gmra.mrb[16].mxu0 %v895_v54  ;;  %3104 = vmatprep.mubr.f32.mxu1 %v1130_v55 }
 0x236   : > { %3044 = vmatprep.mubr.f32.mxu0 %v914_v48 }
 0x238   : > { %3105 = vmatmul.mubr.f32.gmra.mrb[66].mxu1 %v1129_v46 }
 0x239   : > { %3045 = vmatmul.mubr.f32.gmra.mrb[18].mxu0 %v913_v50  ;;  %3109 = vmatprep.mubr.f32.mxu1 %v1148_v63 }
 0x23a   : > { %3049 = vmatprep.mubr.f32.mxu0 %v932_v3 }
 0x23c   : > { %3110 = vmatmul.mubr.f32.gmra.mrb[68].mxu1 %v1147_v5 }
 0x23d   : > { %3050 = vmatmul.mubr.f32.gmra.mrb[20].mxu0 %v931_v6  ;;  %3114 = vmatprep.mubr.f32.mxu1 %v1166_v7 }
 0x23e   : > { %3054 = vmatprep.mubr.f32.mxu0 %v950_v9 }
 0x240   : > { %3115 = vmatmul.mubr.f32.gmra.mrb[70].mxu1 %v1165_v11 }
 0x241   : > { %3055 = vmatmul.mubr.f32.gmra.mrb[22].mxu0 %v949_v12 }
 0x287   : > { %v6330_v14 = vpop.f32.mrb[0].mxu1 }
 0x288   : > { %v2078_v15 = vpop.f32.mrb[1].mxu1 }
 0x28b   : > { %v6332_v16 = vpop.f32.mrb[2].mxu1 }
 0x28c   : > { %v2083_v18 = vpop.f32.mrb[3].mxu1 }
 0x28f   : > { %v6334_v19 = vpop.f32.mrb[4].mxu1 }
 0x290   : > { %v2088_v35 = vpop.f32.mrb[5].mxu1 }
 0x293   : > { %v6336_v20 = vpop.f32.mrb[6].mxu1 }
 0x294   : > { %v2093_v60 = vpop.f32.mrb[7].mxu1 }
 0x297   : > { %v6338_v21 = vpop.f32.mrb[8].mxu1 }
 0x298   : > { %v2098_v23 = vpop.f32.mrb[9].mxu1 }
 0x29b   : > { %v6340_v24 = vpop.f32.mrb[10].mxu1 }
 0x29c   : > { %v2103_v43 = vpop.f32.mrb[11].mxu1 }
 0x29f   : > { %v6342_v56 = vpop.f32.mrb[12].mxu1 }
 0x2a0   : > { %v2108_v59 = vpop.f32.mrb[13].mxu1 }
 0x2a3   : > { %v6344_v2 = vpop.f32.mrb[14].mxu1 }
 0x2a4   : > { %v2113_v25 = vpop.f32.mrb[15].mxu1 }
 0x2a7   : > { %v6346_v26 = vpop.f32.mrb[16].mxu1 }
 0x2a8   : > { %v2118_v30 = vpop.f32.mrb[17].mxu1 }
 0x2ab   : > { %v6348_v28 = vpop.f32.mrb[18].mxu1 }
 0x2ac   : > { %v2123_v29 = vpop.f32.mrb[19].mxu1 }
 0x2af   : > { %v6350_v17 = vpop.f32.mrb[20].mxu1 }
 0x2b0   : > { %v2128_v31 = vpop.f32.mrb[21].mxu1 }
 0x2b3   : > { %v6352_v33 = vpop.f32.mrb[22].mxu1 }
 0x2b4   : > { %v2133_v34 = vpop.f32.mrb[23].mxu1 }
 0x2b7   : > { %v2136_v45 = vpop.f32.mrb[24].mxu1 }
 0x2b8   : > { %v2876_v22 = vpop.f32.mrb[24].mxu0  ;;  %v2138_v36 = vpop.f32.mrb[25].mxu1 }
 0x2b9   : > { %v6354_v38 = vadd.f32 %v2876_v22, %v2136_v45  ;;  %v2878_v40 = vpop.f32.mrb[25].mxu0 }
 0x2bb   : > { %v2141_v41 = vpop.f32.mrb[26].mxu1 }
 0x2bc   : > { %v2881_v42 = vpop.f32.mrb[26].mxu0  ;;  %v2143_v37 = vpop.f32.mrb[27].mxu1 }
 0x2bd   : > { %v6356_v62 = vadd.f32 %v2881_v42, %v2141_v41  ;;  %v2883_v44 = vpop.f32.mrb[27].mxu0 }
 0x2bf   : > { %v2146_v27 = vpop.f32.mrb[28].mxu1 }
 0x2c0   : > { %v2886_v47 = vpop.f32.mrb[28].mxu0  ;;  %v2148_v51 = vpop.f32.mrb[29].mxu1 }
 0x2c1   : > { %v6358_v13 = vadd.f32 %v2886_v47, %v2146_v27  ;;  %v2888_v39 = vpop.f32.mrb[29].mxu0 }
 0x2c3   : > { %v2151_v32 = vpop.f32.mrb[30].mxu1 }
 0x2c4   : > { %v2891_v52 = vpop.f32.mrb[30].mxu0  ;;  %v2153_v54 = vpop.f32.mrb[31].mxu1 }
 0x2c5   : > { %v6360_v55 = vadd.f32 %v2891_v52, %v2151_v32  ;;  %v2893_v0 = vpop.f32.mrb[31].mxu0 }
 0x2c7   : > { %v2156_v48 = vpop.f32.mrb[32].mxu1 }
 0x2c8   : > { %v2896_v57 = vpop.f32.mrb[32].mxu0  ;;  %v2158_v58 = vpop.f32.mrb[33].mxu1 }
 0x2c9   : > { %v6362_v61 = vadd.f32 %v2896_v57, %v2156_v48  ;;  %v2898_v46 = vpop.f32.mrb[33].mxu0 }
 0x2cb   : > { %v2161_v50 = vpop.f32.mrb[34].mxu1 }
 0x2cc   : > { %v2901_v63 = vpop.f32.mrb[34].mxu0  ;;  %v2163_v1 = vpop.f32.mrb[35].mxu1 }
 0x2cd   : > { %v6364_v3 = vadd.f32 %v2901_v63, %v2161_v50  ;;  %v2903_v4 = vpop.f32.mrb[35].mxu0 }
 0x2cf   : > { %v2166_v49 = vpop.f32.mrb[36].mxu1 }
 0x2d0   : > { %v2906_v53 = vpop.f32.mrb[36].mxu0  ;;  %v2168_v5 = vpop.f32.mrb[37].mxu1 }
 0x2d1   : > { %v6366_v6 = vadd.f32 %v2906_v53, %v2166_v49  ;;  %v2908_v7 = vpop.f32.mrb[37].mxu0 }
 0x2d3   : > { %v2171_v8 = vpop.f32.mrb[38].mxu1 }
 0x2d4   : > { %v2911_v9 = vpop.f32.mrb[38].mxu0  ;;  %v2173_v10 = vpop.f32.mrb[39].mxu1 }
 0x2d5   : > { %v6368_v11 = vadd.f32 %v2911_v9, %v2171_v8  ;;  %v2913_v12 = vpop.f32.mrb[39].mxu0 }
 0x2d7   : > { %v2176_v15 = vpop.f32.mrb[40].mxu1 }
 0x2d8   : > { %v2916_v18 = vpop.f32.mrb[40].mxu0  ;;  %v2178_v35 = vpop.f32.mrb[41].mxu1 }
 0x2d9   : > { %v6372_v60 = vadd.f32 %v2916_v18, %v2176_v15  ;;  %v2918_v23 = vpop.f32.mrb[41].mxu0 }
 0x2db   : > { %v2181_v43 = vpop.f32.mrb[42].mxu1 }
 0x2dc   : > { %v2921_v59 = vpop.f32.mrb[42].mxu0  ;;  %v2183_v25 = vpop.f32.mrb[43].mxu1 }
 0x2dd   : > { %v6374_v30 = vadd.f32 %v2921_v59, %v2181_v43  ;;  %v2923_v29 = vpop.f32.mrb[43].mxu0 }
 0x2df   : > { %v2186_v31 = vpop.f32.mrb[44].mxu1 }
 0x2e0   : > { %v2926_v34 = vpop.f32.mrb[44].mxu0  ;;  %v2188_v45 = vpop.f32.mrb[45].mxu1 }
 0x2e1   : > { %v6376_v22 = vadd.f32 %v2926_v34, %v2186_v31  ;;  %v2928_v36 = vpop.f32.mrb[45].mxu0 }
 0x2e3   : > { %v2191_v40 = vpop.f32.mrb[46].mxu1 }
 0x2e4   : > { %v2931_v41 = vpop.f32.mrb[46].mxu0  ;;  %v2193_v42 = vpop.f32.mrb[47].mxu1 }
 0x2e5   : > { %v6378_v37 = vadd.f32 %v2931_v41, %v2191_v40  ;;  %v2933_v44 = vpop.f32.mrb[47].mxu0 }
 0x2e7   : > { %v3061_v27 = vpop.f32.mrb[48].mxu1 }
 0x2e8   : > { %v3001_v47 = vpop.f32.mrb[0].mxu0  ;;  %v3712_v51 = vadd.f32 %v6354_v38, %v3061_v27  ;;  %v3063_v39 = vpop.f32.mrb[49].mxu1 }
 0x2e9   : > { %v3699_v32 = vadd.f32 %v3001_v47, %v6330_v14  ;;  %v3003_v52 = vpop.f32.mrb[1].mxu0 }
 0x2ea   : > { %3133 = vst.msk [vmem:[%s6383_s4 + $0x60] sm:$0xff] %vm3120_vm0, %v3712_v51 }
 0x2eb   : > { %3121 = vst.msk [vmem:[%s6383_s4] sm:$0xff] %vm3120_vm0, %v3699_v32  ;;  %v3066_v54 = vpop.f32.mrb[50].mxu1 }
 0x2ec   : > { %v3006_v0 = vpop.f32.mrb[2].mxu0  ;;  %v3714_v48 = vadd.f32 %v6356_v62, %v3066_v54  ;;  %v3068_v57 = vpop.f32.mrb[51].mxu1 }
 0x2ed   : > { %v3700_v58 = vadd.f32 %v3006_v0, %v6332_v16  ;;  %v3008_v46 = vpop.f32.mrb[3].mxu0 }
 0x2ee   : > { %3134 = vst.msk [vmem:[%s6383_s4 + $0x68] sm:$0xff] %vm3120_vm0, %v3714_v48 }
 0x2ef   : > { %3122 = vst.msk [vmem:[%s6383_s4 + $0x8] sm:$0xff] %vm3120_vm0, %v3700_v58  ;;  %v3071_v14 = vpop.f32.mrb[52].mxu1 }
 0x2f0   : > { %v3011_v38 = vpop.f32.mrb[4].mxu0  ;;  %v3716_v50 = vadd.f32 %v6358_v13, %v3071_v14  ;;  %v3073_v63 = vpop.f32.mrb[53].mxu1 }
 0x2f1   : > { %v3701_v1 = vadd.f32 %v3011_v38, %v6334_v19  ;;  %v3013_v4 = vpop.f32.mrb[5].mxu0 }
 0x2f2   : > { %3135 = vst.msk [vmem:[%s6383_s4 + $0x70] sm:$0xff] %vm3120_vm0, %v3716_v50 }
 0x2f3   : > { %3123 = vst.msk [vmem:[%s6383_s4 + $0x10] sm:$0xff] %vm3120_vm0, %v3701_v1  ;;  %v3076_v16 = vpop.f32.mrb[54].mxu1 }
 0x2f4   : > { %v3016_v62 = vpop.f32.mrb[6].mxu0  ;;  %v3718_v49 = vadd.f32 %v6360_v55, %v3076_v16  ;;  %v3078_v53 = vpop.f32.mrb[55].mxu1 }
 0x2f5   : > { %v3702_v5 = vadd.f32 %v3016_v62, %v6336_v20  ;;  %v3018_v7 = vpop.f32.mrb[7].mxu0 }
 0x2f6   : > { %3136 = vst.msk [vmem:[%s6383_s4 + $0x78] sm:$0xff] %vm3120_vm0, %v3718_v49 }
 0x2f7   : > { %3124 = vst.msk [vmem:[%s6383_s4 + $0x18] sm:$0xff] %vm3120_vm0, %v3702_v5  ;;  %v3081_v19 = vpop.f32.mrb[56].mxu1 }
 0x2f8   : > { %v3021_v13 = vpop.f32.mrb[8].mxu0  ;;  %v3720_v8 = vadd.f32 %v6362_v61, %v3081_v19  ;;  %v3083_v9 = vpop.f32.mrb[57].mxu1 }
 0x2f9   : > { %v3703_v10 = vadd.f32 %v3021_v13, %v6338_v21  ;;  %v3023_v12 = vpop.f32.mrb[9].mxu0 }
 0x2fa   : > { %3137 = vst.msk [vmem:[%s6383_s4 + $0x80] sm:$0xff] %vm3120_vm0, %v3720_v8 }
 0x2fb   : > { %3125 = vst.msk [vmem:[%s6383_s4 + $0x20] sm:$0xff] %vm3120_vm0, %v3703_v10  ;;  %v3086_v20 = vpop.f32.mrb[58].mxu1 }
 0x2fc   : > { %v3026_v55 = vpop.f32.mrb[10].mxu0  ;;  %v3722_v15 = vadd.f32 %v6364_v3, %v3086_v20  ;;  %v3088_v18 = vpop.f32.mrb[59].mxu1 }
 0x2fd   : > { %v3704_v35 = vadd.f32 %v3026_v55, %v6340_v24  ;;  %v3028_v23 = vpop.f32.mrb[11].mxu0 }
 0x2fe   : > { %3138 = vst.msk [vmem:[%s6383_s4 + $0x88] sm:$0xff] %vm3120_vm0, %v3722_v15 }
 0x2ff   : > { %3126 = vst.msk [vmem:[%s6383_s4 + $0x28] sm:$0xff] %vm3120_vm0, %v3704_v35  ;;  %v3091_v21 = vpop.f32.mrb[60].mxu1 }
 0x300   : > { %v3031_v61 = vpop.f32.mrb[12].mxu0  ;;  %v3724_v43 = vadd.f32 %v6366_v6, %v3091_v21  ;;  %v3093_v59 = vpop.f32.mrb[61].mxu1 }
 0x301   : > { %v3705_v25 = vadd.f32 %v3031_v61, %v6342_v56  ;;  %v3033_v29 = vpop.f32.mrb[13].mxu0 }
 0x302   : > { %3139 = vst.msk [vmem:[%s6383_s4 + $0x90] sm:$0xff] %vm3120_vm0, %v3724_v43 }
 0x303   : > { %3127 = vst.msk [vmem:[%s6383_s4 + $0x30] sm:$0xff] %vm3120_vm0, %v3705_v25  ;;  %v3096_v24 = vpop.f32.mrb[62].mxu1 }
 0x304   : > { %v3036_v3 = vpop.f32.mrb[14].mxu0  ;;  %v3726_v31 = vadd.f32 %v6368_v11, %v3096_v24  ;;  %v3098_v34 = vpop.f32.mrb[63].mxu1 }
 0x305   : > { %v3706_v45 = vadd.f32 %v3036_v3, %v6344_v2  ;;  %v3038_v36 = vpop.f32.mrb[15].mxu0 }
 0x306   : > { %3140 = vst.msk [vmem:[%s6383_s4 + $0x98] sm:$0xff] %vm3120_vm0, %v3726_v31 }
 0x307   : > { %3128 = vst.msk [vmem:[%s6383_s4 + $0x38] sm:$0xff] %vm3120_vm0, %v3706_v45  ;;  %v3101_v56 = vpop.f32.mrb[64].mxu1 }
 0x308   : > { %v3041_v6 = vpop.f32.mrb[16].mxu0  ;;  %v3728_v40 = vadd.f32 %v6372_v60, %v3101_v56  ;;  %v3103_v41 = vpop.f32.mrb[65].mxu1 }
 0x309   : > { %v3707_v42 = vadd.f32 %v3041_v6, %v6346_v26  ;;  %v3043_v44 = vpop.f32.mrb[17].mxu0 }
 0x30a   : > { %3141 = vst.msk [vmem:[%s6383_s4 + $0xa0] sm:$0xff] %vm3120_vm0, %v3728_v40 }
 0x30b   : > { %3129 = vst.msk [vmem:[%s6383_s4 + $0x40] sm:$0xff] %vm3120_vm0, %v3707_v42  ;;  %v3106_v2 = vpop.f32.mrb[66].mxu1 }
 0x30c   : > { %v3046_v11 = vpop.f32.mrb[18].mxu0  ;;  %v3730_v27 = vadd.f32 %v6374_v30, %v3106_v2  ;;  %v3108_v47 = vpop.f32.mrb[67].mxu1 }
 0x30d   : > { %v3708_v51 = vadd.f32 %v3046_v11, %v6348_v28  ;;  %v3048_v39 = vpop.f32.mrb[19].mxu0 }
 0x30e   : > { %3142 = vst.msk [vmem:[%s6383_s4 + $0xa8] sm:$0xff] %vm3120_vm0, %v3730_v27 }
 0x30f   : > { %3130 = vst.msk [vmem:[%s6383_s4 + $0x48] sm:$0xff] %vm3120_vm0, %v3708_v51  ;;  %v3111_v26 = vpop.f32.mrb[68].mxu1 }
 0x310   : > { %v3051_v60 = vpop.f32.mrb[20].mxu0  ;;  %v3732_v32 = vadd.f32 %v6376_v22, %v3111_v26  ;;  %v3113_v52 = vpop.f32.mrb[69].mxu1 }
 0x311   : > { %v3709_v54 = vadd.f32 %v3051_v60, %v6350_v17  ;;  %v3053_v0 = vpop.f32.mrb[21].mxu0 }
 0x312   : > { %3143 = vst.msk [vmem:[%s6383_s4 + $0xb0] sm:$0xff] %vm3120_vm0, %v3732_v32 }
 0x313   : > { %3131 = vst.msk [vmem:[%s6383_s4 + $0x50] sm:$0xff] %vm3120_vm0, %v3709_v54  ;;  %v3116_v28 = vpop.f32.mrb[70].mxu1 }
 0x314   : > { %v3056_v30 = vpop.f32.mrb[22].mxu0  ;;  %v3734_v48 = vadd.f32 %v6378_v37, %v3116_v28  ;;  %v3118_v57 = vpop.f32.mrb[71].mxu1 }
 0x315   : > { %v3710_v58 = vadd.f32 %v3056_v30, %v6352_v33  ;;  %v3058_v46 = vpop.f32.mrb[23].mxu0 }
 0x316   : > { %3144 = vst.msk [vmem:[%s6383_s4 + $0xb8] sm:$0xff] %vm3120_vm0, %v3734_v48 }
 0x317   : > { %3132 = vst.msk [vmem:[%s6383_s4 + $0x58] sm:$0xff] %vm3120_vm0, %v3710_v58 }
 0x318 PF: > { %p14_p3 = scmp.ge.s32.totalorder %s4251_s17, 4   ;;  %s6489_s12 = smov %s4196_s13 }
 0x319   : > { %s6490_s13 = smov %s4200_s14  ;;  %s6491_s14 = smov %s4261_s20 }
 0x31a   : > { %s6492_s15 = smov %s4251_s17  ;;  %16 = sbr.rel (!%p14_p3) target bundleno = 4 (0x4), region = 77 }
 0x321   :  { %3167 = vsyncpa [#allocation3], 1 }
 0x322   :  { %3169 = vsyncpa [#allocation3 + $0x1], 1 }
 0x323   :  { %3170 = vsyncpa [#allocation5], 1 }
 0x324   :  { %3172 = vsyncpa [#allocation5 + $0x1], 1 }

</bundles_post_ra>
